<compile_context>
chip_gen: v5e
topology: v5e:2x2
jax: 0.10.0
libtpu: 0.0.40
codegen_flags: <defaults>
</compile_context>

<pallas_src>
import functools

import jax
import jax.numpy as jnp
from jax.experimental import pallas as pl
from jax.experimental.pallas import tpu as pltpu


_VMEM = pl.BlockSpec(memory_space=pltpu.MemorySpace.VMEM)
_COMPILER_PARAMS = pltpu.CompilerParams(vmem_limit_bytes=32 * 1024 * 1024)


def _lstm_cell(gates, c_prev, H):
    """PyTorch LSTM cell, gate column order (i, f, g, o). gates: (B, 4H) f32."""
    # Full-width transcendentals on the (B, 4H) block (EUP), then slice the
    # already-activated values.
    # TODO(synk): once H % 128 == 0, re-permute gate columns to [i|f|o|g] so one
    # sigmoid covers a contiguous 3H slab and tanh only H (8H -> 5H EUP columns).
    sig = jax.nn.sigmoid(gates)
    th = jnp.tanh(gates)
    i_g = sig[:, 0 * H:1 * H]
    f_g = sig[:, 1 * H:2 * H]
    g_g = th[:, 2 * H:3 * H]
    o_g = sig[:, 3 * H:4 * H]
    c = f_g * c_prev + i_g * g_g
    h = o_g * jnp.tanh(c)
    return h, c


# --------------------- fused bidirectional LSTM layer kernel ----------------------
def _bilstm_layer_kernel(x_ref, wih_ref, whh_f_ref, whh_b_ref, b_ref, *out_refs,
                         seq_len, batch, hidden, pool_x):
    """One bidirectional LSTM layer over the whole (padded) sequence.

    x_ref     : (L*B, D)  bf16  time-major flattened input (row t*B + b)
    wih_ref   : (D, 8H)   bf16  [W_ih_fwd | W_ih_bwd], gate order [i|f|g|o] per half
    whh_*_ref : (H, 4H)   bf16  pre-transposed W_hh per direction
    b_ref     : (1, 8H)   f32   merged (b_ih + b_hh), fwd | bwd halves
    out_refs  : seq_out (L*B, 2H) bf16 [:, :H]=fwd, [:, H:]=bwd
                [+ pool_out (B, D) f32 = relu(max over t of x)]  when pool_x
    """
    if pool_x:
        seq_out_ref, pool_ref = out_refs
    else:
        (seq_out_ref,) = out_refs
    L, B, H = seq_len, batch, hidden

    x = x_ref[...]                                                     # (L*B, D) bf16
    # ONE merged input-projection GEMM for both directions (bias folded in).
    gx = jnp.dot(x, wih_ref[...], preferred_element_type=jnp.float32) + b_ref[...]
    whh_f = whh_f_ref[...]
    whh_b = whh_b_ref[...]

    zeros = jnp.zeros((B, H), jnp.float32)
    h_f, c_f = zeros, zeros
    h_b, c_b = zeros, zeros
    xm = x[0:B, :] if pool_x else None

    # Fully unrolled time loop (static trip count); fwd (time s) and bwd
    # (time L-1-s) recurrences are independent and interleaved per step.
    for s in range(L):
        tf = s
        tb = L - 1 - s
        g_f = gx[tf * B:(tf + 1) * B, 0:4 * H] + jnp.dot(
            h_f.astype(jnp.bfloat16), whh_f, preferred_element_type=jnp.float32)
        g_b = gx[tb * B:(tb + 1) * B, 4 * H:8 * H] + jnp.dot(
            h_b.astype(jnp.bfloat16), whh_b, preferred_element_type=jnp.float32)
        h_f, c_f = _lstm_cell(g_f, c_f, H)
        h_b, c_b = _lstm_cell(g_b, c_b, H)
        # Per-step sliced stores: no end-of-loop concat, no 2L live (B,H) values.
        seq_out_ref[tf * B:(tf + 1) * B, 0:H] = h_f.astype(seq_out_ref.dtype)
        seq_out_ref[tb * B:(tb + 1) * B, H:2 * H] = h_b.astype(seq_out_ref.dtype)
        if pool_x and s >= 1:
            xm = jnp.maximum(xm, x[s * B:(s + 1) * B, :])

    if pool_x:
        # relu commutes with max (monotone) -> apply once after pooling.
        pool_ref[...] = jnp.maximum(xm.astype(jnp.float32), 0.0)


def lstm_bidir_layer(x_flat, layer, *, seq_len, batch, pool_x=False):
    """x_flat: (L*B, D) time-major flattened; returns (L*B, 2H) [, pooled (B, D)]."""
    H = layer["w_hh_f"].shape[0]
    D = x_flat.shape[1]
    kernel = functools.partial(_bilstm_layer_kernel, seq_len=seq_len,
                               batch=batch, hidden=H, pool_x=pool_x)
    out_shapes = [jax.ShapeDtypeStruct((seq_len * batch, 2 * H), jnp.bfloat16)]
    if pool_x:
        out_shapes.append(jax.ShapeDtypeStruct((batch, D), jnp.float32))
    outs = pl.pallas_call(
        kernel,
        out_shape=tuple(out_shapes),
        in_specs=[_VMEM] * 5,
        out_specs=tuple([_VMEM] * len(out_shapes)),
        compiler_params=_COMPILER_PARAMS,
    )(x_flat, layer["w_ih"], layer["w_hh_f"], layer["w_hh_b"], layer["bias"])
    if pool_x:
        return outs[0], outs[1]
    return outs[0]


# ------------- fused last biLSTM layer + max-pool(seq) + concat + fc ---------------
def _bilstm_last_layer_kernel(x_ref, wih_ref, whh_f_ref, whh_b_ref, b_ref, *rest,
                              seq_len, batch, hidden, pool_x_as_emb):
    """Last layer: recurrence + running max over time + FC; no (L*B,2H) HBM write.

    rest = ([pooled_emb (B,E) f32,] fc_w (E+2H, Cp) bf16, fc_b (1, Cp) f32,
            o_ref (B, Cp) f32)
    """
    if pool_x_as_emb:
        fcw_ref, fcb_ref, o_ref = rest
        pe_ref = None
    else:
        pe_ref, fcw_ref, fcb_ref, o_ref = rest
    L, B, H = seq_len, batch, hidden

    x = x_ref[...]
    gx = jnp.dot(x, wih_ref[...], preferred_element_type=jnp.float32) + b_ref[...]
    whh_f = whh_f_ref[...]
    whh_b = whh_b_ref[...]

    zeros = jnp.zeros((B, H), jnp.float32)
    h_f, c_f = zeros, zeros
    h_b, c_b = zeros, zeros
    m_f = None
    m_b = None
    xm = x[0:B, :] if pool_x_as_emb else None

    for s in range(L):
        tf = s
        tb = L - 1 - s
        g_f = gx[tf * B:(tf + 1) * B, 0:4 * H] + jnp.dot(
            h_f.astype(jnp.bfloat16), whh_f, preferred_element_type=jnp.float32)
        g_b = gx[tb * B:(tb + 1) * B, 4 * H:8 * H] + jnp.dot(
            h_b.astype(jnp.bfloat16), whh_b, preferred_element_type=jnp.float32)
        h_f, c_f = _lstm_cell(g_f, c_f, H)
        h_b, c_b = _lstm_cell(g_b, c_b, H)
        # Fused MaxPool1d(pad_size): running max over time, never stored to HBM.
        m_f = h_f if m_f is None else jnp.maximum(m_f, h_f)
        m_b = h_b if m_b is None else jnp.maximum(m_b, h_b)
        if pool_x_as_emb and s >= 1:
            xm = jnp.maximum(xm, x[s * B:(s + 1) * B, :])

    if pool_x_as_emb:
        pe = jnp.maximum(xm.astype(jnp.float32), 0.0)     # relu after max (monotone)
    else:
        pe = pe_ref[...]                                   # already relu(max(emb))
    # Pooled feature order matches torch.cat((embed, out), -1): [emb | fwd | bwd].
    pooled = jnp.concatenate(
        [pe, jnp.maximum(m_f, 0.0), jnp.maximum(m_b, 0.0)], axis=-1)
    o_ref[...] = (jnp.dot(pooled.astype(jnp.bfloat16), fcw_ref[...],
                          preferred_element_type=jnp.float32)
                  + fcb_ref[...]).astype(o_ref.dtype)


def lstm_last_layer_fc(x_flat, layer, pooled_emb, fc_w, fc_b, *, seq_len, batch):
    H = layer["w_hh_f"].shape[0]
    C_pad = fc_w.shape[1]
    pool_x_as_emb = pooled_emb is None
    kernel = functools.partial(_bilstm_last_layer_kernel, seq_len=seq_len,
                               batch=batch, hidden=H, pool_x_as_emb=pool_x_as_emb)
    args = [x_flat, layer["w_ih"], layer["w_hh_f"], layer["w_hh_b"], layer["bias"]]
    if not pool_x_as_emb:
        args.append(pooled_emb)
    args += [fc_w, fc_b]
    return pl.pallas_call(
        kernel,
        out_shape=jax.ShapeDtypeStruct((batch, C_pad), jnp.float32),
        in_specs=[_VMEM] * len(args),
        out_specs=_VMEM,
        compiler_params=_COMPILER_PARAMS,
    )(*args)


# ------------------------------------ model ---------------------------------------
def init_params(key, *, n_vocab, embed, hidden, num_layers, num_classes):
    k_emb, k_lstm, k_fc = jax.random.split(key, 3)

    emb_tbl = 0.1 * jax.random.normal(k_emb, (n_vocab, embed), jnp.float32)
    emb_tbl = emb_tbl.at[0].set(0.0)                       # padding_idx=0
    emb_tbl = emb_tbl.astype(jnp.bfloat16)

    lstm_layers = []
    lkeys = jax.random.split(k_lstm, num_layers)
    scale = 1.0 / (hidden ** 0.5)
    for l in range(num_layers):
        d_in = embed if l == 0 else 2 * hidden
        wihs, whhs, biases = [], [], []
        for dk in jax.random.split(lkeys[l], 2):           # fwd, bwd
            k1, k2, k3, k4 = jax.random.split(dk, 4)
            wihs.append(jax.random.uniform(k1, (d_in, 4 * hidden), jnp.float32, -scale, scale))
            whhs.append(jax.random.uniform(k2, (hidden, 4 * hidden), jnp.float32, -scale, scale))
            # merged b_ih + b_hh (sum of two independent uniforms, as in PyTorch)
            biases.append(
                jax.random.uniform(k3, (1, 4 * hidden), jnp.float32, -scale, scale)
                + jax.random.uniform(k4, (1, 4 * hidden), jnp.float32, -scale, scale))
        lstm_layers.append({
            # Merged fwd|bwd input projection -> one (D, 8H) GEMM per layer.
            "w_ih": jnp.concatenate(wihs, axis=1).astype(jnp.bfloat16),
            "bias": jnp.concatenate(biases, axis=1),                     # f32
            "w_hh_f": whhs[0].astype(jnp.bfloat16),
            "w_hh_b": whhs[1].astype(jnp.bfloat16),
        })

    f_in = 2 * hidden + embed
    fc_scale = 1.0 / (f_in ** 0.5)
    k_fw, k_fb = jax.random.split(k_fc)
    fc_w = jax.random.uniform(k_fw, (f_in, num_classes), jnp.float32, -fc_scale, fc_scale)
    fc_b = jax.random.uniform(k_fb, (1, num_classes), jnp.float32, -fc_scale, fc_scale)
    # Pad FC output dim to a lane-dense multiple of 128 (sliced back in JAX glue).
    c_pad = max(128, ((num_classes + 127) // 128) * 128)
    fc_w = jnp.pad(fc_w, ((0, 0), (0, c_pad - num_classes))).astype(jnp.bfloat16)
    fc_b = jnp.pad(fc_b, ((0, 0), (0, c_pad - num_classes)))

    return {"embedding": emb_tbl, "lstm": lstm_layers, "fc_w": fc_w, "fc_b": fc_b,
            "num_classes": num_classes}


def rcnn_forward(params, x):
    tokens = x[0]                               # (B, L) int32; x[1] (seq_len) unused --
    # matches the reference module, which runs the LSTM / pool over the full pad_size.
    B, L = tokens.shape
    # Pad batch to a multiple of 16 (bf16 packed-sublane tile) so every per-step slice
    # and sliced store is tile-aligned; padded rows use token 0 (zero embedding) and
    # are sliced off at the end.
    B_pad = ((B + 15) // 16) * 16
    tokens_p = jnp.pad(tokens, ((0, B_pad - B), (0, 0)))
    # time-major flattened ids: row index t*B_pad + b -> no activation transposes anywhere
    ids_tm = jnp.transpose(tokens_p, (1, 0)).reshape(-1)            # (L*B_pad,)
    emb = params["embedding"][ids_tm]                               # gather (glue), bf16 (L*B_pad, E)

    layers = params["lstm"]
    if len(layers) == 1:
        logits = lstm_last_layer_fc(emb, layers[0], None, params["fc_w"],
                                    params["fc_b"], seq_len=L, batch=B_pad)
    else:
        # First layer also produces relu(max over t of emb) so the head never re-reads emb.
        seq, pooled_emb = lstm_bidir_layer(emb, layers[0], seq_len=L, batch=B_pad,
                                           pool_x=True)
        for layer in layers[1:-1]:              # inference-time dropout = identity
            seq = lstm_bidir_layer(seq, layer, seq_len=L, batch=B_pad)
        logits = lstm_last_layer_fc(seq, layers[-1], pooled_emb, params["fc_w"],
                                    params["fc_b"], seq_len=L, batch=B_pad)

    # TODO(synk): torch's .squeeze() would also drop the batch dim if B == 1; we keep (B, C).
    return logits[:B, :params["num_classes"]]


if __name__ == "__main__":
    # small config consistent with the module
    B, L = 2, 8                 # batch, pad_size (seq len)
    n_vocab, E, H = 50, 32, 32  # vocab, embed, hidden_size
    num_layers, C = 2, 4        # num_layers, num_classes

    key = jax.random.PRNGKey(0)
    pkey, xkey = jax.random.split(key)
    params = init_params(pkey, n_vocab=n_vocab, embed=E, hidden=H,
                         num_layers=num_layers, num_classes=C)

    tokens = jax.random.randint(xkey, (B, L), 0, n_vocab, dtype=jnp.int32)
    seq_len = jnp.full((B,), L, dtype=jnp.int32)        # mimic the (x, seq_len) tuple input

    out = rcnn_forward(params, (tokens, seq_len))
    out = jax.block_until_ready(out)
    assert out.shape == (B, C) and out.dtype == jnp.float32
    print("KERNEL_OK")
</pallas_src>

<mosaic_0001>
module attributes {stable_mosaic.version = 11 : i64} {
  func.func @_bilstm_layer_kernel(%arg0: memref<128x32xbf16, #tpu.memory_space<vmem>>, %arg1: memref<32x256xbf16, #tpu.memory_space<vmem>>, %arg2: memref<32x128xbf16, #tpu.memory_space<vmem>>, %arg3: memref<32x128xbf16, #tpu.memory_space<vmem>>, %arg4: memref<1x256xf32, #tpu.memory_space<vmem>>, %arg5: memref<128x64xbf16, #tpu.memory_space<vmem>>, %arg6: memref<16x32xf32, #tpu.memory_space<vmem>>) attributes {dimension_semantics = [], scalar_prefetch = 0 : i64, scratch_operands = 0 : i64, tpu.core_type = #tpu.core_type<tc>} {
    %c0 = arith.constant 0 : index
    %c0_0 = arith.constant 0 : index
    %0 = vector.load %arg0[%c0, %c0_0] : memref<128x32xbf16, #tpu.memory_space<vmem>>, vector<128x32xbf16>
    %c0_1 = arith.constant 0 : index
    %c0_2 = arith.constant 0 : index
    %1 = vector.load %arg1[%c0_1, %c0_2] : memref<32x256xbf16, #tpu.memory_space<vmem>>, vector<32x256xbf16>
    %cst = arith.constant dense<0.000000e+00> : vector<128x256xf32>
    %2 = tpu.matmul %0, %1, %cst {dimension_numbers = #tpu.dot_dimension_numbers<[1], [0], [0], [1], [0, 0, 1, 1], [], []>} : vector<128x32xbf16>, vector<32x256xbf16>, vector<128x256xf32> -> vector<128x256xf32>
    %c0_3 = arith.constant 0 : index
    %c0_4 = arith.constant 0 : index
    %3 = vector.load %arg4[%c0_3, %c0_4] : memref<1x256xf32, #tpu.memory_space<vmem>>, vector<1x256xf32>
    %4 = vector.broadcast %3 : vector<1x256xf32> to vector<128x256xf32>
    %5 = arith.addf %2, %4 : vector<128x256xf32>
    %c0_5 = arith.constant 0 : index
    %c0_6 = arith.constant 0 : index
    %6 = vector.load %arg2[%c0_5, %c0_6] : memref<32x128xbf16, #tpu.memory_space<vmem>>, vector<32x128xbf16>
    %c0_7 = arith.constant 0 : index
    %c0_8 = arith.constant 0 : index
    %7 = vector.load %arg3[%c0_7, %c0_8] : memref<32x128xbf16, #tpu.memory_space<vmem>>, vector<32x128xbf16>
    %cst_9 = arith.constant 0.000000e+00 : f32
    %8 = vector.broadcast %cst_9 : f32 to vector<16x32xf32>
    %9 = vector.extract_strided_slice %0 {offsets = [0, 0], sizes = [16, 32], strides = [1, 1]} : vector<128x32xbf16> to vector<16x32xbf16>
    %10 = vector.extract_strided_slice %5 {offsets = [0, 0], sizes = [16, 128], strides = [1, 1]} : vector<128x256xf32> to vector<16x128xf32>
    %11 = arith.truncf %8 : vector<16x32xf32> to vector<16x32xbf16>
    %cst_10 = arith.constant dense<0.000000e+00> : vector<16x128xf32>
    %12 = tpu.matmul %11, %6, %cst_10 {dimension_numbers = #tpu.dot_dimension_numbers<[1], [0], [0], [1], [0, 0, 1, 1], [], []>} : vector<16x32xbf16>, vector<32x128xbf16>, vector<16x128xf32> -> vector<16x128xf32>
    %13 = arith.addf %10, %12 : vector<16x128xf32>
    %14 = vector.extract_strided_slice %5 {offsets = [112, 128], sizes = [16, 128], strides = [1, 1]} : vector<128x256xf32> to vector<16x128xf32>
    %15 = arith.truncf %8 : vector<16x32xf32> to vector<16x32xbf16>
    %cst_11 = arith.constant dense<0.000000e+00> : vector<16x128xf32>
    %16 = tpu.matmul %15, %7, %cst_11 {dimension_numbers = #tpu.dot_dimension_numbers<[1], [0], [0], [1], [0, 0, 1, 1], [], []>} : vector<16x32xbf16>, vector<32x128xbf16>, vector<16x128xf32> -> vector<16x128xf32>
    %17 = arith.addf %14, %16 : vector<16x128xf32>
    %18 = arith.negf %13 : vector<16x128xf32>
    %19 = math.exp %18 : vector<16x128xf32>
    %cst_12 = arith.constant 1.000000e+00 : f32
    %20 = vector.broadcast %cst_12 : f32 to vector<16x128xf32>
    %21 = arith.addf %20, %19 : vector<16x128xf32>
    %22 = arith.divf %20, %21 : vector<16x128xf32>
    %23 = math.tanh %13 : vector<16x128xf32>
    %24 = vector.extract_strided_slice %22 {offsets = [0, 0], sizes = [16, 32], strides = [1, 1]} : vector<16x128xf32> to vector<16x32xf32>
    %25 = vector.extract_strided_slice %22 {offsets = [0, 32], sizes = [16, 32], strides = [1, 1]} : vector<16x128xf32> to vector<16x32xf32>
    %26 = vector.extract_strided_slice %23 {offsets = [0, 64], sizes = [16, 32], strides = [1, 1]} : vector<16x128xf32> to vector<16x32xf32>
    %27 = vector.extract_strided_slice %22 {offsets = [0, 96], sizes = [16, 32], strides = [1, 1]} : vector<16x128xf32> to vector<16x32xf32>
    %28 = arith.mulf %25, %8 : vector<16x32xf32>
    %29 = arith.mulf %24, %26 : vector<16x32xf32>
    %30 = arith.addf %28, %29 : vector<16x32xf32>
    %31 = math.tanh %30 : vector<16x32xf32>
    %32 = arith.mulf %27, %31 : vector<16x32xf32>
    %33 = arith.negf %17 : vector<16x128xf32>
    %34 = math.exp %33 : vector<16x128xf32>
    %cst_13 = arith.constant 1.000000e+00 : f32
    %35 = vector.broadcast %cst_13 : f32 to vector<16x128xf32>
    %36 = arith.addf %35, %34 : vector<16x128xf32>
    %37 = arith.divf %35, %36 : vector<16x128xf32>
    %38 = math.tanh %17 : vector<16x128xf32>
    %39 = vector.extract_strided_slice %37 {offsets = [0, 0], sizes = [16, 32], strides = [1, 1]} : vector<16x128xf32> to vector<16x32xf32>
    %40 = vector.extract_strided_slice %37 {offsets = [0, 32], sizes = [16, 32], strides = [1, 1]} : vector<16x128xf32> to vector<16x32xf32>
    %41 = vector.extract_strided_slice %38 {offsets = [0, 64], sizes = [16, 32], strides = [1, 1]} : vector<16x128xf32> to vector<16x32xf32>
    %42 = vector.extract_strided_slice %37 {offsets = [0, 96], sizes = [16, 32], strides = [1, 1]} : vector<16x128xf32> to vector<16x32xf32>
    %43 = arith.mulf %40, %8 : vector<16x32xf32>
    %44 = arith.mulf %39, %41 : vector<16x32xf32>
    %45 = arith.addf %43, %44 : vector<16x32xf32>
    %46 = math.tanh %45 : vector<16x32xf32>
    %47 = arith.mulf %42, %46 : vector<16x32xf32>
    %48 = arith.truncf %32 : vector<16x32xf32> to vector<16x32xbf16>
    %c0_14 = arith.constant 0 : index
    %c0_15 = arith.constant 0 : index
    %49 = vector.load %arg5[%c0_14, %c0_15] : memref<128x64xbf16, #tpu.memory_space<vmem>>, vector<16x32xbf16>
    tpu.vector_store %arg5[%c0_14, %c0_15], %48 {strides = array<i32>} : memref<128x64xbf16, #tpu.memory_space<vmem>>, vector<16x32xbf16>,
    %50 = arith.truncf %47 : vector<16x32xf32> to vector<16x32xbf16>
    %c112 = arith.constant 112 : index
    %c32 = arith.constant 32 : index
    %51 = vector.load %arg5[%c112, %c32] : memref<128x64xbf16, #tpu.memory_space<vmem>>, vector<16x32xbf16>
    tpu.vector_store %arg5[%c112, %c32], %50 {strides = array<i32>} : memref<128x64xbf16, #tpu.memory_space<vmem>>, vector<16x32xbf16>,
    %52 = vector.extract_strided_slice %5 {offsets = [16, 0], sizes = [16, 128], strides = [1, 1]} : vector<128x256xf32> to vector<16x128xf32>
    %53 = arith.truncf %32 : vector<16x32xf32> to vector<16x32xbf16>
    %cst_16 = arith.constant dense<0.000000e+00> : vector<16x128xf32>
    %54 = tpu.matmul %53, %6, %cst_16 {dimension_numbers = #tpu.dot_dimension_numbers<[1], [0], [0], [1], [0, 0, 1, 1], [], []>} : vector<16x32xbf16>, vector<32x128xbf16>, vector<16x128xf32> -> vector<16x128xf32>
    %55 = arith.addf %52, %54 : vector<16x128xf32>
    %56 = vector.extract_strided_slice %5 {offsets = [96, 128], sizes = [16, 128], strides = [1, 1]} : vector<128x256xf32> to vector<16x128xf32>
    %57 = arith.truncf %47 : vector<16x32xf32> to vector<16x32xbf16>
    %cst_17 = arith.constant dense<0.000000e+00> : vector<16x128xf32>
    %58 = tpu.matmul %57, %7, %cst_17 {dimension_numbers = #tpu.dot_dimension_numbers<[1], [0], [0], [1], [0, 0, 1, 1], [], []>} : vector<16x32xbf16>, vector<32x128xbf16>, vector<16x128xf32> -> vector<16x128xf32>
    %59 = arith.addf %56, %58 : vector<16x128xf32>
    %60 = arith.negf %55 : vector<16x128xf32>
    %61 = math.exp %60 : vector<16x128xf32>
    %cst_18 = arith.constant 1.000000e+00 : f32
    %62 = vector.broadcast %cst_18 : f32 to vector<16x128xf32>
    %63 = arith.addf %62, %61 : vector<16x128xf32>
    %64 = arith.divf %62, %63 : vector<16x128xf32>
    %65 = math.tanh %55 : vector<16x128xf32>
    %66 = vector.extract_strided_slice %64 {offsets = [0, 0], sizes = [16, 32], strides = [1, 1]} : vector<16x128xf32> to vector<16x32xf32>
    %67 = vector.extract_strided_slice %64 {offsets = [0, 32], sizes = [16, 32], strides = [1, 1]} : vector<16x128xf32> to vector<16x32xf32>
    %68 = vector.extract_strided_slice %65 {offsets = [0, 64], sizes = [16, 32], strides = [1, 1]} : vector<16x128xf32> to vector<16x32xf32>
    %69 = vector.extract_strided_slice %64 {offsets = [0, 96], sizes = [16, 32], strides = [1, 1]} : vector<16x128xf32> to vector<16x32xf32>
    %70 = arith.mulf %67, %30 : vector<16x32xf32>
    %71 = arith.mulf %66, %68 : vector<16x32xf32>
    %72 = arith.addf %70, %71 : vector<16x32xf32>
    %73 = math.tanh %72 : vector<16x32xf32>
    %74 = arith.mulf %69, %73 : vector<16x32xf32>
    %75 = arith.negf %59 : vector<16x128xf32>
    %76 = math.exp %75 : vector<16x128xf32>
    %cst_19 = arith.constant 1.000000e+00 : f32
    %77 = vector.broadcast %cst_19 : f32 to vector<16x128xf32>
    %78 = arith.addf %77, %76 : vector<16x128xf32>
    %79 = arith.divf %77, %78 : vector<16x128xf32>
    %80 = math.tanh %59 : vector<16x128xf32>
    %81 = vector.extract_strided_slice %79 {offsets = [0, 0], sizes = [16, 32], strides = [1, 1]} : vector<16x128xf32> to vector<16x32xf32>
    %82 = vector.extract_strided_slice %79 {offsets = [0, 32], sizes = [16, 32], strides = [1, 1]} : vector<16x128xf32> to vector<16x32xf32>
    %83 = vector.extract_strided_slice %80 {offsets = [0, 64], sizes = [16, 32], strides = [1, 1]} : vector<16x128xf32> to vector<16x32xf32>
    %84 = vector.extract_strided_slice %79 {offsets = [0, 96], sizes = [16, 32], strides = [1, 1]} : vector<16x128xf32> to vector<16x32xf32>
    %85 = arith.mulf %82, %45 : vector<16x32xf32>
    %86 = arith.mulf %81, %83 : vector<16x32xf32>
    %87 = arith.addf %85, %86 : vector<16x32xf32>
    %88 = math.tanh %87 : vector<16x32xf32>
    %89 = arith.mulf %84, %88 : vector<16x32xf32>
    %90 = arith.truncf %74 : vector<16x32xf32> to vector<16x32xbf16>
    %c16 = arith.constant 16 : index
    %c0_20 = arith.constant 0 : index
    %91 = vector.load %arg5[%c16, %c0_20] : memref<128x64xbf16, #tpu.memory_space<vmem>>, vector<16x32xbf16>
    tpu.vector_store %arg5[%c16, %c0_20], %90 {strides = array<i32>} : memref<128x64xbf16, #tpu.memory_space<vmem>>, vector<16x32xbf16>,
    %92 = arith.truncf %89 : vector<16x32xf32> to vector<16x32xbf16>
    %c96 = arith.constant 96 : index
    %c32_21 = arith.constant 32 : index
    %93 = vector.load %arg5[%c96, %c32_21] : memref<128x64xbf16, #tpu.memory_space<vmem>>, vector<16x32xbf16>
    tpu.vector_store %arg5[%c96, %c32_21], %92 {strides = array<i32>} : memref<128x64xbf16, #tpu.memory_space<vmem>>, vector<16x32xbf16>,
    %94 = vector.extract_strided_slice %0 {offsets = [16, 0], sizes = [16, 32], strides = [1, 1]} : vector<128x32xbf16> to vector<16x32xbf16>
    %95 = arith.maximumf %9, %94 : vector<16x32xbf16>
    %96 = vector.extract_strided_slice %5 {offsets = [32, 0], sizes = [16, 128], strides = [1, 1]} : vector<128x256xf32> to vector<16x128xf32>
    %97 = arith.truncf %74 : vector<16x32xf32> to vector<16x32xbf16>
    %cst_22 = arith.constant dense<0.000000e+00> : vector<16x128xf32>
    %98 = tpu.matmul %97, %6, %cst_22 {dimension_numbers = #tpu.dot_dimension_numbers<[1], [0], [0], [1], [0, 0, 1, 1], [], []>} : vector<16x32xbf16>, vector<32x128xbf16>, vector<16x128xf32> -> vector<16x128xf32>
    %99 = arith.addf %96, %98 : vector<16x128xf32>
    %100 = vector.extract_strided_slice %5 {offsets = [80, 128], sizes = [16, 128], strides = [1, 1]} : vector<128x256xf32> to vector<16x128xf32>
    %101 = arith.truncf %89 : vector<16x32xf32> to vector<16x32xbf16>
    %cst_23 = arith.constant dense<0.000000e+00> : vector<16x128xf32>
    %102 = tpu.matmul %101, %7, %cst_23 {dimension_numbers = #tpu.dot_dimension_numbers<[1], [0], [0], [1], [0, 0, 1, 1], [], []>} : vector<16x32xbf16>, vector<32x128xbf16>, vector<16x128xf32> -> vector<16x128xf32>
    %103 = arith.addf %100, %102 : vector<16x128xf32>
    %104 = arith.negf %99 : vector<16x128xf32>
    %105 = math.exp %104 : vector<16x128xf32>
    %cst_24 = arith.constant 1.000000e+00 : f32
    %106 = vector.broadcast %cst_24 : f32 to vector<16x128xf32>
    %107 = arith.addf %106, %105 : vector<16x128xf32>
    %108 = arith.divf %106, %107 : vector<16x128xf32>
    %109 = math.tanh %99 : vector<16x128xf32>
    %110 = vector.extract_strided_slice %108 {offsets = [0, 0], sizes = [16, 32], strides = [1, 1]} : vector<16x128xf32> to vector<16x32xf32>
    %111 = vector.extract_strided_slice %108 {offsets = [0, 32], sizes = [16, 32], strides = [1, 1]} : vector<16x128xf32> to vector<16x32xf32>
    %112 = vector.extract_strided_slice %109 {offsets = [0, 64], sizes = [16, 32], strides = [1, 1]} : vector<16x128xf32> to vector<16x32xf32>
    %113 = vector.extract_strided_slice %108 {offsets = [0, 96], sizes = [16, 32], strides = [1, 1]} : vector<16x128xf32> to vector<16x32xf32>
    %114 = arith.mulf %111, %72 : vector<16x32xf32>
    %115 = arith.mulf %110, %112 : vector<16x32xf32>
    %116 = arith.addf %114, %115 : vector<16x32xf32>
    %117 = math.tanh %116 : vector<16x32xf32>
    %118 = arith.mulf %113, %117 : vector<16x32xf32>
    %119 = arith.negf %103 : vector<16x128xf32>
    %120 = math.exp %119 : vector<16x128xf32>
    %cst_25 = arith.constant 1.000000e+00 : f32
    %121 = vector.broadcast %cst_25 : f32 to vector<16x128xf32>
    %122 = arith.addf %121, %120 : vector<16x128xf32>
    %123 = arith.divf %121, %122 : vector<16x128xf32>
    %124 = math.tanh %103 : vector<16x128xf32>
    %125 = vector.extract_strided_slice %123 {offsets = [0, 0], sizes = [16, 32], strides = [1, 1]} : vector<16x128xf32> to vector<16x32xf32>
    %126 = vector.extract_strided_slice %123 {offsets = [0, 32], sizes = [16, 32], strides = [1, 1]} : vector<16x128xf32> to vector<16x32xf32>
    %127 = vector.extract_strided_slice %124 {offsets = [0, 64], sizes = [16, 32], strides = [1, 1]} : vector<16x128xf32> to vector<16x32xf32>
    %128 = vector.extract_strided_slice %123 {offsets = [0, 96], sizes = [16, 32], strides = [1, 1]} : vector<16x128xf32> to vector<16x32xf32>
    %129 = arith.mulf %126, %87 : vector<16x32xf32>
    %130 = arith.mulf %125, %127 : vector<16x32xf32>
    %131 = arith.addf %129, %130 : vector<16x32xf32>
    %132 = math.tanh %131 : vector<16x32xf32>
    %133 = arith.mulf %128, %132 : vector<16x32xf32>
    %134 = arith.truncf %118 : vector<16x32xf32> to vector<16x32xbf16>
    %c32_26 = arith.constant 32 : index
    %c0_27 = arith.constant 0 : index
    %135 = vector.load %arg5[%c32_26, %c0_27] : memref<128x64xbf16, #tpu.memory_space<vmem>>, vector<16x32xbf16>
    tpu.vector_store %arg5[%c32_26, %c0_27], %134 {strides = array<i32>} : memref<128x64xbf16, #tpu.memory_space<vmem>>, vector<16x32xbf16>,
    %136 = arith.truncf %133 : vector<16x32xf32> to vector<16x32xbf16>
    %c80 = arith.constant 80 : index
    %c32_28 = arith.constant 32 : index
    %137 = vector.load %arg5[%c80, %c32_28] : memref<128x64xbf16, #tpu.memory_space<vmem>>, vector<16x32xbf16>
    tpu.vector_store %arg5[%c80, %c32_28], %136 {strides = array<i32>} : memref<128x64xbf16, #tpu.memory_space<vmem>>, vector<16x32xbf16>,
    %138 = vector.extract_strided_slice %0 {offsets = [32, 0], sizes = [16, 32], strides = [1, 1]} : vector<128x32xbf16> to vector<16x32xbf16>
    %139 = arith.maximumf %95, %138 : vector<16x32xbf16>
    %140 = vector.extract_strided_slice %5 {offsets = [48, 0], sizes = [16, 128], strides = [1, 1]} : vector<128x256xf32> to vector<16x128xf32>
    %141 = arith.truncf %118 : vector<16x32xf32> to vector<16x32xbf16>
    %cst_29 = arith.constant dense<0.000000e+00> : vector<16x128xf32>
    %142 = tpu.matmul %141, %6, %cst_29 {dimension_numbers = #tpu.dot_dimension_numbers<[1], [0], [0], [1], [0, 0, 1, 1], [], []>} : vector<16x32xbf16>, vector<32x128xbf16>, vector<16x128xf32> -> vector<16x128xf32>
    %143 = arith.addf %140, %142 : vector<16x128xf32>
    %144 = vector.extract_strided_slice %5 {offsets = [64, 128], sizes = [16, 128], strides = [1, 1]} : vector<128x256xf32> to vector<16x128xf32>
    %145 = arith.truncf %133 : vector<16x32xf32> to vector<16x32xbf16>
    %cst_30 = arith.constant dense<0.000000e+00> : vector<16x128xf32>
    %146 = tpu.matmul %145, %7, %cst_30 {dimension_numbers = #tpu.dot_dimension_numbers<[1], [0], [0], [1], [0, 0, 1, 1], [], []>} : vector<16x32xbf16>, vector<32x128xbf16>, vector<16x128xf32> -> vector<16x128xf32>
    %147 = arith.addf %144, %146 : vector<16x128xf32>
    %148 = arith.negf %143 : vector<16x128xf32>
    %149 = math.exp %148 : vector<16x128xf32>
    %cst_31 = arith.constant 1.000000e+00 : f32
    %150 = vector.broadcast %cst_31 : f32 to vector<16x128xf32>
    %151 = arith.addf %150, %149 : vector<16x128xf32>
    %152 = arith.divf %150, %151 : vector<16x128xf32>
    %153 = math.tanh %143 : vector<16x128xf32>
    %154 = vector.extract_strided_slice %152 {offsets = [0, 0], sizes = [16, 32], strides = [1, 1]} : vector<16x128xf32> to vector<16x32xf32>
    %155 = vector.extract_strided_slice %152 {offsets = [0, 32], sizes = [16, 32], strides = [1, 1]} : vector<16x128xf32> to vector<16x32xf32>
    %156 = vector.extract_strided_slice %153 {offsets = [0, 64], sizes = [16, 32], strides = [1, 1]} : vector<16x128xf32> to vector<16x32xf32>
    %157 = vector.extract_strided_slice %152 {offsets = [0, 96], sizes = [16, 32], strides = [1, 1]} : vector<16x128xf32> to vector<16x32xf32>
    %158 = arith.mulf %155, %116 : vector<16x32xf32>
    %159 = arith.mulf %154, %156 : vector<16x32xf32>
    %160 = arith.addf %158, %159 : vector<16x32xf32>
    %161 = math.tanh %160 : vector<16x32xf32>
    %162 = arith.mulf %157, %161 : vector<16x32xf32>
    %163 = arith.negf %147 : vector<16x128xf32>
    %164 = math.exp %163 : vector<16x128xf32>
    %cst_32 = arith.constant 1.000000e+00 : f32
    %165 = vector.broadcast %cst_32 : f32 to vector<16x128xf32>
    %166 = arith.addf %165, %164 : vector<16x128xf32>
    %167 = arith.divf %165, %166 : vector<16x128xf32>
    %168 = math.tanh %147 : vector<16x128xf32>
    %169 = vector.extract_strided_slice %167 {offsets = [0, 0], sizes = [16, 32], strides = [1, 1]} : vector<16x128xf32> to vector<16x32xf32>
    %170 = vector.extract_strided_slice %167 {offsets = [0, 32], sizes = [16, 32], strides = [1, 1]} : vector<16x128xf32> to vector<16x32xf32>
    %171 = vector.extract_strided_slice %168 {offsets = [0, 64], sizes = [16, 32], strides = [1, 1]} : vector<16x128xf32> to vector<16x32xf32>
    %172 = vector.extract_strided_slice %167 {offsets = [0, 96], sizes = [16, 32], strides = [1, 1]} : vector<16x128xf32> to vector<16x32xf32>
    %173 = arith.mulf %170, %131 : vector<16x32xf32>
    %174 = arith.mulf %169, %171 : vector<16x32xf32>
    %175 = arith.addf %173, %174 : vector<16x32xf32>
    %176 = math.tanh %175 : vector<16x32xf32>
    %177 = arith.mulf %172, %176 : vector<16x32xf32>
    %178 = arith.truncf %162 : vector<16x32xf32> to vector<16x32xbf16>
    %c48 = arith.constant 48 : index
    %c0_33 = arith.constant 0 : index
    %179 = vector.load %arg5[%c48, %c0_33] : memref<128x64xbf16, #tpu.memory_space<vmem>>, vector<16x32xbf16>
    tpu.vector_store %arg5[%c48, %c0_33], %178 {strides = array<i32>} : memref<128x64xbf16, #tpu.memory_space<vmem>>, vector<16x32xbf16>,
    %180 = arith.truncf %177 : vector<16x32xf32> to vector<16x32xbf16>
    %c64 = arith.constant 64 : index
    %c32_34 = arith.constant 32 : index
    %181 = vector.load %arg5[%c64, %c32_34] : memref<128x64xbf16, #tpu.memory_space<vmem>>, vector<16x32xbf16>
    tpu.vector_store %arg5[%c64, %c32_34], %180 {strides = array<i32>} : memref<128x64xbf16, #tpu.memory_space<vmem>>, vector<16x32xbf16>,
    %182 = vector.extract_strided_slice %0 {offsets = [48, 0], sizes = [16, 32], strides = [1, 1]} : vector<128x32xbf16> to vector<16x32xbf16>
    %183 = arith.maximumf %139, %182 : vector<16x32xbf16>
    %184 = vector.extract_strided_slice %5 {offsets = [64, 0], sizes = [16, 128], strides = [1, 1]} : vector<128x256xf32> to vector<16x128xf32>
    %185 = arith.truncf %162 : vector<16x32xf32> to vector<16x32xbf16>
    %cst_35 = arith.constant dense<0.000000e+00> : vector<16x128xf32>
    %186 = tpu.matmul %185, %6, %cst_35 {dimension_numbers = #tpu.dot_dimension_numbers<[1], [0], [0], [1], [0, 0, 1, 1], [], []>} : vector<16x32xbf16>, vector<32x128xbf16>, vector<16x128xf32> -> vector<16x128xf32>
    %187 = arith.addf %184, %186 : vector<16x128xf32>
    %188 = vector.extract_strided_slice %5 {offsets = [48, 128], sizes = [16, 128], strides = [1, 1]} : vector<128x256xf32> to vector<16x128xf32>
    %189 = arith.truncf %177 : vector<16x32xf32> to vector<16x32xbf16>
    %cst_36 = arith.constant dense<0.000000e+00> : vector<16x128xf32>
    %190 = tpu.matmul %189, %7, %cst_36 {dimension_numbers = #tpu.dot_dimension_numbers<[1], [0], [0], [1], [0, 0, 1, 1], [], []>} : vector<16x32xbf16>, vector<32x128xbf16>, vector<16x128xf32> -> vector<16x128xf32>
    %191 = arith.addf %188, %190 : vector<16x128xf32>
    %192 = arith.negf %187 : vector<16x128xf32>
    %193 = math.exp %192 : vector<16x128xf32>
    %cst_37 = arith.constant 1.000000e+00 : f32
    %194 = vector.broadcast %cst_37 : f32 to vector<16x128xf32>
    %195 = arith.addf %194, %193 : vector<16x128xf32>
    %196 = arith.divf %194, %195 : vector<16x128xf32>
    %197 = math.tanh %187 : vector<16x128xf32>
    %198 = vector.extract_strided_slice %196 {offsets = [0, 0], sizes = [16, 32], strides = [1, 1]} : vector<16x128xf32> to vector<16x32xf32>
    %199 = vector.extract_strided_slice %196 {offsets = [0, 32], sizes = [16, 32], strides = [1, 1]} : vector<16x128xf32> to vector<16x32xf32>
    %200 = vector.extract_strided_slice %197 {offsets = [0, 64], sizes = [16, 32], strides = [1, 1]} : vector<16x128xf32> to vector<16x32xf32>
    %201 = vector.extract_strided_slice %196 {offsets = [0, 96], sizes = [16, 32], strides = [1, 1]} : vector<16x128xf32> to vector<16x32xf32>
    %202 = arith.mulf %199, %160 : vector<16x32xf32>
    %203 = arith.mulf %198, %200 : vector<16x32xf32>
    %204 = arith.addf %202, %203 : vector<16x32xf32>
    %205 = math.tanh %204 : vector<16x32xf32>
    %206 = arith.mulf %201, %205 : vector<16x32xf32>
    %207 = arith.negf %191 : vector<16x128xf32>
    %208 = math.exp %207 : vector<16x128xf32>
    %cst_38 = arith.constant 1.000000e+00 : f32
    %209 = vector.broadcast %cst_38 : f32 to vector<16x128xf32>
    %210 = arith.addf %209, %208 : vector<16x128xf32>
    %211 = arith.divf %209, %210 : vector<16x128xf32>
    %212 = math.tanh %191 : vector<16x128xf32>
    %213 = vector.extract_strided_slice %211 {offsets = [0, 0], sizes = [16, 32], strides = [1, 1]} : vector<16x128xf32> to vector<16x32xf32>
    %214 = vector.extract_strided_slice %211 {offsets = [0, 32], sizes = [16, 32], strides = [1, 1]} : vector<16x128xf32> to vector<16x32xf32>
    %215 = vector.extract_strided_slice %212 {offsets = [0, 64], sizes = [16, 32], strides = [1, 1]} : vector<16x128xf32> to vector<16x32xf32>
    %216 = vector.extract_strided_slice %211 {offsets = [0, 96], sizes = [16, 32], strides = [1, 1]} : vector<16x128xf32> to vector<16x32xf32>
    %217 = arith.mulf %214, %175 : vector<16x32xf32>
    %218 = arith.mulf %213, %215 : vector<16x32xf32>
    %219 = arith.addf %217, %218 : vector<16x32xf32>
    %220 = math.tanh %219 : vector<16x32xf32>
    %221 = arith.mulf %216, %220 : vector<16x32xf32>
    %222 = arith.truncf %206 : vector<16x32xf32> to vector<16x32xbf16>
    %c64_39 = arith.constant 64 : index
    %c0_40 = arith.constant 0 : index
    %223 = vector.load %arg5[%c64_39, %c0_40] : memref<128x64xbf16, #tpu.memory_space<vmem>>, vector<16x32xbf16>
    tpu.vector_store %arg5[%c64_39, %c0_40], %222 {strides = array<i32>} : memref<128x64xbf16, #tpu.memory_space<vmem>>, vector<16x32xbf16>,
    %224 = arith.truncf %221 : vector<16x32xf32> to vector<16x32xbf16>
    %c48_41 = arith.constant 48 : index
    %c32_42 = arith.constant 32 : index
    %225 = vector.load %arg5[%c48_41, %c32_42] : memref<128x64xbf16, #tpu.memory_space<vmem>>, vector<16x32xbf16>
    tpu.vector_store %arg5[%c48_41, %c32_42], %224 {strides = array<i32>} : memref<128x64xbf16, #tpu.memory_space<vmem>>, vector<16x32xbf16>,
    %226 = vector.extract_strided_slice %0 {offsets = [64, 0], sizes = [16, 32], strides = [1, 1]} : vector<128x32xbf16> to vector<16x32xbf16>
    %227 = arith.maximumf %183, %226 : vector<16x32xbf16>
    %228 = vector.extract_strided_slice %5 {offsets = [80, 0], sizes = [16, 128], strides = [1, 1]} : vector<128x256xf32> to vector<16x128xf32>
    %229 = arith.truncf %206 : vector<16x32xf32> to vector<16x32xbf16>
    %cst_43 = arith.constant dense<0.000000e+00> : vector<16x128xf32>
    %230 = tpu.matmul %229, %6, %cst_43 {dimension_numbers = #tpu.dot_dimension_numbers<[1], [0], [0], [1], [0, 0, 1, 1], [], []>} : vector<16x32xbf16>, vector<32x128xbf16>, vector<16x128xf32> -> vector<16x128xf32>
    %231 = arith.addf %228, %230 : vector<16x128xf32>
    %232 = vector.extract_strided_slice %5 {offsets = [32, 128], sizes = [16, 128], strides = [1, 1]} : vector<128x256xf32> to vector<16x128xf32>
    %233 = arith.truncf %221 : vector<16x32xf32> to vector<16x32xbf16>
    %cst_44 = arith.constant dense<0.000000e+00> : vector<16x128xf32>
    %234 = tpu.matmul %233, %7, %cst_44 {dimension_numbers = #tpu.dot_dimension_numbers<[1], [0], [0], [1], [0, 0, 1, 1], [], []>} : vector<16x32xbf16>, vector<32x128xbf16>, vector<16x128xf32> -> vector<16x128xf32>
    %235 = arith.addf %232, %234 : vector<16x128xf32>
    %236 = arith.negf %231 : vector<16x128xf32>
    %237 = math.exp %236 : vector<16x128xf32>
    %cst_45 = arith.constant 1.000000e+00 : f32
    %238 = vector.broadcast %cst_45 : f32 to vector<16x128xf32>
    %239 = arith.addf %238, %237 : vector<16x128xf32>
    %240 = arith.divf %238, %239 : vector<16x128xf32>
    %241 = math.tanh %231 : vector<16x128xf32>
    %242 = vector.extract_strided_slice %240 {offsets = [0, 0], sizes = [16, 32], strides = [1, 1]} : vector<16x128xf32> to vector<16x32xf32>
    %243 = vector.extract_strided_slice %240 {offsets = [0, 32], sizes = [16, 32], strides = [1, 1]} : vector<16x128xf32> to vector<16x32xf32>
    %244 = vector.extract_strided_slice %241 {offsets = [0, 64], sizes = [16, 32], strides = [1, 1]} : vector<16x128xf32> to vector<16x32xf32>
    %245 = vector.extract_strided_slice %240 {offsets = [0, 96], sizes = [16, 32], strides = [1, 1]} : vector<16x128xf32> to vector<16x32xf32>
    %246 = arith.mulf %243, %204 : vector<16x32xf32>
    %247 = arith.mulf %242, %244 : vector<16x32xf32>
    %248 = arith.addf %246, %247 : vector<16x32xf32>
    %249 = math.tanh %248 : vector<16x32xf32>
    %250 = arith.mulf %245, %249 : vector<16x32xf32>
    %251 = arith.negf %235 : vector<16x128xf32>
    %252 = math.exp %251 : vector<16x128xf32>
    %cst_46 = arith.constant 1.000000e+00 : f32
    %253 = vector.broadcast %cst_46 : f32 to vector<16x128xf32>
    %254 = arith.addf %253, %252 : vector<16x128xf32>
    %255 = arith.divf %253, %254 : vector<16x128xf32>
    %256 = math.tanh %235 : vector<16x128xf32>
    %257 = vector.extract_strided_slice %255 {offsets = [0, 0], sizes = [16, 32], strides = [1, 1]} : vector<16x128xf32> to vector<16x32xf32>
    %258 = vector.extract_strided_slice %255 {offsets = [0, 32], sizes = [16, 32], strides = [1, 1]} : vector<16x128xf32> to vector<16x32xf32>
    %259 = vector.extract_strided_slice %256 {offsets = [0, 64], sizes = [16, 32], strides = [1, 1]} : vector<16x128xf32> to vector<16x32xf32>
    %260 = vector.extract_strided_slice %255 {offsets = [0, 96], sizes = [16, 32], strides = [1, 1]} : vector<16x128xf32> to vector<16x32xf32>
    %261 = arith.mulf %258, %219 : vector<16x32xf32>
    %262 = arith.mulf %257, %259 : vector<16x32xf32>
    %263 = arith.addf %261, %262 : vector<16x32xf32>
    %264 = math.tanh %263 : vector<16x32xf32>
    %265 = arith.mulf %260, %264 : vector<16x32xf32>
    %266 = arith.truncf %250 : vector<16x32xf32> to vector<16x32xbf16>
    %c80_47 = arith.constant 80 : index
    %c0_48 = arith.constant 0 : index
    %267 = vector.load %arg5[%c80_47, %c0_48] : memref<128x64xbf16, #tpu.memory_space<vmem>>, vector<16x32xbf16>
    tpu.vector_store %arg5[%c80_47, %c0_48], %266 {strides = array<i32>} : memref<128x64xbf16, #tpu.memory_space<vmem>>, vector<16x32xbf16>,
    %268 = arith.truncf %265 : vector<16x32xf32> to vector<16x32xbf16>
    %c32_49 = arith.constant 32 : index
    %c32_50 = arith.constant 32 : index
    %269 = vector.load %arg5[%c32_49, %c32_50] : memref<128x64xbf16, #tpu.memory_space<vmem>>, vector<16x32xbf16>
    tpu.vector_store %arg5[%c32_49, %c32_50], %268 {strides = array<i32>} : memref<128x64xbf16, #tpu.memory_space<vmem>>, vector<16x32xbf16>,
    %270 = vector.extract_strided_slice %0 {offsets = [80, 0], sizes = [16, 32], strides = [1, 1]} : vector<128x32xbf16> to vector<16x32xbf16>
    %271 = arith.maximumf %227, %270 : vector<16x32xbf16>
    %272 = vector.extract_strided_slice %5 {offsets = [96, 0], sizes = [16, 128], strides = [1, 1]} : vector<128x256xf32> to vector<16x128xf32>
    %273 = arith.truncf %250 : vector<16x32xf32> to vector<16x32xbf16>
    %cst_51 = arith.constant dense<0.000000e+00> : vector<16x128xf32>
    %274 = tpu.matmul %273, %6, %cst_51 {dimension_numbers = #tpu.dot_dimension_numbers<[1], [0], [0], [1], [0, 0, 1, 1], [], []>} : vector<16x32xbf16>, vector<32x128xbf16>, vector<16x128xf32> -> vector<16x128xf32>
    %275 = arith.addf %272, %274 : vector<16x128xf32>
    %276 = vector.extract_strided_slice %5 {offsets = [16, 128], sizes = [16, 128], strides = [1, 1]} : vector<128x256xf32> to vector<16x128xf32>
    %277 = arith.truncf %265 : vector<16x32xf32> to vector<16x32xbf16>
    %cst_52 = arith.constant dense<0.000000e+00> : vector<16x128xf32>
    %278 = tpu.matmul %277, %7, %cst_52 {dimension_numbers = #tpu.dot_dimension_numbers<[1], [0], [0], [1], [0, 0, 1, 1], [], []>} : vector<16x32xbf16>, vector<32x128xbf16>, vector<16x128xf32> -> vector<16x128xf32>
    %279 = arith.addf %276, %278 : vector<16x128xf32>
    %280 = arith.negf %275 : vector<16x128xf32>
    %281 = math.exp %280 : vector<16x128xf32>
    %cst_53 = arith.constant 1.000000e+00 : f32
    %282 = vector.broadcast %cst_53 : f32 to vector<16x128xf32>
    %283 = arith.addf %282, %281 : vector<16x128xf32>
    %284 = arith.divf %282, %283 : vector<16x128xf32>
    %285 = math.tanh %275 : vector<16x128xf32>
    %286 = vector.extract_strided_slice %284 {offsets = [0, 0], sizes = [16, 32], strides = [1, 1]} : vector<16x128xf32> to vector<16x32xf32>
    %287 = vector.extract_strided_slice %284 {offsets = [0, 32], sizes = [16, 32], strides = [1, 1]} : vector<16x128xf32> to vector<16x32xf32>
    %288 = vector.extract_strided_slice %285 {offsets = [0, 64], sizes = [16, 32], strides = [1, 1]} : vector<16x128xf32> to vector<16x32xf32>
    %289 = vector.extract_strided_slice %284 {offsets = [0, 96], sizes = [16, 32], strides = [1, 1]} : vector<16x128xf32> to vector<16x32xf32>
    %290 = arith.mulf %287, %248 : vector<16x32xf32>
    %291 = arith.mulf %286, %288 : vector<16x32xf32>
    %292 = arith.addf %290, %291 : vector<16x32xf32>
    %293 = math.tanh %292 : vector<16x32xf32>
    %294 = arith.mulf %289, %293 : vector<16x32xf32>
    %295 = arith.negf %279 : vector<16x128xf32>
    %296 = math.exp %295 : vector<16x128xf32>
    %cst_54 = arith.constant 1.000000e+00 : f32
    %297 = vector.broadcast %cst_54 : f32 to vector<16x128xf32>
    %298 = arith.addf %297, %296 : vector<16x128xf32>
    %299 = arith.divf %297, %298 : vector<16x128xf32>
    %300 = math.tanh %279 : vector<16x128xf32>
    %301 = vector.extract_strided_slice %299 {offsets = [0, 0], sizes = [16, 32], strides = [1, 1]} : vector<16x128xf32> to vector<16x32xf32>
    %302 = vector.extract_strided_slice %299 {offsets = [0, 32], sizes = [16, 32], strides = [1, 1]} : vector<16x128xf32> to vector<16x32xf32>
    %303 = vector.extract_strided_slice %300 {offsets = [0, 64], sizes = [16, 32], strides = [1, 1]} : vector<16x128xf32> to vector<16x32xf32>
    %304 = vector.extract_strided_slice %299 {offsets = [0, 96], sizes = [16, 32], strides = [1, 1]} : vector<16x128xf32> to vector<16x32xf32>
    %305 = arith.mulf %302, %263 : vector<16x32xf32>
    %306 = arith.mulf %301, %303 : vector<16x32xf32>
    %307 = arith.addf %305, %306 : vector<16x32xf32>
    %308 = math.tanh %307 : vector<16x32xf32>
    %309 = arith.mulf %304, %308 : vector<16x32xf32>
    %310 = arith.truncf %294 : vector<16x32xf32> to vector<16x32xbf16>
    %c96_55 = arith.constant 96 : index
    %c0_56 = arith.constant 0 : index
    %311 = vector.load %arg5[%c96_55, %c0_56] : memref<128x64xbf16, #tpu.memory_space<vmem>>, vector<16x32xbf16>
    tpu.vector_store %arg5[%c96_55, %c0_56], %310 {strides = array<i32>} : memref<128x64xbf16, #tpu.memory_space<vmem>>, vector<16x32xbf16>,
    %312 = arith.truncf %309 : vector<16x32xf32> to vector<16x32xbf16>
    %c16_57 = arith.constant 16 : index
    %c32_58 = arith.constant 32 : index
    %313 = vector.load %arg5[%c16_57, %c32_58] : memref<128x64xbf16, #tpu.memory_space<vmem>>, vector<16x32xbf16>
    tpu.vector_store %arg5[%c16_57, %c32_58], %312 {strides = array<i32>} : memref<128x64xbf16, #tpu.memory_space<vmem>>, vector<16x32xbf16>,
    %314 = vector.extract_strided_slice %0 {offsets = [96, 0], sizes = [16, 32], strides = [1, 1]} : vector<128x32xbf16> to vector<16x32xbf16>
    %315 = arith.maximumf %271, %314 : vector<16x32xbf16>
    %316 = vector.extract_strided_slice %5 {offsets = [112, 0], sizes = [16, 128], strides = [1, 1]} : vector<128x256xf32> to vector<16x128xf32>
    %317 = arith.truncf %294 : vector<16x32xf32> to vector<16x32xbf16>
    %cst_59 = arith.constant dense<0.000000e+00> : vector<16x128xf32>
    %318 = tpu.matmul %317, %6, %cst_59 {dimension_numbers = #tpu.dot_dimension_numbers<[1], [0], [0], [1], [0, 0, 1, 1], [], []>} : vector<16x32xbf16>, vector<32x128xbf16>, vector<16x128xf32> -> vector<16x128xf32>
    %319 = arith.addf %316, %318 : vector<16x128xf32>
    %320 = vector.extract_strided_slice %5 {offsets = [0, 128], sizes = [16, 128], strides = [1, 1]} : vector<128x256xf32> to vector<16x128xf32>
    %321 = arith.truncf %309 : vector<16x32xf32> to vector<16x32xbf16>
    %cst_60 = arith.constant dense<0.000000e+00> : vector<16x128xf32>
    %322 = tpu.matmul %321, %7, %cst_60 {dimension_numbers = #tpu.dot_dimension_numbers<[1], [0], [0], [1], [0, 0, 1, 1], [], []>} : vector<16x32xbf16>, vector<32x128xbf16>, vector<16x128xf32> -> vector<16x128xf32>
    %323 = arith.addf %320, %322 : vector<16x128xf32>
    %324 = arith.negf %319 : vector<16x128xf32>
    %325 = math.exp %324 : vector<16x128xf32>
    %cst_61 = arith.constant 1.000000e+00 : f32
    %326 = vector.broadcast %cst_61 : f32 to vector<16x128xf32>
    %327 = arith.addf %326, %325 : vector<16x128xf32>
    %328 = arith.divf %326, %327 : vector<16x128xf32>
    %329 = math.tanh %319 : vector<16x128xf32>
    %330 = vector.extract_strided_slice %328 {offsets = [0, 0], sizes = [16, 32], strides = [1, 1]} : vector<16x128xf32> to vector<16x32xf32>
    %331 = vector.extract_strided_slice %328 {offsets = [0, 32], sizes = [16, 32], strides = [1, 1]} : vector<16x128xf32> to vector<16x32xf32>
    %332 = vector.extract_strided_slice %329 {offsets = [0, 64], sizes = [16, 32], strides = [1, 1]} : vector<16x128xf32> to vector<16x32xf32>
    %333 = vector.extract_strided_slice %328 {offsets = [0, 96], sizes = [16, 32], strides = [1, 1]} : vector<16x128xf32> to vector<16x32xf32>
    %334 = arith.mulf %331, %292 : vector<16x32xf32>
    %335 = arith.mulf %330, %332 : vector<16x32xf32>
    %336 = arith.addf %334, %335 : vector<16x32xf32>
    %337 = math.tanh %336 : vector<16x32xf32>
    %338 = arith.mulf %333, %337 : vector<16x32xf32>
    %339 = arith.negf %323 : vector<16x128xf32>
    %340 = math.exp %339 : vector<16x128xf32>
    %cst_62 = arith.constant 1.000000e+00 : f32
    %341 = vector.broadcast %cst_62 : f32 to vector<16x128xf32>
    %342 = arith.addf %341, %340 : vector<16x128xf32>
    %343 = arith.divf %341, %342 : vector<16x128xf32>
    %344 = math.tanh %323 : vector<16x128xf32>
    %345 = vector.extract_strided_slice %343 {offsets = [0, 0], sizes = [16, 32], strides = [1, 1]} : vector<16x128xf32> to vector<16x32xf32>
    %346 = vector.extract_strided_slice %343 {offsets = [0, 32], sizes = [16, 32], strides = [1, 1]} : vector<16x128xf32> to vector<16x32xf32>
    %347 = vector.extract_strided_slice %344 {offsets = [0, 64], sizes = [16, 32], strides = [1, 1]} : vector<16x128xf32> to vector<16x32xf32>
    %348 = vector.extract_strided_slice %343 {offsets = [0, 96], sizes = [16, 32], strides = [1, 1]} : vector<16x128xf32> to vector<16x32xf32>
    %349 = arith.mulf %346, %307 : vector<16x32xf32>
    %350 = arith.mulf %345, %347 : vector<16x32xf32>
    %351 = arith.addf %349, %350 : vector<16x32xf32>
    %352 = math.tanh %351 : vector<16x32xf32>
    %353 = arith.mulf %348, %352 : vector<16x32xf32>
    %354 = arith.truncf %338 : vector<16x32xf32> to vector<16x32xbf16>
    %c112_63 = arith.constant 112 : index
    %c0_64 = arith.constant 0 : index
    %355 = vector.load %arg5[%c112_63, %c0_64] : memref<128x64xbf16, #tpu.memory_space<vmem>>, vector<16x32xbf16>
    tpu.vector_store %arg5[%c112_63, %c0_64], %354 {strides = array<i32>} : memref<128x64xbf16, #tpu.memory_space<vmem>>, vector<16x32xbf16>,
    %356 = arith.truncf %353 : vector<16x32xf32> to vector<16x32xbf16>
    %c0_65 = arith.constant 0 : index
    %c32_66 = arith.constant 32 : index
    %357 = vector.load %arg5[%c0_65, %c32_66] : memref<128x64xbf16, #tpu.memory_space<vmem>>, vector<16x32xbf16>
    tpu.vector_store %arg5[%c0_65, %c32_66], %356 {strides = array<i32>} : memref<128x64xbf16, #tpu.memory_space<vmem>>, vector<16x32xbf16>,
    %358 = vector.extract_strided_slice %0 {offsets = [112, 0], sizes = [16, 32], strides = [1, 1]} : vector<128x32xbf16> to vector<16x32xbf16>
    %359 = arith.maximumf %315, %358 : vector<16x32xbf16>
    %360 = arith.extf %359 : vector<16x32xbf16> to vector<16x32xf32>
    %cst_67 = arith.constant 0.000000e+00 : f32
    %361 = vector.broadcast %cst_67 : f32 to vector<16x32xf32>
    %362 = arith.maximumf %360, %361 : vector<16x32xf32>
    %c0_68 = arith.constant 0 : index
    %c0_69 = arith.constant 0 : index
    %363 = vector.load %arg6[%c0_68, %c0_69] : memref<16x32xf32, #tpu.memory_space<vmem>>, vector<16x32xf32>
    tpu.vector_store %arg6[%c0_68, %c0_69], %362 {strides = array<i32>} : memref<16x32xf32, #tpu.memory_space<vmem>>, vector<16x32xf32>,
    return
  }
}

</mosaic_0001>

<bundles_post_ra>
// kernel: tpu_custom_call.1
= control target key start
LH: loop header
LB: loop body
LE: loop exit
PB: predicated region body
PF: predicated region fallthrough
CT: control target
= control target key end

     0   :  { %s3417_s0 = inlined_call_operand.vmem [shape: bf16[128,32], index: 0, kind: input, shape index: {}]   ;;  %s3418_s1 = inlined_call_operand.vmem [shape: bf16[32,256], index: 1, kind: input, shape index: {}]   ;;  %s3419_s2 = inlined_call_operand.vmem [shape: bf16[32,128], index: 2, kind: input, shape index: {}]   ;;  %s3420_s3 = inlined_call_operand.vmem [shape: bf16[32,128], index: 3, kind: input, shape index: {}]   ;;  %s3421_s4 = inlined_call_operand.vmem [shape: f32[1,256], index: 4, kind: input, shape index: {}]   ;;  %s3422_s5 = inlined_call_operand.vmem [shape: bf16[128,64], index: 5, kind: output, shape index: {0}]   ;;  %s3423_s6 = inlined_call_operand.hbm [shape: f32[16,32], index: 6, kind: output, shape index: {1}]  }
   0x1   :  { %v2234_v0 = vld [vmem:[%s3418_s1 + $0x14] sm:$0xf]  ;;  %v2142_v1 = vld [vmem:[%s3418_s1 + $0x18] sm:$0xf0]  ;;  %v2582_v2 = vld [vmem:[%s3419_s2 + $0x8] sm:$0xff] }
   0x2   :  { %v2145_v3 = vor.u32 %v2234_v0, %v2142_v1  ;;  %v2140_v4 = vld [vmem:[%s3418_s1 + $0x10] sm:$0xf]  ;;  %v2235_v5 = vld [vmem:[%s3418_s1 + $0x14] sm:$0xf0]  ;;  %v2232_v6 = vld [vmem:[%s3418_s1 + $0x4] sm:$0xf]  ;;  %262 = vmatpush.bf16.msra.mxu2 %v2582_v2 }
   0x3   :  { %v2141_v7 = vor.u32 %v2235_v5, %v2140_v4  ;;  %v2134_v8 = vld [vmem:[%s3418_s1 + $0x8] sm:$0xf0]  ;;  %v2600_v9 = vld [vmem:[%s3419_s2] sm:$0xff]  ;;  %v2233_v12 = vld [vmem:[%s3418_s1 + $0x4] sm:$0xf0] }
   0x4   :  { %190 = vmatpush.bf16.msra.mxu1 %v2145_v3  ;;  %v2137_v10 = vor.u32 %v2232_v6, %v2134_v8  ;;  %v2132_v11 = vld [vmem:[%s3418_s1] sm:$0xf] }
   0x5   :  { %141 = vmatpush.bf16.msra.mxu0 %v2141_v7  ;;  %v2133_v13 = vor.u32 %v2233_v12, %v2132_v11 }
   0x6   :  { %12 = vsyncpa [#allocation3], 0  ;;  %263 = vmatpush.bf16.msra.mxu2 %v2600_v9  ;;  %v2224_v14 = vld [vmem:[%s3417_s0] sm:$0xff]  ;;  %vm110_vm0 = vcmask 261120   ;;  %v2532_v15 = vmov 0   ;;  %v2225_v16 = vld [vmem:[%s3417_s0 + $0x8] sm:$0xff] }
   0x7   :  { %v2226_v17 = vld [vmem:[%s3417_s0 + $0x10] sm:$0xff]  ;;  %v2227_v18 = vld [vmem:[%s3417_s0 + $0x18] sm:$0xff]  ;;  %v2635_v19 = vld [vmem:[%s3420_s3 + $0x8] sm:$0xff]  ;;  %s2533_s14 = smov 64   ;;  %s2535_s17 = smov [#allocation2]  }
   0x8   :  { %191 = vmatpush.bf16.msra.mxu1 %v2137_v10  ;;  %290 = vmatpush.bf16.msra.mxu3 %v2635_v19  ;;  %v2228_v20 = vld [vmem:[%s3417_s0 + $0x20] sm:$0xff]  ;;  %v2229_v22 = vld [vmem:[%s3417_s0 + $0x28] sm:$0xff]  ;;  %v2230_v23 = vld [vmem:[%s3417_s0 + $0x30] sm:$0xff]  ;;  %s2082_s18 = sshll.u32 %s2535_s17, 4  ;;  %s2084_s20 = sshll.u32 %s3423_s6, 4  ;;  %s2083_s18 = int_to_ptr.vmem [resolvable:$true] %s2082_s18  ;;  %s2085_s20 = int_to_ptr.hbm [resolvable:$true] %s2084_s20 }
   0x9   :  { %142 = vmatpush.bf16.msra.mxu0 %v2133_v13  ;;  %264 = vmatmul.bf16.vlgmr.msra.gmra.mxu2 %v2532_v15  ;;  %v2645_v21 = vld [vmem:[%s3420_s3] sm:$0xff]  ;;  %v2231_v24 = vld [vmem:[%s3417_s0 + $0x38] sm:$0xff] }
   0xa   :  { %488 = vmatpush.bf16.msrb.mxu2 %v2582_v2  ;;  %v44_v25 = vld [vmem:[%s3421_s4] sm:$0x3]  ;;  %s2534_s4 = smov 32  }
   0xb   :  { %2154 = vmatmul.msk.bf16.vlgmr.msra.gmra.mxu1 %vm110_vm0, %v2224_v14  ;;  %v2672_v26 = vperm.slane %v44_v25, 0  ;;  %v2706_v59 = vperm.slane %v44_v25, 1 }
   0xc   :  { %2146 = vmatmul.msk.bf16.vlgmr.msra.gmra.mxu0 %vm110_vm0, %v2224_v14  ;;  %291 = vmatpush.bf16.msra.mxu3 %v2645_v21 }
   0xe   :  { %489 = vmatpush.bf16.msrb.mxu2 %v2600_v9 }
   0xf   :  { %292 = vmatmul.bf16.vlgmr.msra.gmra.mxu3 %v2532_v15 }
  0x10   :  { %512 = vmatpush.bf16.msrb.mxu3 %v2635_v19 }
  0x12   :  { %716 = vmatpush.bf16.msra.mxu2 %v2582_v2 }
  0x14   :  { %513 = vmatpush.bf16.msrb.mxu3 %v2645_v21 }
  0x16   :  { %717 = vmatpush.bf16.msra.mxu2 %v2600_v9 }
  0x18   :  { %740 = vmatpush.bf16.msra.mxu3 %v2635_v19 }
  0x1b   :  { %2155 = vmatmul.msk.bf16.gmra.mxu1 %vm110_vm0, %v2225_v16 }
  0x1c   :  { %2147 = vmatmul.msk.bf16.gmra.mxu0 %vm110_vm0, %v2225_v16  ;;  %741 = vmatpush.bf16.msra.mxu3 %v2645_v21 }
  0x2b   :  { %2156 = vmatmul.msk.bf16.gmra.mxu1 %vm110_vm0, %v2226_v17 }
  0x2c   :  { %2148 = vmatmul.msk.bf16.gmra.mxu0 %vm110_vm0, %v2226_v17 }
  0x3b   :  { %2157 = vmatmul.msk.bf16.gmra.mxu1 %vm110_vm0, %v2227_v18 }
  0x3c   :  { %2149 = vmatmul.msk.bf16.gmra.mxu0 %vm110_vm0, %v2227_v18 }
  0x4b   :  { %2158 = vmatmul.msk.bf16.gmra.mxu1 %vm110_vm0, %v2228_v20 }
  0x4c   :  { %2150 = vmatmul.msk.bf16.gmra.mxu0 %vm110_vm0, %v2228_v20 }
  0x5b   :  { %2159 = vmatmul.msk.bf16.gmra.mxu1 %vm110_vm0, %v2229_v22 }
  0x5c   :  { %2151 = vmatmul.msk.bf16.gmra.mxu0 %vm110_vm0, %v2229_v22 }
  0x6b   :  { %2160 = vmatmul.msk.bf16.gmra.mxu1 %vm110_vm0, %v2230_v23 }
  0x6c   :  { %2152 = vmatmul.msk.bf16.gmra.mxu0 %vm110_vm0, %v2230_v23 }
  0x7b   :  { %2161 = vmatmul.msk.bf16.gmra.mxu1 %vm110_vm0, %v2231_v24 }
  0x7c   :  { %2153 = vmatmul.msk.bf16.gmra.mxu0 %vm110_vm0, %v2231_v24 }
  0x88   :  { %v2674_v27 = vpop.f32.mrf.mxu1 }
  0x89   :  { %v144_v28 = vpop.f32.mrf.mxu0 }
  0x8a   :  { %v145_v29 = vadd.f32 %v144_v28, %v2672_v26 }
  0x8c   :  { %v265_v30 = vpop.f32.mrf.mxu2 }
  0x8d   :  { %v270_v31 = vadd.f32 %v265_v30, %v145_v29 }
  0x8f   :  { %2246 = vtanh.f32 %v270_v31  ;;  %v2178_v48 = vmul.f32 -1.442695, %v270_v31 }
  0x90   :  { %v2677_v32 = vpop.f32.mrf.mxu1 }
  0x91   :  { %v146_v33 = vpop.f32.mrf.mxu0 }
  0x92   :  { %v147_v34 = vadd.f32 %v146_v33, %v2672_v26  ;;  %v293_v60 = vpop.f32.mrf.mxu3 }
  0x94   :  { %v267_v35 = vpop.f32.mrf.mxu2 }
  0x95   :  { %v2247_v36 = vpop.eup %2246  ;;  %v271_v37 = vadd.f32 %v267_v35, %v147_v34 }
  0x96   :  { %344 = vrot.lane.b32.xlu0 %v2247_v36, %s2533_s14 }
  0x97   :  { %2248 = vtanh.f32 %v271_v37  ;;  %v2179_v50 = vmul.f32 -1.442695, %v271_v37 }
  0x98   :  { %v2681_v38 = vpop.f32.mrf.mxu1  ;;  %2250 = vpow2.f32 %v2178_v48 }
  0x99   :  { %2252 = vpow2.f32 %v2179_v50 }
  0x9a   :  { %v295_v12 = vpop.f32.mrf.mxu3 }
  0x9d   :  { %v2249_v39 = vpop.eup %2248 }
  0x9e   :  { %346 = vrot.lane.b32.xlu0 %v2249_v39, %s2533_s14  ;;  %v2251_v51 = vpop.eup %2250 }
  0x9f   :  { %v306_v52 = vadd.f32 1.0, %v2251_v51  ;;  %v2253_v54 = vpop.eup %2252 }
  0xa0   :  { %v2684_v40 = vpop.f32.mrf.mxu1  ;;  %v307_v55 = vadd.f32 1.0, %v2253_v54 }
  0xa1   :  { %2254 = vrcp.f32 %v306_v52  ;;  %vm313_vm1 = vweird.f32 %v306_v52  ;;  %v319_v5 = vand.u32 2147483648, %v306_v52  ;;  %v317_v8 = vand.u32 2147483647, %v306_v52 }
  0xa2   :  { %2256 = vrcp.f32 %v307_v55  ;;  %vm328_vm5 = vweird.f32 %v307_v55  ;;  %v334_v20 = vand.u32 2147483648, %v307_v55  ;;  %v332_v23 = vand.u32 2147483647, %v307_v55 }
  0xa3   :  { %v320_v15 = vor.u32 1.1754944e-38, %v319_v5  ;;  %vm318_vm4 = vcmp.eq.f32.partialorder %v317_v8, 8.507059e+37 }
  0xa4   :  { %v335_v29 = vor.u32 1.1754944e-38, %v334_v20  ;;  %vm333_vm8 = vcmp.eq.f32.partialorder %v332_v23, 8.507059e+37 }
  0xa7   :  { %v2255_v57 = vpop.eup %2254 }
  0xa8   :  { %v2686_v41 = vpop.f32.mrf.mxu1  ;;  %v309_v58 = vmul.f32 %v2255_v57, %v306_v52  ;;  %v2257_v63 = vpop.eup %2256  ;;  %vm314_vm2 = vweird.f32 %v2255_v57 }
  0xa9   :  { %v324_v4 = vmul.f32 %v2257_v63, %v307_v55  ;;  %vm315_vm3 = vmor %vm313_vm1, %vm314_vm2  ;;  %vm329_vm6 = vweird.f32 %v2257_v63 }
  0xaa   :  { %v310_v62 = vsub.f32 1.0, %v309_v58  ;;  %vm330_vm7 = vmor %vm328_vm5, %vm329_vm6 }
  0xab   :  { %v325_v10 = vsub.f32 1.0, %v324_v4 }
  0xac   :  { %v311_v3 = vmul.f32 %v2255_v57, %v310_v62 }
  0xad   :  { %v326_v17 = vmul.f32 %v2257_v63, %v325_v10 }
  0xae   :  { %v312_v7 = vadd.f32 %v2255_v57, %v311_v3 }
  0xaf   :  { %v327_v22 = vadd.f32 %v2257_v63, %v326_v17 }
  0xb0   :  { %v2688_v42 = vpop.f32.mrf.mxu1  ;;  %v316_v16 = vsel %vm315_vm3, %v2255_v57, %v312_v7 }
  0xb1   :  { %v2711_v18 = vsel %vm318_vm4, %v320_v15, %v316_v16  ;;  %v331_v30 = vsel %vm330_vm7, %v2257_v63, %v327_v22 }
  0xb2   :  { %v2716_v31 = vsel %vm333_vm8, %v335_v29, %v331_v30  ;;  %v340_v54 = vmul.f32 0.0, %v2711_v18 }
  0xb3   :  { %v341_v8 = vmul.f32 0.0, %v2716_v31 }
  0xb8   :  { %v2690_v43 = vpop.f32.mrf.mxu1 }
  0xc0   :  { %v2692_v44 = vpop.f32.mrf.mxu1 }
  0xc8   :  { %v2694_v45 = vpop.f32.mrf.mxu1 }
  0xd0   :  { %v2696_v46 = vpop.f32.mrf.mxu1 }
  0xd8   :  { %v2698_v47 = vpop.f32.mrf.mxu1 }
  0xe0   :  { %v2700_v49 = vpop.f32.mrf.mxu1 }
  0xe8   :  { %v2702_v53 = vpop.f32.mrf.mxu1 }
  0xf0   :  { %v2704_v56 = vpop.f32.mrf.mxu1 }
  0xf8   :  { %v228_v61 = vpop.f32.mrf.mxu1 }
  0xf9   :  { %v229_v0 = vadd.f32 %v228_v61, %v2706_v59 }
  0xfb   :  { %v298_v1 = vadd.f32 %v293_v60, %v229_v0 }
  0xfd   :  { %2258 = vtanh.f32 %v298_v1  ;;  %v2180_v35 = vmul.f32 -1.442695, %v298_v1 }
 0x100   :  { %v230_v6 = vpop.f32.mrf.mxu1 }
 0x101   :  { %v231_v11 = vadd.f32 %v230_v6, %v2706_v59 }
 0x103   :  { %v2259_v13 = vpop.eup %2258  ;;  %v299_v14 = vadd.f32 %v295_v12, %v231_v11 }
 0x104   :  { %418 = vrot.lane.b32.xlu1 %v2259_v13, %s2533_s14 }
 0x105   :  { %2260 = vtanh.f32 %v299_v14  ;;  %v2181_v36 = vmul.f32 -1.442695, %v299_v14 }
 0x106   :  { %2262 = vpow2.f32 %v2180_v35 }
 0x107   :  { %2264 = vpow2.f32 %v2181_v36 }
 0x108   :  { %v345_v24 = vpop.permute.xlu0 %344 }
 0x109   :  { %v350_v25 = vmul.f32 %v345_v24, %v2711_v18 }
 0x10b   :  { %v2261_v28 = vpop.eup %2260  ;;  %354 = vrot.lane.b32.xlu2 %v350_v25, %s2534_s4 }
 0x10c   :  { %420 = vrot.lane.b32.xlu1 %v2261_v28, %s2533_s14  ;;  %v2263_v37 = vpop.eup %2262 }
 0x10d   :  { %v380_v39 = vadd.f32 1.0, %v2263_v37  ;;  %v2265_v48 = vpop.eup %2264 }
 0x10e   :  { %v381_v50 = vadd.f32 1.0, %v2265_v48 }
 0x10f   :  { %2266 = vrcp.f32 %v380_v39  ;;  %v393_v3 = vand.u32 2147483648, %v380_v39  ;;  %vm387_vm10 = vweird.f32 %v380_v39  ;;  %v391_v4 = vand.u32 2147483647, %v380_v39 }
 0x110   :  { %v347_v33 = vpop.permute.xlu0 %346  ;;  %2268 = vrcp.f32 %v381_v50  ;;  %v408_v16 = vand.u32 2147483648, %v381_v50  ;;  %vm402_vm14 = vweird.f32 %v381_v50  ;;  %v406_v17 = vand.u32 2147483647, %v381_v50 }
 0x111   :  { %v351_v34 = vmul.f32 %v347_v33, %v2716_v31  ;;  %v394_v10 = vor.u32 1.1754944e-38, %v393_v3  ;;  %vm392_vm12 = vcmp.eq.f32.partialorder %v391_v4, 8.507059e+37 }
 0x112   :  { %v409_v22 = vor.u32 1.1754944e-38, %v408_v16  ;;  %vm407_vm1 = vcmp.eq.f32.partialorder %v406_v17, 8.507059e+37 }
 0x113   :  { %356 = vrot.lane.b32.xlu2 %v351_v34, %s2534_s4 }
 0x115   :  { %v2267_v51 = vpop.eup %2266 }
 0x116   :  { %v383_v52 = vmul.f32 %v2267_v51, %v380_v39  ;;  %v2269_v60 = vpop.eup %2268  ;;  %vm388_vm9 = vweird.f32 %v2267_v51 }
 0x117   :  { %v398_v62 = vmul.f32 %v2269_v60, %v381_v50  ;;  %vm389_vm11 = vmor %vm387_vm10, %vm388_vm9  ;;  %vm403_vm13 = vweird.f32 %v2269_v60 }
 0x118   :  { %v384_v58 = vsub.f32 1.0, %v383_v52  ;;  %vm404_vm15 = vmor %vm402_vm14, %vm403_vm13 }
 0x119   :  { %v399_v1 = vsub.f32 1.0, %v398_v62 }
 0x11a   :  { %v385_v61 = vmul.f32 %v2267_v51, %v384_v58 }
 0x11b   :  { %v400_v7 = vmul.f32 %v2269_v60, %v399_v1 }
 0x11c   :  { %v386_v0 = vadd.f32 %v2267_v51, %v385_v61 }
 0x11d   :  { %v401_v15 = vadd.f32 %v2269_v60, %v400_v7 }
 0x11e   :  { %v390_v6 = vsel %vm389_vm11, %v2267_v51, %v386_v0 }
 0x11f   :  { %v395_v13 = vsel %vm392_vm12, %v394_v10, %v390_v6  ;;  %v405_v20 = vsel %vm404_vm15, %v2269_v60, %v401_v15 }
 0x120   :  { %v410_v23 = vsel %vm407_vm1, %v409_v22, %v405_v20  ;;  %v414_v29 = vmul.f32 0.0, %v395_v13 }
 0x121   :  { %v415_v36 = vmul.f32 0.0, %v410_v23 }
 0x165   :  { %v355_v55 = vpop.permute.xlu2 %354 }
 0x166   :  { %v2721_v57 = vadd.f32 %v355_v55, %v340_v54 }
 0x168   :  { %2270 = vtanh.f32 %v2721_v57 }
 0x16d   :  { %v357_v5 = vpop.permute.xlu2 %356 }
 0x16e   :  { %v2271_v63 = vpop.eup %2270  ;;  %v2726_v11 = vadd.f32 %v357_v5, %v341_v8  ;;  %v149_v8 = vpop.f32.mrf.mxu0 }
 0x16f   :  { %366 = vrot.lane.b32.xlu2 %v2271_v63, %s2533_s14  ;;  %v150_v10 = vadd.f32 %v149_v8, %v2672_v26 }
 0x170   :  { %2272 = vtanh.f32 %v2726_v11 }
 0x176   :  { %v419_v12 = vpop.permute.xlu1 %418  ;;  %v2273_v28 = vpop.eup %2272 }
 0x177   :  { %v424_v14 = vmul.f32 %v419_v12, %v395_v13 }
 0x179   :  { %428 = vrot.lane.b32.xlu0 %v424_v14, %s2534_s4  ;;  %v151_v14 = vpop.f32.mrf.mxu0 }
 0x17a   :  { %v152_v15 = vadd.f32 %v151_v14, %v2672_v26 }
 0x17e   :  { %v421_v24 = vpop.permute.xlu1 %420 }
 0x17f   :  { %v425_v25 = vmul.f32 %v421_v24, %v410_v23 }
 0x181   :  { %430 = vrot.lane.b32.xlu1 %v425_v25, %s2534_s4  ;;  %368 = vrot.lane.b32.xlu0 %v2273_v28, %s2533_s14 }
 0x1c9   :  { %v367_v34 = vpop.permute.xlu2 %366 }
 0x1ca   :  { %v372_v35 = vmul.f32 %v367_v34, %v2711_v18 }
 0x1cc   :  { %v2736_v50 = vpack.c.bf16 %v372_v35, %v372_v35 }
 0x1ce   :  { %v474_v55 = vunpack.c.l.b16 %v2736_v50 }
 0x1eb   :  { %v429_v30 = vpop.permute.xlu0 %428 }
 0x1ec   :  { %v2732_v33 = vadd.f32 %v429_v30, %v414_v29 }
 0x1ee   :  { %2274 = vtanh.f32 %v2732_v33 }
 0x1f3   :  { %v431_v37 = vpop.permute.xlu1 %430  ;;  %v369_v39 = vpop.permute.xlu0 %368 }
 0x1f4   :  { %v2275_v48 = vpop.eup %2274  ;;  %v2738_v51 = vadd.f32 %v431_v37, %v415_v36  ;;  %v373_v52 = vmul.f32 %v369_v39, %v2716_v31 }
 0x1f5   :  { %440 = vrot.lane.b32.xlu1 %v2275_v48, %s2533_s14 }
 0x1f6   :  { %2276 = vtanh.f32 %v2738_v51  ;;  %v2743_v54 = vpack.c.bf16 %v373_v52, %v373_v52 }
 0x1f8   :  { %v475_v18 = vunpack.c.l.b16 %v2743_v54 }
 0x1fa   :  { %v476_v58 = vpack.c.b16 %v475_v18, %v474_v55 }
 0x1fc   :  { %v2277_v60 = vpop.eup %2276  ;;  %477 = vrot.lane.b32.xlu0 %v476_v58, %s2534_s4 }
 0x1fd   :  { %442 = vrot.lane.b32.xlu2 %v2277_v60, %s2533_s14 }
 0x257   :  { %v443_v61 = vpop.permute.xlu2 %442 }
 0x258   :  { %v447_v62 = vmul.f32 %v443_v61, %v410_v23 }
 0x25a   :  { %v2749_v31 = vpack.c.bf16 %v447_v62, %v447_v62 }
 0x25c   :  { %v499_v3 = vunpack.c.l.b16 %v2749_v31 }
 0x267   :  { %v441_v63 = vpop.permute.xlu1 %440 }
 0x268   :  { %v446_v0 = vmul.f32 %v441_v63, %v395_v13 }
 0x26a   :  { %v2751_v1 = vpack.c.bf16 %v446_v0, %v446_v0  ;;  %v224_v0 = vadd.f32 %v2702_v53, %v2706_v59 }
 0x26c   :  { %v498_v4 = vunpack.c.l.b16 %v2751_v1 }
 0x26e   :  { %v478_v5 = vpop.permute.xlu0 %477  ;;  %v500_v6 = vpack.c.b16 %v499_v3, %v498_v4 }
 0x26f   :  { %2182 = vmatmul.msk.bf16.vlgmr.msrb.gmra.mxu2 %vm110_vm0, %v478_v5 }
 0x270   :  { %501 = vrot.lane.b32.xlu1 %v500_v6, %s2534_s4  ;;  %944 = vmatpush.bf16.msrb.mxu2 %v2582_v2 }
 0x274   :  { %945 = vmatpush.bf16.msrb.mxu2 %v2600_v9 }
 0x2e2   :  { %v502_v7 = vpop.permute.xlu1 %501 }
 0x2e3   :  { %2183 = vmatmul.msk.bf16.vlgmr.msrb.gmra.mxu3 %vm110_vm0, %v502_v7  ;;  %v226_v7 = vadd.f32 %v2704_v56, %v2706_v59 }
 0x2e4   :  { %968 = vmatpush.bf16.msrb.mxu3 %v2635_v19 }
 0x2e8   :  { %969 = vmatpush.bf16.msrb.mxu3 %v2645_v21 }
 0x2f2   :  { %v491_v12 = vpop.f32.mrf.mxu2 }
 0x2f3   :  { %v496_v13 = vadd.f32 %v491_v12, %v150_v10 }
 0x2f5   :  { %2278 = vtanh.f32 %v496_v13  ;;  %v2184_v23 = vmul.f32 -1.442695, %v496_v13 }
 0x2fa   :  { %v493_v16 = vpop.f32.mrf.mxu2 }
 0x2fb   :  { %v2279_v17 = vpop.eup %2278  ;;  %v497_v20 = vadd.f32 %v493_v16, %v152_v15 }
 0x2fc   :  { %566 = vrot.lane.b32.xlu2 %v2279_v17, %s2533_s14 }
 0x2fd   :  { %2280 = vtanh.f32 %v497_v20  ;;  %v2185_v34 = vmul.f32 -1.442695, %v497_v20 }
 0x2fe   :  { %2282 = vpow2.f32 %v2184_v23 }
 0x303   :  { %v2281_v22 = vpop.eup %2280 }
 0x304   :  { %568 = vrot.lane.b32.xlu0 %v2281_v22, %s2533_s14  ;;  %v2283_v24 = vpop.eup %2282 }
 0x305   :  { %v528_v25 = vadd.f32 1.0, %v2283_v24 }
 0x307   :  { %2284 = vrcp.f32 %v528_v25  ;;  %v541_v37 = vand.u32 2147483648, %v528_v25  ;;  %vm535_vm3 = vweird.f32 %v528_v25  ;;  %v539_v39 = vand.u32 2147483647, %v528_v25 }
 0x308   :  { %2286 = vpow2.f32 %v2185_v34 }
 0x309   :  { %v542_v55 = vor.u32 1.1754944e-38, %v541_v37  ;;  %vm540_vm5 = vcmp.eq.f32.partialorder %v539_v39, 8.507059e+37 }
 0x30d   :  { %v2285_v28 = vpop.eup %2284 }
 0x30e   :  { %v531_v29 = vmul.f32 %v2285_v28, %v528_v25  ;;  %vm536_vm2 = vweird.f32 %v2285_v28  ;;  %v2287_v48 = vpop.eup %2286 }
 0x30f   :  { %vm537_vm4 = vmor %vm535_vm3, %vm536_vm2  ;;  %v529_v18 = vadd.f32 1.0, %v2287_v48 }
 0x310   :  { %v532_v30 = vsub.f32 1.0, %v531_v29 }
 0x311   :  { %2288 = vrcp.f32 %v529_v18  ;;  %v556_v14 = vand.u32 2147483648, %v529_v18  ;;  %vm550_vm7 = vweird.f32 %v529_v18  ;;  %v554_v15 = vand.u32 2147483647, %v529_v18 }
 0x312   :  { %v533_v35 = vmul.f32 %v2285_v28, %v532_v30 }
 0x313   :  { %v557_v16 = vor.u32 1.1754944e-38, %v556_v14  ;;  %vm555_vm9 = vcmp.eq.f32.partialorder %v554_v15, 8.507059e+37 }
 0x314   :  { %v534_v36 = vadd.f32 %v2285_v28, %v533_v35 }
 0x316   :  { %v538_v52 = vsel %vm537_vm4, %v2285_v28, %v534_v36 }
 0x317   :  { %v2766_v58 = vsel %vm540_vm5, %v542_v55, %v538_v52  ;;  %v2289_v62 = vpop.eup %2288 }
 0x318   :  { %v546_v63 = vmul.f32 %v2289_v62, %v529_v18  ;;  %vm551_vm6 = vweird.f32 %v2289_v62  ;;  %v562_v39 = vmul.f32 %v2766_v58, %v2721_v57 }
 0x319   :  { %vm552_vm8 = vmor %vm550_vm7, %vm551_vm6 }
 0x31a   :  { %v547_v5 = vsub.f32 1.0, %v546_v63 }
 0x31c   :  { %v548_v6 = vmul.f32 %v2289_v62, %v547_v5 }
 0x31e   :  { %v549_v13 = vadd.f32 %v2289_v62, %v548_v6 }
 0x320   :  { %v553_v53 = vsel %vm552_vm8, %v2289_v62, %v549_v13 }
 0x321   :  { %v2775_v20 = vsel %vm555_vm9, %v557_v16, %v553_v53 }
 0x356   :  { %v567_v60 = vpop.permute.xlu2 %566 }
 0x357   :  { %v572_v61 = vmul.f32 %v567_v60, %v2766_v58 }
 0x359   :  { %576 = vrot.lane.b32.xlu0 %v572_v61, %s2534_s4 }
 0x366   :  { %v515_v3 = vpop.f32.mrf.mxu3 }
 0x367   :  { %v520_v4 = vadd.f32 %v515_v3, %v224_v0 }
 0x369   :  { %2290 = vtanh.f32 %v520_v4  ;;  %v2186_v28 = vmul.f32 -1.442695, %v520_v4 }
 0x36e   :  { %v517_v8 = vpop.f32.mrf.mxu3 }
 0x36f   :  { %v2291_v10 = vpop.eup %2290  ;;  %v521_v12 = vadd.f32 %v517_v8, %v226_v7 }
 0x370   :  { %640 = vrot.lane.b32.xlu1 %v2291_v10, %s2533_s14 }
 0x371   :  { %2292 = vtanh.f32 %v521_v12  ;;  %v2187_v23 = vmul.f32 -1.442695, %v521_v12 }
 0x373   :  { %2294 = vpow2.f32 %v2187_v23 }
 0x376   :  { %v569_v17 = vpop.permute.xlu0 %568 }
 0x377   :  { %v2293_v22 = vpop.eup %2292  ;;  %v573_v56 = vmul.f32 %v569_v17, %v2775_v20  ;;  %v563_v17 = vmul.f32 %v2775_v20, %v2726_v11 }
 0x378   :  { %642 = vrot.lane.b32.xlu2 %v2293_v22, %s2533_s14 }
 0x379   :  { %578 = vrot.lane.b32.xlu1 %v573_v56, %s2534_s4  ;;  %v2295_v24 = vpop.eup %2294 }
 0x37a   :  { %v603_v25 = vadd.f32 1.0, %v2295_v24 }
 0x37c   :  { %2296 = vrcp.f32 %v603_v25  ;;  %v630_v60 = vand.u32 2147483648, %v603_v25  ;;  %vm624_vm11 = vweird.f32 %v603_v25  ;;  %v628_v61 = vand.u32 2147483647, %v603_v25 }
 0x37d   :  { %2298 = vpow2.f32 %v2186_v28 }
 0x37e   :  { %v631_v0 = vor.u32 1.1754944e-38, %v630_v60  ;;  %vm629_vm13 = vcmp.eq.f32.partialorder %v628_v61, 8.507059e+37 }
 0x382   :  { %v2297_v29 = vpop.eup %2296 }
 0x383   :  { %v2299_v30 = vpop.eup %2298  ;;  %v620_v34 = vmul.f32 %v2297_v29, %v603_v25  ;;  %vm625_vm10 = vweird.f32 %v2297_v29 }
 0x384   :  { %v602_v35 = vadd.f32 1.0, %v2299_v30  ;;  %vm626_vm12 = vmor %vm624_vm11, %vm625_vm10 }
 0x385   :  { %v621_v36 = vsub.f32 1.0, %v620_v34 }
 0x386   :  { %2300 = vrcp.f32 %v602_v35  ;;  %v615_v10 = vand.u32 2147483648, %v602_v35  ;;  %vm609_vm15 = vweird.f32 %v602_v35  ;;  %v613_v12 = vand.u32 2147483647, %v602_v35 }
 0x387   :  { %v622_v37 = vmul.f32 %v2297_v29, %v621_v36 }
 0x388   :  { %v616_v14 = vor.u32 1.1754944e-38, %v615_v10  ;;  %vm614_vm2 = vcmp.eq.f32.partialorder %v613_v12, 8.507059e+37 }
 0x389   :  { %v623_v52 = vadd.f32 %v2297_v29, %v622_v37 }
 0x38b   :  { %v627_v62 = vsel %vm626_vm12, %v2297_v29, %v623_v52 }
 0x38c   :  { %v2301_v55 = vpop.eup %2300  ;;  %v632_v3 = vsel %vm629_vm13, %v631_v0, %v627_v62 }
 0x38d   :  { %v605_v63 = vmul.f32 %v2301_v55, %v602_v35  ;;  %vm610_vm14 = vweird.f32 %v2301_v55  ;;  %v637_v29 = vmul.f32 %v632_v3, %v2738_v51 }
 0x38e   :  { %vm611_vm1 = vmor %vm609_vm15, %vm610_vm14 }
 0x38f   :  { %v606_v57 = vsub.f32 1.0, %v605_v63 }
 0x391   :  { %v607_v7 = vmul.f32 %v2301_v55, %v606_v57 }
 0x393   :  { %v608_v8 = vadd.f32 %v2301_v55, %v607_v7  ;;  %v154_v7 = vpop.f32.mrf.mxu0 }
 0x395   :  { %v612_v13 = vsel %vm611_vm1, %v2301_v55, %v608_v8 }
 0x396   :  { %v617_v53 = vsel %vm614_vm2, %v616_v14, %v612_v13 }
 0x397   :  { %v636_v24 = vmul.f32 %v617_v53, %v2732_v33 }
 0x39b   :  { %v156_v10 = vpop.f32.mrf.mxu0 }
 0x39c   :  { %v157_v12 = vadd.f32 %v156_v10, %v2672_v26 }
 0x3cb   :  { %v577_v48 = vpop.permute.xlu0 %576 }
 0x3cc   :  { %v2782_v18 = vadd.f32 %v577_v48, %v562_v39 }
 0x3ce   :  { %2302 = vtanh.f32 %v2782_v18 }
 0x3d2   :  { %v643_v4 = vpop.permute.xlu2 %642 }
 0x3d3   :  { %v647_v5 = vmul.f32 %v643_v4, %v632_v3 }
 0x3d4   :  { %v2303_v6 = vpop.eup %2302 }
 0x3d5   :  { %588 = vrot.lane.b32.xlu1 %v2303_v6, %s2533_s14  ;;  %652 = vrot.lane.b32.xlu0 %v647_v5, %s2534_s4 }
 0x3e2   :  { %v641_v15 = vpop.permute.xlu1 %640 }
 0x3e3   :  { %v646_v16 = vmul.f32 %v641_v15, %v617_v53 }
 0x3e5   :  { %650 = vrot.lane.b32.xlu2 %v646_v16, %s2534_s4 }
 0x3eb   :  { %v579_v22 = vpop.permute.xlu1 %578 }
 0x3ec   :  { %v2790_v56 = vadd.f32 %v579_v22, %v563_v17 }
 0x3ee   :  { %2304 = vtanh.f32 %v2790_v56 }
 0x3f4   :  { %v2305_v23 = vpop.eup %2304 }
 0x3f5   :  { %590 = vrot.lane.b32.xlu2 %v2305_v23, %s2533_s14 }
 0x43f   :  { %v651_v25 = vpop.permute.xlu2 %650 }
 0x440   :  { %v2795_v28 = vadd.f32 %v651_v25, %v636_v24 }
 0x442   :  { %2306 = vtanh.f32 %v2795_v28 }
 0x447   :  { %v653_v30 = vpop.permute.xlu0 %652  ;;  %v589_v35 = vpop.permute.xlu1 %588 }
 0x448   :  { %v2307_v34 = vpop.eup %2306  ;;  %v2799_v11 = vadd.f32 %v653_v30, %v637_v29  ;;  %v594_v36 = vmul.f32 %v589_v35, %v2766_v58 }
 0x449   :  { %662 = vrot.lane.b32.xlu0 %v2307_v34, %s2533_s14 }
 0x44a   :  { %2308 = vtanh.f32 %v2799_v11  ;;  %v2804_v39 = vpack.c.bf16 %v594_v36, %v594_v36 }
 0x44c   :  { %v702_v52 = vunpack.c.l.b16 %v2804_v39 }
 0x44f   :  { %v591_v37 = vpop.permute.xlu2 %590 }
 0x450   :  { %v2309_v33 = vpop.eup %2308  ;;  %v595_v48 = vmul.f32 %v591_v37, %v2775_v20 }
 0x451   :  { %664 = vrot.lane.b32.xlu1 %v2309_v33, %s2533_s14 }
 0x452   :  { %v2808_v51 = vpack.c.bf16 %v595_v48, %v595_v48 }
 0x454   :  { %v703_v55 = vunpack.c.l.b16 %v2808_v51 }
 0x456   :  { %v704_v60 = vpack.c.b16 %v703_v55, %v702_v52 }
 0x458   :  { %705 = vrot.lane.b32.xlu2 %v704_v60, %s2534_s4 }
 0x4b2   :  { %v706_v61 = vpop.permute.xlu2 %705 }
 0x4b3   :  { %2188 = vmatmul.msk.bf16.vlgmr.msra.gmra.mxu2 %vm110_vm0, %v706_v61 }
 0x4b4   :  { %1172 = vmatpush.bf16.msra.mxu2 %v2582_v2  ;;  %v155_v2 = vadd.f32 %v154_v7, %v2672_v26 }
 0x4b8   :  { %1173 = vmatpush.bf16.msra.mxu2 %v2600_v9 }
 0x4bb   :  { %v663_v58 = vpop.permute.xlu0 %662 }
 0x4bc   :  { %v668_v20 = vmul.f32 %v663_v58, %v617_v53  ;;  %v219_v58 = vadd.f32 %v2698_v47, %v2706_v59 }
 0x4be   :  { %v2816_v63 = vpack.c.bf16 %v668_v20, %v668_v20 }
 0x4c0   :  { %v726_v5 = vunpack.c.l.b16 %v2816_v63 }
 0x4c3   :  { %v665_v62 = vpop.permute.xlu1 %664 }
 0x4c4   :  { %v669_v0 = vmul.f32 %v665_v62, %v632_v3 }
 0x4c6   :  { %v2818_v4 = vpack.c.bf16 %v669_v0, %v669_v0 }
 0x4c8   :  { %v727_v57 = vunpack.c.l.b16 %v2818_v4 }
 0x4ca   :  { %v728_v6 = vpack.c.b16 %v727_v57, %v726_v5  ;;  %v221_v57 = vadd.f32 %v2700_v49, %v2706_v59 }
 0x4cc   :  { %729 = vrot.lane.b32.xlu0 %v728_v6, %s2534_s4 }
 0x536   :  { %v719_v8 = vpop.f32.mrf.mxu2 }
 0x537   :  { %v724_v9 = vadd.f32 %v719_v8, %v155_v2 }
 0x539   :  { %2310 = vtanh.f32 %v724_v9  ;;  %v2190_v16 = vmul.f32 -1.442695, %v724_v9 }
 0x53e   :  { %v730_v13 = vpop.permute.xlu0 %729  ;;  %v721_v3 = vpop.f32.mrf.mxu2 }
 0x53f   :  { %v2311_v14 = vpop.eup %2310  ;;  %v725_v15 = vadd.f32 %v721_v3, %v157_v12  ;;  %2189 = vmatmul.msk.bf16.vlgmr.msra.gmra.mxu3 %vm110_vm0, %v730_v13 }
 0x540   :  { %794 = vrot.lane.b32.xlu1 %v2311_v14, %s2533_s14  ;;  %1196 = vmatpush.bf16.msra.mxu3 %v2635_v19 }
 0x541   :  { %2312 = vtanh.f32 %v725_v15  ;;  %v2191_v29 = vmul.f32 -1.442695, %v725_v15 }
 0x542   :  { %2314 = vpow2.f32 %v2190_v16 }
 0x544   :  { %1197 = vmatpush.bf16.msra.mxu3 %v2645_v21 }
 0x547   :  { %v2313_v53 = vpop.eup %2312 }
 0x548   :  { %796 = vrot.lane.b32.xlu2 %v2313_v53, %s2533_s14  ;;  %v2315_v17 = vpop.eup %2314 }
 0x549   :  { %v756_v22 = vadd.f32 1.0, %v2315_v17 }
 0x54b   :  { %2316 = vrcp.f32 %v756_v22  ;;  %v769_v19 = vand.u32 2147483648, %v756_v22  ;;  %vm763_vm4 = vweird.f32 %v756_v22  ;;  %v767_v35 = vand.u32 2147483647, %v756_v22 }
 0x54c   :  { %2318 = vpow2.f32 %v2191_v29 }
 0x54d   :  { %v770_v37 = vor.u32 1.1754944e-38, %v769_v19  ;;  %vm768_vm6 = vcmp.eq.f32.partialorder %v767_v35, 8.507059e+37 }
 0x551   :  { %v2317_v23 = vpop.eup %2316 }
 0x552   :  { %v759_v24 = vmul.f32 %v2317_v23, %v756_v22  ;;  %vm764_vm3 = vweird.f32 %v2317_v23  ;;  %v2319_v21 = vpop.eup %2318 }
 0x553   :  { %vm765_vm5 = vmor %vm763_vm4, %vm764_vm3  ;;  %v757_v33 = vadd.f32 1.0, %v2319_v21 }
 0x554   :  { %v760_v25 = vsub.f32 1.0, %v759_v24 }
 0x555   :  { %2320 = vrcp.f32 %v757_v33  ;;  %v784_v8 = vand.u32 2147483648, %v757_v33  ;;  %vm778_vm8 = vweird.f32 %v757_v33  ;;  %v782_v10 = vand.u32 2147483647, %v757_v33 }
 0x556   :  { %v761_v30 = vmul.f32 %v2317_v23, %v760_v25 }
 0x557   :  { %v785_v13 = vor.u32 1.1754944e-38, %v784_v8  ;;  %vm783_vm10 = vcmp.eq.f32.partialorder %v782_v10, 8.507059e+37 }
 0x558   :  { %v762_v34 = vadd.f32 %v2317_v23, %v761_v30 }
 0x55a   :  { %v766_v36 = vsel %vm765_vm5, %v2317_v23, %v762_v34 }
 0x55b   :  { %v2830_v52 = vsel %vm768_vm6, %v770_v37, %v766_v36  ;;  %v2321_v60 = vpop.eup %2320 }
 0x55c   :  { %v774_v61 = vmul.f32 %v2321_v60, %v757_v33  ;;  %vm779_vm7 = vweird.f32 %v2321_v60  ;;  %v790_v15 = vmul.f32 %v2830_v52, %v2782_v18 }
 0x55d   :  { %vm780_vm9 = vmor %vm778_vm8, %vm779_vm7 }
 0x55e   :  { %v775_v20 = vsub.f32 1.0, %v774_v61 }
 0x560   :  { %v776_v5 = vmul.f32 %v2321_v60, %v775_v20 }
 0x562   :  { %v777_v6 = vadd.f32 %v2321_v60, %v776_v5 }
 0x564   :  { %v781_v47 = vsel %vm780_vm9, %v2321_v60, %v777_v6 }
 0x565   :  { %v2839_v3 = vsel %vm783_vm10, %v785_v13, %v781_v47 }
 0x566   :  { %v791_v8 = vmul.f32 %v2839_v3, %v2790_v56 }
 0x5a2   :  { %v797_v12 = vpop.permute.xlu2 %796 }
 0x5a3   :  { %v801_v49 = vmul.f32 %v797_v12, %v2839_v3 }
 0x5b2   :  { %v795_v48 = vpop.permute.xlu1 %794 }
 0x5b3   :  { %v800_v55 = vmul.f32 %v795_v48, %v2830_v52 }
 0x5b5   :  { %804 = vrot.lane.b32.xlu2 %v800_v55, %s2534_s4 }
 0x5c2   :  { %v743_v62 = vpop.f32.mrf.mxu3 }
 0x5c3   :  { %v748_v0 = vadd.f32 %v743_v62, %v219_v58 }
 0x5c5   :  { %2322 = vtanh.f32 %v748_v0  ;;  %v2192_v17 = vmul.f32 -1.442695, %v748_v0 }
 0x5ca   :  { %v745_v7 = vpop.f32.mrf.mxu3 }
 0x5cb   :  { %v2323_v2 = vpop.eup %2322  ;;  %v749_v9 = vadd.f32 %v745_v7, %v221_v57 }
 0x5cc   :  { %868 = vrot.lane.b32.xlu0 %v2323_v2, %s2533_s14 }
 0x5cd   :  { %2324 = vtanh.f32 %v749_v9  ;;  %v2193_v23 = vmul.f32 -1.442695, %v749_v9 }
 0x5d3   :  { %v2325_v14 = vpop.eup %2324 }
 0x5d4   :  { %870 = vrot.lane.b32.xlu1 %v2325_v14, %s2533_s14  ;;  %806 = vrot.lane.b32.xlu0 %v801_v49, %s2534_s4 }
 0x60f   :  { %v805_v53 = vpop.permute.xlu2 %804 }
 0x610   :  { %v2846_v16 = vadd.f32 %v805_v53, %v790_v15 }
 0x612   :  { %2326 = vtanh.f32 %v2846_v16 }
 0x613   :  { %2328 = vpow2.f32 %v2192_v17 }
 0x614   :  { %2330 = vpow2.f32 %v2193_v23 }
 0x618   :  { %v2327_v22 = vpop.eup %2326 }
 0x619   :  { %816 = vrot.lane.b32.xlu0 %v2327_v22, %s2533_s14  ;;  %v2329_v24 = vpop.eup %2328 }
 0x61a   :  { %v830_v25 = vadd.f32 1.0, %v2329_v24  ;;  %v2331_v29 = vpop.eup %2330 }
 0x61b   :  { %v831_v30 = vadd.f32 1.0, %v2331_v29 }
 0x61c   :  { %2332 = vrcp.f32 %v830_v25  ;;  %v843_v48 = vand.u32 2147483648, %v830_v25  ;;  %vm837_vm12 = vweird.f32 %v830_v25  ;;  %v841_v55 = vand.u32 2147483647, %v830_v25 }
 0x61d   :  { %2334 = vrcp.f32 %v831_v30  ;;  %v858_v57 = vand.u32 2147483648, %v831_v30  ;;  %vm852_vm1 = vweird.f32 %v831_v30  ;;  %v856_v6 = vand.u32 2147483647, %v831_v30 }
 0x61e   :  { %v844_v58 = vor.u32 1.1754944e-38, %v843_v48  ;;  %vm842_vm14 = vcmp.eq.f32.partialorder %v841_v55, 8.507059e+37 }
 0x61f   :  { %v859_v2 = vor.u32 1.1754944e-38, %v858_v57  ;;  %vm857_vm3 = vcmp.eq.f32.partialorder %v856_v6, 8.507059e+37  ;;  %v159_v57 = vpop.f32.mrf.mxu0 }
 0x620   :  { %v160_v6 = vadd.f32 %v159_v57, %v2672_v26 }
 0x622   :  { %v2333_v34 = vpop.eup %2332 }
 0x623   :  { %v833_v18 = vmul.f32 %v2333_v34, %v830_v25  ;;  %v2335_v35 = vpop.eup %2334  ;;  %vm838_vm11 = vweird.f32 %v2333_v34 }
 0x624   :  { %v848_v36 = vmul.f32 %v2335_v35, %v831_v30  ;;  %vm839_vm13 = vmor %vm837_vm12, %vm838_vm11  ;;  %vm853_vm15 = vweird.f32 %v2335_v35 }
 0x625   :  { %v834_v19 = vsub.f32 1.0, %v833_v18  ;;  %vm854_vm2 = vmor %vm852_vm1, %vm853_vm15 }
 0x626   :  { %v849_v33 = vsub.f32 1.0, %v848_v36 }
 0x627   :  { %v835_v21 = vmul.f32 %v2333_v34, %v834_v19 }
 0x628   :  { %v850_v61 = vmul.f32 %v2335_v35, %v849_v33 }
 0x629   :  { %v836_v37 = vadd.f32 %v2333_v34, %v835_v21 }
 0x62a   :  { %v851_v5 = vadd.f32 %v2335_v35, %v850_v61 }
 0x62b   :  { %v840_v60 = vsel %vm839_vm13, %v2333_v34, %v836_v37 }
 0x62c   :  { %v845_v62 = vsel %vm842_vm14, %v844_v58, %v840_v60  ;;  %v855_v7 = vsel %vm854_vm2, %v2335_v35, %v851_v5  ;;  %v2888_v58 = vld [vmem:[%s3419_s2 + $0x8] sm:$0xff]  ;;  %v2907_v5 = vld [vmem:[%s3420_s3] sm:$0xff] }
 0x62d   :  { %v860_v9 = vsel %vm857_vm3, %v859_v2, %v855_v7  ;;  %v864_v17 = vmul.f32 %v845_v62, %v2795_v28 }
 0x62e   :  { %v865_v14 = vmul.f32 %v860_v9, %v2799_v11 }
 0x63e   :  { %v869_v20 = vpop.permute.xlu0 %868 }
 0x63f   :  { %v874_v0 = vmul.f32 %v869_v20, %v845_v62  ;;  %v2894_v20 = vld [vmem:[%s3419_s2] sm:$0xff]  ;;  %s2536_s2 = smov 128  }
 0x641   :  { %878 = vrot.lane.b32.xlu1 %v874_v0, %s2534_s4  ;;  %v2901_v0 = vld [vmem:[%s3420_s3 + $0x8] sm:$0xff]  ;;  %s2537_s3 = smov 8  }
 0x646   :  { %v871_v10 = vpop.permute.xlu1 %870  ;;  %v807_v47 = vpop.permute.xlu0 %806 }
 0x647   :  { %v875_v12 = vmul.f32 %v871_v10, %v860_v9  ;;  %v2853_v13 = vadd.f32 %v807_v47, %v791_v8  ;;  %v161_v8 = vpop.f32.mrf.mxu0 }
 0x649   :  { %2336 = vtanh.f32 %v2853_v13  ;;  %880 = vrot.lane.b32.xlu2 %v875_v12, %s2534_s4 }
 0x64f   :  { %v2337_v49 = vpop.eup %2336 }
 0x650   :  { %818 = vrot.lane.b32.xlu1 %v2337_v49, %s2533_s14 }
 0x68b   :  { %v817_v25 = vpop.permute.xlu0 %816 }
 0x68c   :  { %v822_v11 = vmul.f32 %v817_v25, %v2830_v52 }
 0x68e   :  { %v2869_v30 = vpack.c.bf16 %v822_v11, %v822_v11 }
 0x690   :  { %v930_v28 = vunpack.c.l.b16 %v2869_v30 }
 0x6a3   :  { %v881_v15 = vpop.permute.xlu2 %880 }
 0x6a4   :  { %v2859_v53 = vadd.f32 %v881_v15, %v865_v14  ;;  %v214_v14 = vadd.f32 %v2694_v45, %v2706_v59 }
 0x6a6   :  { %2338 = vtanh.f32 %v2859_v53 }
 0x6ac   :  { %v2339_v56 = vpop.eup %2338 }
 0x6ad   :  { %892 = vrot.lane.b32.xlu0 %v2339_v56, %s2533_s14 }
 0x6b3   :  { %v879_v22 = vpop.permute.xlu1 %878 }
 0x6b4   :  { %v2864_v23 = vadd.f32 %v879_v22, %v864_v17  ;;  %v216_v17 = vadd.f32 %v2696_v46, %v2706_v59 }
 0x6b6   :  { %2340 = vtanh.f32 %v2864_v23 }
 0x6bc   :  { %v2341_v24 = vpop.eup %2340 }
 0x6bd   :  { %890 = vrot.lane.b32.xlu2 %v2341_v24, %s2533_s14 }
 0x6c2   :  { %v819_v29 = vpop.permute.xlu1 %818 }
 0x6c3   :  { %v823_v34 = vmul.f32 %v819_v29, %v2839_v3 }
 0x6c5   :  { %v2872_v18 = vpack.c.bf16 %v823_v34, %v823_v34 }
 0x6c7   :  { %v931_v19 = vunpack.c.l.b16 %v2872_v18 }
 0x6c9   :  { %v932_v35 = vpack.c.b16 %v931_v19, %v930_v28 }
 0x6cb   :  { %933 = vrot.lane.b32.xlu1 %v932_v35, %s2534_s4 }
 0x717   :  { %v891_v21 = vpop.permute.xlu2 %890 }
 0x718   :  { %v896_v36 = vmul.f32 %v891_v21, %v845_v62 }
 0x71a   :  { %v2877_v33 = vpack.c.bf16 %v896_v36, %v896_v36 }
 0x71c   :  { %v954_v55 = vunpack.c.l.b16 %v2877_v33 }
 0x71f   :  { %v893_v37 = vpop.permute.xlu0 %892 }
 0x720   :  { %v897_v52 = vmul.f32 %v893_v37, %v860_v9  ;;  %v162_v9 = vadd.f32 %v161_v8, %v2672_v26 }
 0x722   :  { %v2879_v48 = vpack.c.bf16 %v897_v52, %v897_v52 }
 0x724   :  { %v955_v3 = vunpack.c.l.b16 %v2879_v48 }
 0x726   :  { %v956_v60 = vpack.c.b16 %v955_v3, %v954_v55 }
 0x728   :  { %957 = vrot.lane.b32.xlu2 %v956_v60, %s2534_s4 }
 0x73d   :  { %v934_v61 = vpop.permute.xlu1 %933 }
 0x73e   :  { %2194 = vmatmul.msk.bf16.vlgmr.msrb.gmra.mxu2 %vm110_vm0, %v934_v61 }
 0x73f   :  { %1400 = vmatpush.bf16.msrb.mxu2 %v2888_v58 }
 0x743   :  { %1401 = vmatpush.bf16.msrb.mxu2 %v2894_v20 }
 0x782   :  { %v958_v62 = vpop.permute.xlu2 %957 }
 0x783   :  { %2195 = vmatmul.msk.bf16.vlgmr.msrb.gmra.mxu3 %vm110_vm0, %v958_v62 }
 0x784   :  { %1424 = vmatpush.bf16.msrb.mxu3 %v2901_v0 }
 0x788   :  { %1425 = vmatpush.bf16.msrb.mxu3 %v2907_v5 }
 0x7c1   :  { %v947_v7 = vpop.f32.mrf.mxu2 }
 0x7c2   :  { %v952_v2 = vadd.f32 %v947_v7, %v160_v6 }
 0x7c4   :  { %2342 = vtanh.f32 %v952_v2  ;;  %v2196_v11 = vmul.f32 -1.442695, %v952_v2 }
 0x7c9   :  { %v949_v10 = vpop.f32.mrf.mxu2 }
 0x7ca   :  { %v2343_v47 = vpop.eup %2342  ;;  %v953_v12 = vadd.f32 %v949_v10, %v162_v9 }
 0x7cb   :  { %1022 = vrot.lane.b32.xlu0 %v2343_v47, %s2533_s14 }
 0x7cc   :  { %2344 = vtanh.f32 %v953_v12  ;;  %v2197_v34 = vmul.f32 -1.442695, %v953_v12 }
 0x7d2   :  { %v2345_v49 = vpop.eup %2344 }
 0x7d3   :  { %1024 = vrot.lane.b32.xlu1 %v2345_v49, %s2533_s14 }
 0x806   :  { %v971_v15 = vpop.f32.mrf.mxu3 }
 0x807   :  { %v976_v56 = vadd.f32 %v971_v15, %v214_v14 }
 0x809   :  { %2346 = vtanh.f32 %v976_v56  ;;  %v2198_v2 = vmul.f32 -1.442695, %v976_v56 }
 0x80e   :  { %v973_v22 = vpop.f32.mrf.mxu3 }
 0x80f   :  { %v2347_v24 = vpop.eup %2346  ;;  %v977_v25 = vadd.f32 %v973_v22, %v216_v17 }
 0x810   :  { %1096 = vrot.lane.b32.xlu2 %v2347_v24, %s2533_s14 }
 0x811   :  { %2348 = vtanh.f32 %v977_v25 }
 0x812   :  { %2350 = vpow2.f32 %v2196_v11 }
 0x813   :  { %2352 = vpow2.f32 %v2197_v34 }
 0x817   :  { %v2349_v29 = vpop.eup %2348 }
 0x818   :  { %1098 = vrot.lane.b32.xlu0 %v2349_v29, %s2533_s14  ;;  %v2351_v28 = vpop.eup %2350 }
 0x819   :  { %v984_v45 = vadd.f32 1.0, %v2351_v28  ;;  %v2353_v19 = vpop.eup %2352 }
 0x81a   :  { %v985_v35 = vadd.f32 1.0, %v2353_v19 }
 0x81b   :  { %2354 = vrcp.f32 %v984_v45  ;;  %v997_v61 = vand.u32 2147483648, %v984_v45  ;;  %vm991_vm5 = vweird.f32 %v984_v45  ;;  %v995_v62 = vand.u32 2147483647, %v984_v45 }
 0x81c   :  { %2356 = vrcp.f32 %v985_v35  ;;  %v1012_v12 = vand.u32 2147483648, %v985_v35  ;;  %vm1006_vm9 = vweird.f32 %v985_v35  ;;  %v1010_v49 = vand.u32 2147483647, %v985_v35 }
 0x81d   :  { %v998_v7 = vor.u32 1.1754944e-38, %v997_v61  ;;  %vm996_vm7 = vcmp.eq.f32.partialorder %v995_v62, 8.507059e+37  ;;  %2358 = vpow2.f32 %v2198_v2 }
 0x81e   :  { %v1013_v15 = vor.u32 1.1754944e-38, %v1012_v12  ;;  %vm1011_vm11 = vcmp.eq.f32.partialorder %v1010_v49, 8.507059e+37 }
 0x821   :  { %v2355_v21 = vpop.eup %2354 }
 0x822   :  { %v987_v46 = vmul.f32 %v2355_v21, %v984_v45  ;;  %v2357_v37 = vpop.eup %2356  ;;  %vm992_vm4 = vweird.f32 %v2355_v21  ;;  %v2199_v45 = vmul.f32 -1.442695, %v977_v25 }
 0x823   :  { %v1002_v55 = vmul.f32 %v2357_v37, %v985_v35  ;;  %vm993_vm6 = vmor %vm991_vm5, %vm992_vm4  ;;  %vm1007_vm8 = vweird.f32 %v2357_v37  ;;  %v2359_v24 = vpop.eup %2358 }
 0x824   :  { %v988_v36 = vsub.f32 1.0, %v987_v46  ;;  %vm1008_vm10 = vmor %vm1006_vm9, %vm1007_vm8  ;;  %v1058_v11 = vadd.f32 1.0, %v2359_v24 }
 0x825   :  { %v1003_v60 = vsub.f32 1.0, %v1002_v55 }
 0x826   :  { %v989_v52 = vmul.f32 %v2355_v21, %v988_v36  ;;  %2360 = vrcp.f32 %v1058_v11  ;;  %vm1065_vm13 = vweird.f32 %v1058_v11  ;;  %v1069_v46 = vand.u32 2147483647, %v1058_v11 }
 0x827   :  { %v1004_v6 = vmul.f32 %v2357_v37, %v1003_v60  ;;  %2362 = vpow2.f32 %v2199_v45 }
 0x828   :  { %v990_v3 = vadd.f32 %v2355_v21, %v989_v52  ;;  %vm1070_vm15 = vcmp.eq.f32.partialorder %v1069_v46, 8.507059e+37 }
 0x829   :  { %v1005_v47 = vadd.f32 %v2357_v37, %v1004_v6 }
 0x82a   :  { %v994_v57 = vsel %vm993_vm6, %v2355_v21, %v990_v3  ;;  %v1071_v21 = vand.u32 2147483648, %v1058_v11 }
 0x82b   :  { %v2920_v9 = vsel %vm996_vm7, %v998_v7, %v994_v57  ;;  %v1009_v14 = vsel %vm1008_vm10, %v2357_v37, %v1005_v47 }
 0x82c   :  { %v2924_v22 = vsel %vm1011_vm11, %v1013_v15, %v1009_v14  ;;  %v2361_v29 = vpop.eup %2360  ;;  %v1072_v52 = vor.u32 1.1754944e-38, %v1071_v21 }
 0x82d   :  { %v1061_v34 = vmul.f32 %v2361_v29, %v1058_v11  ;;  %vm1066_vm12 = vweird.f32 %v2361_v29  ;;  %v2363_v36 = vpop.eup %2362  ;;  %v1019_v15 = vmul.f32 %v2924_v22, %v2853_v13  ;;  %v1018_v11 = vmul.f32 %v2920_v9, %v2846_v16 }
 0x82e   :  { %vm1067_vm14 = vmor %vm1065_vm13, %vm1066_vm12  ;;  %v1059_v55 = vadd.f32 1.0, %v2363_v36 }
 0x82f   :  { %v1062_v28 = vsub.f32 1.0, %v1061_v34 }
 0x830   :  { %2364 = vrcp.f32 %v1059_v55  ;;  %v1086_v2 = vand.u32 2147483648, %v1059_v55  ;;  %vm1080_vm2 = vweird.f32 %v1059_v55 }
 0x831   :  { %v1063_v19 = vmul.f32 %v2361_v29, %v1062_v28 }
 0x832   :  { %v1087_v47 = vor.u32 1.1754944e-38, %v1086_v2 }
 0x833   :  { %v1064_v35 = vadd.f32 %v2361_v29, %v1063_v19 }
 0x835   :  { %v1068_v37 = vsel %vm1067_vm14, %v2361_v29, %v1064_v35 }
 0x836   :  { %v1073_v60 = vsel %vm1070_vm15, %v1072_v52, %v1068_v37  ;;  %v2365_v25 = vpop.eup %2364 }
 0x837   :  { %v1076_v62 = vmul.f32 %v2365_v25, %v1059_v55  ;;  %vm1081_vm1 = vweird.f32 %v2365_v25  ;;  %v1092_v13 = vmul.f32 %v1073_v60, %v2864_v23 }
 0x838   :  { %vm1082_vm3 = vmor %vm1080_vm2, %vm1081_vm1 }
 0x839   :  { %v1077_v57 = vsub.f32 1.0, %v1076_v62 }
 0x83b   :  { %v1078_v6 = vmul.f32 %v2365_v25, %v1077_v57 }
 0x83d   :  { %v1023_v8 = vpop.permute.xlu0 %1022  ;;  %v1079_v7 = vadd.f32 %v2365_v25, %v1078_v6 }
 0x83e   :  { %v1028_v10 = vmul.f32 %v1023_v8, %v2920_v9  ;;  %v1084_v8 = vand.u32 2147483647, %v1059_v55 }
 0x840   :  { %1032 = vrot.lane.b32.xlu1 %v1028_v10, %s2534_s4  ;;  %v1083_v10 = vsel %vm1082_vm3, %v2365_v25, %v1079_v7  ;;  %vm1085_vm4 = vcmp.eq.f32.partialorder %v1084_v8, 8.507059e+37 }
 0x841   :  { %v1088_v12 = vsel %vm1085_vm4, %v1087_v47, %v1083_v10 }
 0x842   :  { %v1093_v16 = vmul.f32 %v1088_v12, %v2859_v53 }
 0x845   :  { %v1025_v17 = vpop.permute.xlu1 %1024 }
 0x846   :  { %v1029_v56 = vmul.f32 %v1025_v17, %v2924_v22 }
 0x848   :  { %1034 = vrot.lane.b32.xlu2 %v1029_v56, %s2534_s4 }
 0x86a   :  { %v1097_v3 = vpop.permute.xlu2 %1096 }
 0x86b   :  { %v1102_v61 = vmul.f32 %v1097_v3, %v1073_v60 }
 0x86d   :  { %1106 = vrot.lane.b32.xlu0 %v1102_v61, %s2534_s4 }
 0x88a   :  { %v1099_v49 = vpop.permute.xlu0 %1098 }
 0x88b   :  { %v1103_v14 = vmul.f32 %v1099_v49, %v1088_v12 }
 0x88d   :  { %1108 = vrot.lane.b32.xlu1 %v1103_v14, %s2534_s4 }
 0x8a2   :  { %v1035_v17 = vpop.permute.xlu2 %1034 }
 0x8a3   :  { %v2932_v56 = vadd.f32 %v1035_v17, %v1019_v15 }
 0x8a5   :  { %2366 = vtanh.f32 %v2932_v56 }
 0x8ab   :  { %v2367_v24 = vpop.eup %2366 }
 0x8ac   :  { %1046 = vrot.lane.b32.xlu0 %v2367_v24, %s2533_s14 }
 0x8b2   :  { %v1033_v29 = vpop.permute.xlu1 %1032 }
 0x8b3   :  { %v2938_v34 = vadd.f32 %v1033_v29, %v1018_v11 }
 0x8b5   :  { %2368 = vtanh.f32 %v2938_v34 }
 0x8bb   :  { %v2369_v28 = vpop.eup %2368 }
 0x8bc   :  { %1044 = vrot.lane.b32.xlu2 %v2369_v28, %s2533_s14 }
 0x8df   :  { %v1107_v45 = vpop.permute.xlu0 %1106 }
 0x8e0   :  { %v2943_v19 = vadd.f32 %v1107_v45, %v1092_v13 }
 0x8e2   :  { %2370 = vtanh.f32 %v2943_v19 }
 0x8e8   :  { %v2371_v35 = vpop.eup %2370 }
 0x8e9   :  { %1118 = vrot.lane.b32.xlu1 %v2371_v35, %s2533_s14 }
 0x8ff   :  { %v1109_v21 = vpop.permute.xlu1 %1108 }
 0x900   :  { %v2948_v46 = vadd.f32 %v1109_v21, %v1093_v16 }
 0x902   :  { %2372 = vtanh.f32 %v2948_v46 }
 0x908   :  { %v2373_v36 = vpop.eup %2372 }
 0x909   :  { %1120 = vrot.lane.b32.xlu2 %v2373_v36, %s2533_s14  ;;  %v209_v36 = vadd.f32 %v2690_v43, %v2706_v59 }
 0x916   :  { %v1045_v37 = vpop.permute.xlu2 %1044 }
 0x917   :  { %v1050_v23 = vmul.f32 %v1045_v37, %v2920_v9 }
 0x919   :  { %v2953_v55 = vpack.c.bf16 %v1050_v23, %v1050_v23 }
 0x91b   :  { %v1158_v53 = vunpack.c.l.b16 %v2953_v55 }
 0x91e   :  { %v1047_v52 = vpop.permute.xlu0 %1046 }
 0x91f   :  { %v1051_v3 = vmul.f32 %v1047_v52, %v2924_v22  ;;  %v211_v52 = vadd.f32 %v2692_v44, %v2706_v59 }
 0x921   :  { %v2956_v61 = vpack.c.bf16 %v1051_v3, %v1051_v3 }
 0x923   :  { %v1159_v25 = vunpack.c.l.b16 %v2956_v61 }
 0x925   :  { %v1160_v62 = vpack.c.b16 %v1159_v25, %v1158_v53 }
 0x927   :  { %1161 = vrot.lane.b32.xlu0 %v1160_v62, %s2534_s4 }
 0x95b   :  { %v1119_v57 = vpop.permute.xlu1 %1118 }
 0x95c   :  { %v1124_v6 = vmul.f32 %v1119_v57, %v1073_v60 }
 0x95e   :  { %v2961_v2 = vpack.c.bf16 %v1124_v6, %v1124_v6 }
 0x960   :  { %v1182_v10 = vunpack.c.l.b16 %v2961_v2 }
 0x963   :  { %v1121_v7 = vpop.permute.xlu2 %1120 }
 0x964   :  { %v1125_v9 = vmul.f32 %v1121_v7, %v1088_v12  ;;  %v164_v12 = vpop.f32.mrf.mxu0 }
 0x965   :  { %v165_v14 = vadd.f32 %v164_v12, %v2672_v26 }
 0x966   :  { %v2963_v8 = vpack.c.bf16 %v1125_v9, %v1125_v9 }
 0x968   :  { %v1183_v22 = vunpack.c.l.b16 %v2963_v8 }
 0x96a   :  { %v1184_v47 = vpack.c.b16 %v1183_v22, %v1182_v10 }
 0x96c   :  { %1185 = vrot.lane.b32.xlu1 %v1184_v47, %s2534_s4  ;;  %v166_v24 = vpop.f32.mrf.mxu0 }
 0x96d   :  { %v167_v11 = vadd.f32 %v166_v24, %v2672_v26 }
 0x999   :  { %v1162_v49 = vpop.permute.xlu0 %1161 }
 0x99a   :  { %2200 = vmatmul.msk.bf16.vlgmr.msra.gmra.mxu2 %vm110_vm0, %v1162_v49 }
 0x99b   :  { %1628 = vmatpush.bf16.msra.mxu2 %v2888_v58 }
 0x99f   :  { %1629 = vmatpush.bf16.msra.mxu2 %v2894_v20 }
 0x9de   :  { %v1186_v60 = vpop.permute.xlu1 %1185 }
 0x9df   :  { %2201 = vmatmul.msk.bf16.vlgmr.msra.gmra.mxu3 %vm110_vm0, %v1186_v60 }
 0x9e0   :  { %1652 = vmatpush.bf16.msra.mxu3 %v2901_v0 }
 0x9e4   :  { %1653 = vmatpush.bf16.msra.mxu3 %v2907_v5 }
 0xa1d   :  { %v1175_v15 = vpop.f32.mrf.mxu2 }
 0xa1e   :  { %v1180_v17 = vadd.f32 %v1175_v15, %v165_v14 }
 0xa20   :  { %2374 = vtanh.f32 %v1180_v17  ;;  %v2202_v35 = vmul.f32 -1.442695, %v1180_v17 }
 0xa25   :  { %v1177_v29 = vpop.f32.mrf.mxu2 }
 0xa26   :  { %v2375_v28 = vpop.eup %2374  ;;  %v1181_v13 = vadd.f32 %v1177_v29, %v167_v11 }
 0xa27   :  { %1250 = vrot.lane.b32.xlu2 %v2375_v28, %s2533_s14 }
 0xa28   :  { %2376 = vtanh.f32 %v1181_v13  ;;  %v2203_v9 = vmul.f32 -1.442695, %v1181_v13 }
 0xa29   :  { %2378 = vpow2.f32 %v2202_v35 }
 0xa2e   :  { %v2377_v45 = vpop.eup %2376 }
 0xa2f   :  { %1252 = vrot.lane.b32.xlu0 %v2377_v45, %s2533_s14  ;;  %v2379_v16 = vpop.eup %2378 }
 0xa30   :  { %v1212_v21 = vadd.f32 1.0, %v2379_v16 }
 0xa32   :  { %2380 = vrcp.f32 %v1212_v21  ;;  %v1225_v22 = vand.u32 2147483648, %v1212_v21  ;;  %vm1219_vm6 = vweird.f32 %v1212_v21  ;;  %v1223_v44 = vand.u32 2147483647, %v1212_v21 }
 0xa34   :  { %v1226_v60 = vor.u32 1.1754944e-38, %v1225_v22  ;;  %vm1224_vm8 = vcmp.eq.f32.partialorder %v1223_v44, 8.507059e+37 }
 0xa38   :  { %v2381_v3 = vpop.eup %2380 }
 0xa39   :  { %v1215_v57 = vmul.f32 %v2381_v3, %v1212_v21  ;;  %vm1220_vm5 = vweird.f32 %v2381_v3 }
 0xa3a   :  { %vm1221_vm7 = vmor %vm1219_vm6, %vm1220_vm5 }
 0xa3b   :  { %v1216_v6 = vsub.f32 1.0, %v1215_v57 }
 0xa3d   :  { %v1217_v43 = vmul.f32 %v2381_v3, %v1216_v6 }
 0xa3f   :  { %v1218_v10 = vadd.f32 %v2381_v3, %v1217_v43 }
 0xa41   :  { %v1222_v49 = vsel %vm1221_vm7, %v2381_v3, %v1218_v10 }
 0xa42   :  { %v2984_v15 = vsel %vm1224_vm8, %v1226_v60, %v1222_v49 }
 0xa62   :  { %v1199_v37 = vpop.f32.mrf.mxu3 }
 0xa63   :  { %v1204_v23 = vadd.f32 %v1199_v37, %v209_v36 }
 0xa65   :  { %2382 = vtanh.f32 %v1204_v23  ;;  %v2204_v57 = vmul.f32 -1.442695, %v1204_v23 }
 0xa6a   :  { %v1201_v53 = vpop.f32.mrf.mxu3 }
 0xa6b   :  { %v2383_v25 = vpop.eup %2382  ;;  %v1205_v62 = vadd.f32 %v1201_v53, %v211_v52 }
 0xa6c   :  { %1324 = vrot.lane.b32.xlu1 %v2383_v25, %s2533_s14 }
 0xa6d   :  { %2384 = vtanh.f32 %v1205_v62  ;;  %v2205_v36 = vmul.f32 -1.442695, %v1205_v62 }
 0xa6e   :  { %2386 = vpow2.f32 %v2203_v9 }
 0xa73   :  { %v2385_v7 = vpop.eup %2384 }
 0xa74   :  { %1326 = vrot.lane.b32.xlu2 %v2385_v7, %s2533_s14  ;;  %v2387_v47 = vpop.eup %2386 }
 0xa75   :  { %v1213_v12 = vadd.f32 1.0, %v2387_v47 }
 0xa77   :  { %2388 = vrcp.f32 %v1213_v12  ;;  %v1240_v45 = vand.u32 2147483648, %v1213_v12  ;;  %vm1234_vm10 = vweird.f32 %v1213_v12  ;;  %v1238_v35 = vand.u32 2147483647, %v1213_v12 }
 0xa78   :  { %2390 = vpow2.f32 %v2205_v36 }
 0xa79   :  { %v1241_v21 = vor.u32 1.1754944e-38, %v1240_v45  ;;  %vm1239_vm12 = vcmp.eq.f32.partialorder %v1238_v35, 8.507059e+37 }
 0xa7d   :  { %v2389_v24 = vpop.eup %2388 }
 0xa7e   :  { %v1230_v11 = vmul.f32 %v2389_v24, %v1213_v12  ;;  %vm1235_vm9 = vweird.f32 %v2389_v24  ;;  %v2391_v53 = vpop.eup %2390 }
 0xa7f   :  { %vm1236_vm11 = vmor %vm1234_vm10, %vm1235_vm9  ;;  %v1287_v25 = vadd.f32 1.0, %v2391_v53 }
 0xa80   :  { %v1231_v29 = vsub.f32 1.0, %v1230_v11 }
 0xa81   :  { %v1251_v14 = vpop.permute.xlu2 %1250  ;;  %2392 = vrcp.f32 %v1287_v25  ;;  %v1314_v47 = vand.u32 2147483648, %v1287_v25  ;;  %vm1308_vm14 = vweird.f32 %v1287_v25  ;;  %v1312_v49 = vand.u32 2147483647, %v1287_v25 }
 0xa82   :  { %v1256_v17 = vmul.f32 %v1251_v14, %v2984_v15  ;;  %v1232_v28 = vmul.f32 %v2389_v24, %v1231_v29  ;;  %2394 = vpow2.f32 %v2204_v57 }
 0xa83   :  { %v1315_v14 = vor.u32 1.1754944e-38, %v1314_v47  ;;  %vm1313_vm1 = vcmp.eq.f32.partialorder %v1312_v49, 8.507059e+37 }
 0xa84   :  { %1260 = vrot.lane.b32.xlu0 %v1256_v17, %s2534_s4  ;;  %v1233_v13 = vadd.f32 %v2389_v24, %v1232_v28 }
 0xa86   :  { %v1237_v16 = vsel %vm1236_vm11, %v2389_v24, %v1233_v13 }
 0xa87   :  { %v2988_v52 = vsel %vm1239_vm12, %v1241_v21, %v1237_v16  ;;  %v2393_v6 = vpop.eup %2392 }
 0xa88   :  { %v2395_v7 = vpop.eup %2394  ;;  %v1304_v9 = vmul.f32 %v2393_v6, %v1287_v25  ;;  %vm1309_vm13 = vweird.f32 %v2393_v6 }
 0xa89   :  { %v1286_v43 = vadd.f32 1.0, %v2395_v7  ;;  %vm1310_vm15 = vmor %vm1308_vm14, %vm1309_vm13 }
 0xa8a   :  { %v1305_v10 = vsub.f32 1.0, %v1304_v9 }
 0xa8b   :  { %2396 = vrcp.f32 %v1286_v43  ;;  %v1299_v13 = vand.u32 2147483648, %v1286_v43  ;;  %vm1293_vm3 = vweird.f32 %v1286_v43  ;;  %v1297_v45 = vand.u32 2147483647, %v1286_v43 }
 0xa8c   :  { %v1306_v62 = vmul.f32 %v2393_v6, %v1305_v10 }
 0xa8d   :  { %v1300_v16 = vor.u32 1.1754944e-38, %v1299_v13  ;;  %vm1298_vm5 = vcmp.eq.f32.partialorder %v1297_v45, 8.507059e+37 }
 0xa8e   :  { %v1307_v22 = vadd.f32 %v2393_v6, %v1306_v62 }
 0xa90   :  { %v1311_v60 = vsel %vm1310_vm15, %v2393_v6, %v1307_v22  ;;  %v1247_v6 = vmul.f32 %v2988_v52, %v2932_v56 }
 0xa91   :  { %v2397_v44 = vpop.eup %2396  ;;  %v1316_v23 = vsel %vm1313_vm1, %v1315_v14, %v1311_v60 }
 0xa92   :  { %v1289_v12 = vmul.f32 %v2397_v44, %v1286_v43  ;;  %vm1294_vm2 = vweird.f32 %v2397_v44  ;;  %v1321_v22 = vmul.f32 %v1316_v23, %v2948_v46 }
 0xa93   :  { %vm1295_vm4 = vmor %vm1293_vm3, %vm1294_vm2 }
 0xa94   :  { %v1290_v11 = vsub.f32 1.0, %v1289_v12 }
 0xa96   :  { %v1291_v29 = vmul.f32 %v2397_v44, %v1290_v11 }
 0xa98   :  { %v1292_v28 = vadd.f32 %v2397_v44, %v1291_v29 }
 0xa9a   :  { %v1296_v35 = vsel %vm1295_vm4, %v2397_v44, %v1292_v28 }
 0xa9b   :  { %v1301_v36 = vsel %vm1298_vm5, %v1300_v16, %v1296_v35 }
 0xaa1   :  { %v1253_v37 = vpop.permute.xlu0 %1252 }
 0xaa2   :  { %v1257_v3 = vmul.f32 %v1253_v37, %v2988_v52 }
 0xaa4   :  { %1262 = vrot.lane.b32.xlu1 %v1257_v3, %s2534_s4  ;;  %v1246_v3 = vmul.f32 %v2984_v15, %v2938_v34  ;;  %v1320_v34 = vmul.f32 %v1301_v36, %v2943_v19 }
 0xace   :  { %v1327_v17 = vpop.permute.xlu2 %1326 }
 0xacf   :  { %v1331_v24 = vmul.f32 %v1327_v17, %v1316_v23 }
 0xad1   :  { %1336 = vrot.lane.b32.xlu0 %v1331_v24, %s2534_s4 }
 0xade   :  { %v1325_v21 = vpop.permute.xlu1 %1324 }
 0xadf   :  { %v1330_v37 = vmul.f32 %v1325_v21, %v1301_v36 }
 0xae1   :  { %1334 = vrot.lane.b32.xlu2 %v1330_v37, %s2534_s4 }
 0xaf6   :  { %v1261_v53 = vpop.permute.xlu0 %1260 }
 0xaf7   :  { %v2996_v25 = vadd.f32 %v1261_v53, %v1246_v3 }
 0xaf9   :  { %2398 = vtanh.f32 %v2996_v25 }
 0xaff   :  { %v2399_v57 = vpop.eup %2398 }
 0xb00   :  { %1272 = vrot.lane.b32.xlu1 %v2399_v57, %s2533_s14 }
 0xb16   :  { %v1263_v7 = vpop.permute.xlu1 %1262 }
 0xb17   :  { %v3002_v9 = vadd.f32 %v1263_v7, %v1247_v6 }
 0xb19   :  { %2400 = vtanh.f32 %v3002_v9 }
 0xb1f   :  { %v2401_v43 = vpop.eup %2400 }
 0xb20   :  { %1274 = vrot.lane.b32.xlu2 %v2401_v43, %s2533_s14 }
 0xb3b   :  { %v1335_v10 = vpop.permute.xlu2 %1334 }
 0xb3c   :  { %v3007_v62 = vadd.f32 %v1335_v10, %v1320_v34 }
 0xb3e   :  { %2402 = vtanh.f32 %v3007_v62 }
 0xb43   :  { %v1337_v44 = vpop.permute.xlu0 %1336 }
 0xb44   :  { %v2403_v47 = vpop.eup %2402  ;;  %v3011_v56 = vadd.f32 %v1337_v44, %v1321_v22 }
 0xb45   :  { %1346 = vrot.lane.b32.xlu0 %v2403_v47, %s2533_s14 }
 0xb46   :  { %2404 = vtanh.f32 %v3011_v56 }
 0xb4c   :  { %v2405_v49 = vpop.eup %2404 }
 0xb4d   :  { %1348 = vrot.lane.b32.xlu1 %v2405_v49, %s2533_s14 }
 0xb72   :  { %v1273_v60 = vpop.permute.xlu1 %1272 }
 0xb73   :  { %v1278_v19 = vmul.f32 %v1273_v60, %v2984_v15 }
 0xb75   :  { %v3017_v14 = vpack.c.bf16 %v1278_v19, %v1278_v19 }
 0xb77   :  { %v1386_v24 = vunpack.c.l.b16 %v3017_v14 }
 0xb7a   :  { %v1275_v12 = vpop.permute.xlu2 %1274 }
 0xb7b   :  { %v1279_v17 = vmul.f32 %v1275_v12, %v2988_v52  ;;  %v204_v12 = vadd.f32 %v2686_v41, %v2706_v59 }
 0xb7d   :  { %v3020_v46 = vpack.c.bf16 %v1279_v17, %v1279_v17 }
 0xb7f   :  { %v1387_v11 = vunpack.c.l.b16 %v3020_v46 }
 0xb81   :  { %v1388_v29 = vpack.c.b16 %v1387_v11, %v1386_v24 }
 0xb83   :  { %1389 = vrot.lane.b32.xlu2 %v1388_v29, %s2534_s4 }
 0xbb7   :  { %v1347_v28 = vpop.permute.xlu0 %1346 }
 0xbb8   :  { %v1352_v13 = vmul.f32 %v1347_v28, %v1301_v36  ;;  %v206_v28 = vadd.f32 %v2688_v42, %v2706_v59 }
 0xbba   :  { %v3025_v35 = vpack.c.bf16 %v1352_v13, %v1352_v13 }
 0xbbc   :  { %v1410_v21 = vunpack.c.l.b16 %v3025_v35 }
 0xbbf   :  { %v1349_v45 = vpop.permute.xlu1 %1348 }
 0xbc0   :  { %v1353_v15 = vmul.f32 %v1349_v45, %v1316_v23  ;;  %v169_v23 = vpop.f32.mrf.mxu0 }
 0xbc1   :  { %v170_v53 = vadd.f32 %v169_v23, %v2672_v26 }
 0xbc2   :  { %v3027_v16 = vpack.c.bf16 %v1353_v15, %v1353_v15 }
 0xbc4   :  { %v1411_v52 = vunpack.c.l.b16 %v3027_v16 }
 0xbc6   :  { %v1412_v37 = vpack.c.b16 %v1411_v52, %v1410_v21 }
 0xbc8   :  { %1413 = vrot.lane.b32.xlu0 %v1412_v37, %s2534_s4  ;;  %v171_v7 = vpop.f32.mrf.mxu0 }
 0xbc9   :  { %v172_v43 = vadd.f32 %v171_v7, %v2672_v26 }
 0xbdd   :  { %v1390_v3 = vpop.permute.xlu2 %1389 }
 0xbde   :  { %2206 = vmatmul.msk.bf16.vlgmr.msrb.gmra.mxu2 %vm110_vm0, %v1390_v3 }
 0xbdf   :  { %1856 = vmatpush.bf16.msrb.mxu2 %v2888_v58 }
 0xbe3   :  { %1857 = vmatpush.bf16.msrb.mxu2 %v2894_v20 }
 0xc3a   :  { %v1414_v36 = vpop.permute.xlu0 %1413 }
 0xc3b   :  { %2207 = vmatmul.msk.bf16.vlgmr.msrb.gmra.mxu3 %vm110_vm0, %v1414_v36 }
 0xc3c   :  { %1880 = vmatpush.bf16.msrb.mxu3 %v2901_v0 }
 0xc40   :  { %1881 = vmatpush.bf16.msrb.mxu3 %v2907_v5 }
 0xc61   :  { %v1403_v57 = vpop.f32.mrf.mxu2 }
 0xc62   :  { %v1408_v6 = vadd.f32 %v1403_v57, %v170_v53 }
 0xc64   :  { %2406 = vtanh.f32 %v1408_v6  ;;  %v2208_v44 = vmul.f32 -1.442695, %v1408_v6 }
 0xc69   :  { %v1405_v34 = vpop.f32.mrf.mxu2 }
 0xc6a   :  { %v2407_v58 = vpop.eup %2406  ;;  %v1409_v10 = vadd.f32 %v1405_v34, %v172_v43 }
 0xc6b   :  { %1478 = vrot.lane.b32.xlu1 %v2407_v58, %s2533_s14 }
 0xc6c   :  { %2408 = vtanh.f32 %v1409_v10  ;;  %v2209_v0 = vmul.f32 -1.442695, %v1409_v10 }
 0xc6e   :  { %2410 = vpow2.f32 %v2209_v0 }
 0xc72   :  { %v2409_v20 = vpop.eup %2408 }
 0xc73   :  { %1480 = vrot.lane.b32.xlu2 %v2409_v20, %s2533_s14 }
 0xc74   :  { %v2411_v5 = vpop.eup %2410 }
 0xc75   :  { %v1441_v22 = vadd.f32 1.0, %v2411_v5 }
 0xc77   :  { %2412 = vrcp.f32 %v1441_v22  ;;  %v1468_v37 = vand.u32 2147483648, %v1441_v22  ;;  %vm1462_vm7 = vweird.f32 %v1441_v22  ;;  %v1466_v41 = vand.u32 2147483647, %v1441_v22 }
 0xc78   :  { %2414 = vpow2.f32 %v2208_v44 }
 0xc79   :  { %v1469_v23 = vor.u32 1.1754944e-38, %v1468_v37  ;;  %vm1467_vm9 = vcmp.eq.f32.partialorder %v1466_v41, 8.507059e+37 }
 0xc7d   :  { %v2413_v47 = vpop.eup %2412 }
 0xc7e   :  { %v2415_v49 = vpop.eup %2414  ;;  %v1458_v60 = vmul.f32 %v2413_v47, %v1441_v22  ;;  %vm1463_vm6 = vweird.f32 %v2413_v47 }
 0xc7f   :  { %v1440_v19 = vadd.f32 1.0, %v2415_v49  ;;  %vm1464_vm8 = vmor %vm1462_vm7, %vm1463_vm6 }
 0xc80   :  { %v1459_v24 = vsub.f32 1.0, %v1458_v60 }
 0xc81   :  { %2416 = vrcp.f32 %v1440_v19  ;;  %v1453_v58 = vand.u32 2147483648, %v1440_v19  ;;  %vm1447_vm11 = vweird.f32 %v1440_v19  ;;  %v1451_v10 = vand.u32 2147483647, %v1440_v19 }
 0xc82   :  { %v1460_v29 = vmul.f32 %v2413_v47, %v1459_v24 }
 0xc83   :  { %v1454_v0 = vor.u32 1.1754944e-38, %v1453_v58  ;;  %vm1452_vm13 = vcmp.eq.f32.partialorder %v1451_v10, 8.507059e+37 }
 0xc84   :  { %v1461_v15 = vadd.f32 %v2413_v47, %v1460_v29 }
 0xc86   :  { %v1465_v3 = vsel %vm1464_vm8, %v2413_v47, %v1461_v15 }
 0xc87   :  { %v2417_v13 = vpop.eup %2416  ;;  %v3047_v57 = vsel %vm1467_vm9, %v1469_v23, %v1465_v3 }
 0xc88   :  { %v1443_v36 = vmul.f32 %v2417_v13, %v1440_v19  ;;  %vm1448_vm10 = vweird.f32 %v2417_v13 }
 0xc89   :  { %vm1449_vm12 = vmor %vm1447_vm11, %vm1448_vm10 }
 0xc8a   :  { %v1444_v6 = vsub.f32 1.0, %v1443_v36 }
 0xc8c   :  { %v1445_v43 = vmul.f32 %v2417_v13, %v1444_v6 }
 0xc8e   :  { %v1446_v34 = vadd.f32 %v2417_v13, %v1445_v43 }
 0xc90   :  { %v1450_v20 = vsel %vm1449_vm12, %v2417_v13, %v1446_v34 }
 0xc91   :  { %v3052_v22 = vsel %vm1452_vm13, %v1454_v0, %v1450_v20 }
 0xc92   :  { %v1474_v23 = vmul.f32 %v3052_v22, %v2996_v25  ;;  %v1475_v25 = vmul.f32 %v3047_v57, %v3002_v9 }
 0xcbe   :  { %v1427_v17 = vpop.f32.mrf.mxu3 }
 0xcbf   :  { %v1432_v11 = vadd.f32 %v1427_v17, %v204_v12 }
 0xcc1   :  { %2418 = vtanh.f32 %v1432_v11  ;;  %v2210_v47 = vmul.f32 -1.442695, %v1432_v11 }
 0xcc6   :  { %v1429_v45 = vpop.f32.mrf.mxu3 }
 0xcc7   :  { %v2419_v21 = vpop.eup %2418  ;;  %v1433_v52 = vadd.f32 %v1429_v45, %v206_v28 }
 0xcc8   :  { %1552 = vrot.lane.b32.xlu0 %v2419_v21, %s2533_s14 }
 0xcc9   :  { %2420 = vtanh.f32 %v1433_v52  ;;  %v2211_v49 = vmul.f32 -1.442695, %v1433_v52 }
 0xcca   :  { %2422 = vpow2.f32 %v2210_v47 }
 0xccb   :  { %2424 = vpow2.f32 %v2211_v49 }
 0xccd   :  { %v1481_v53 = vpop.permute.xlu2 %1480 }
 0xcce   :  { %v1485_v42 = vmul.f32 %v1481_v53, %v3047_v57 }
 0xccf   :  { %v2421_v7 = vpop.eup %2420 }
 0xcd0   :  { %1554 = vrot.lane.b32.xlu1 %v2421_v7, %s2533_s14  ;;  %1490 = vrot.lane.b32.xlu0 %v1485_v42, %s2534_s4  ;;  %v2423_v60 = vpop.eup %2422 }
 0xcd1   :  { %v1514_v12 = vadd.f32 1.0, %v2423_v60  ;;  %v2425_v17 = vpop.eup %2424 }
 0xcd2   :  { %v1515_v19 = vadd.f32 1.0, %v2425_v17 }
 0xcd3   :  { %2426 = vrcp.f32 %v1514_v12  ;;  %v1527_v41 = vand.u32 2147483648, %v1514_v12  ;;  %vm1521_vm15 = vweird.f32 %v1514_v12  ;;  %v1525_v11 = vand.u32 2147483647, %v1514_v12 }
 0xcd4   :  { %2428 = vrcp.f32 %v1515_v19  ;;  %v1542_v58 = vand.u32 2147483648, %v1515_v19  ;;  %vm1536_vm4 = vweird.f32 %v1515_v19  ;;  %v1540_v10 = vand.u32 2147483647, %v1515_v19 }
 0xcd5   :  { %v1528_v36 = vor.u32 1.1754944e-38, %v1527_v41  ;;  %vm1526_vm2 = vcmp.eq.f32.partialorder %v1525_v11, 8.507059e+37 }
 0xcd6   :  { %v1543_v0 = vor.u32 1.1754944e-38, %v1542_v58  ;;  %vm1541_vm6 = vcmp.eq.f32.partialorder %v1540_v10, 8.507059e+37 }
 0xcd9   :  { %v2427_v24 = vpop.eup %2426 }
 0xcda   :  { %v1517_v29 = vmul.f32 %v2427_v24, %v1514_v12  ;;  %v2429_v13 = vpop.eup %2428  ;;  %vm1522_vm14 = vweird.f32 %v2427_v24 }
 0xcdb   :  { %v1532_v15 = vmul.f32 %v2429_v13, %v1515_v19  ;;  %vm1523_vm1 = vmor %vm1521_vm15, %vm1522_vm14  ;;  %vm1537_vm3 = vweird.f32 %v2429_v13 }
 0xcdc   :  { %v1518_v28 = vsub.f32 1.0, %v1517_v29  ;;  %vm1538_vm5 = vmor %vm1536_vm4, %vm1537_vm3 }
 0xcdd   :  { %v1479_v5 = vpop.permute.xlu1 %1478  ;;  %v1533_v37 = vsub.f32 1.0, %v1532_v15 }
 0xcde   :  { %v1484_v44 = vmul.f32 %v1479_v5, %v3052_v22  ;;  %v1519_v45 = vmul.f32 %v2427_v24, %v1518_v28 }
 0xcdf   :  { %v1534_v3 = vmul.f32 %v2429_v13, %v1533_v37 }
 0xce0   :  { %1488 = vrot.lane.b32.xlu2 %v1484_v44, %s2534_s4  ;;  %v1520_v21 = vadd.f32 %v2427_v24, %v1519_v45 }
 0xce1   :  { %v1535_v34 = vadd.f32 %v2429_v13, %v1534_v3 }
 0xce2   :  { %v1524_v52 = vsel %vm1523_vm1, %v2427_v24, %v1520_v21 }
 0xce3   :  { %v1529_v42 = vsel %vm1526_vm2, %v1528_v36, %v1524_v52  ;;  %v1539_v20 = vsel %vm1538_vm5, %v2429_v13, %v1535_v34 }
 0xce4   :  { %v1544_v5 = vsel %vm1541_vm6, %v1543_v0, %v1539_v20  ;;  %v1548_v28 = vmul.f32 %v1529_v42, %v3007_v62 }
 0xce5   :  { %v1549_v19 = vmul.f32 %v1544_v5, %v3011_v56 }
 0xd3a   :  { %v1553_v53 = vpop.permute.xlu0 %1552  ;;  %v1489_v6 = vpop.permute.xlu2 %1488 }
 0xd3b   :  { %v1558_v7 = vmul.f32 %v1553_v53, %v1529_v42  ;;  %v3058_v43 = vadd.f32 %v1489_v6, %v1474_v23 }
 0xd3d   :  { %2430 = vtanh.f32 %v3058_v43  ;;  %1562 = vrot.lane.b32.xlu1 %v1558_v7, %s2534_s4 }
 0xd42   :  { %v1555_v44 = vpop.permute.xlu1 %1554  ;;  %v1491_v47 = vpop.permute.xlu0 %1490 }
 0xd43   :  { %v2431_v49 = vpop.eup %2430  ;;  %v1559_v60 = vmul.f32 %v1555_v44, %v1544_v5  ;;  %v3064_v12 = vadd.f32 %v1491_v47, %v1475_v25 }
 0xd44   :  { %1500 = vrot.lane.b32.xlu0 %v2431_v49, %s2533_s14 }
 0xd45   :  { %2432 = vtanh.f32 %v3064_v12  ;;  %1564 = vrot.lane.b32.xlu2 %v1559_v60, %s2534_s4 }
 0xd4b   :  { %v2433_v17 = vpop.eup %2432 }
 0xd4c   :  { %1502 = vrot.lane.b32.xlu1 %v2433_v17, %s2533_s14 }
 0xd9f   :  { %v1565_v24 = vpop.permute.xlu2 %1564 }
 0xda0   :  { %v3071_v9 = vadd.f32 %v1565_v24, %v1549_v19 }
 0xda2   :  { %2434 = vtanh.f32 %v3071_v9 }
 0xda8   :  { %v2435_v29 = vpop.eup %2434 }
 0xda9   :  { %1576 = vrot.lane.b32.xlu0 %v2435_v29, %s2533_s14  ;;  %v199_v29 = vadd.f32 %v2681_v38, %v2706_v59 }
 0xdaf   :  { %v1563_v13 = vpop.permute.xlu1 %1562 }
 0xdb0   :  { %v3076_v45 = vadd.f32 %v1563_v13, %v1548_v28 }
 0xdb2   :  { %2436 = vtanh.f32 %v3076_v45 }
 0xdb6   :  { %v1501_v21 = vpop.permute.xlu0 %1500 }
 0xdb7   :  { %v1506_v56 = vmul.f32 %v1501_v21, %v3052_v22 }
 0xdb8   :  { %v2437_v15 = vpop.eup %2436 }
 0xdb9   :  { %1574 = vrot.lane.b32.xlu2 %v2437_v15, %s2533_s14  ;;  %v3081_v41 = vpack.c.bf16 %v1506_v56, %v1506_v56  ;;  %v201_v15 = vadd.f32 %v2684_v40, %v2706_v59 }
 0xdbb   :  { %v1614_v62 = vunpack.c.l.b16 %v3081_v41 }
 0xdbe   :  { %v1503_v37 = vpop.permute.xlu1 %1502 }
 0xdbf   :  { %v1507_v11 = vmul.f32 %v1503_v37, %v3047_v57 }
 0xdc1   :  { %v3084_v52 = vpack.c.bf16 %v1507_v11, %v1507_v11 }
 0xdc3   :  { %v1615_v3 = vunpack.c.l.b16 %v3084_v52 }
 0xdc5   :  { %v1616_v36 = vpack.c.b16 %v1615_v3, %v1614_v62 }
 0xdc7   :  { %1617 = vrot.lane.b32.xlu1 %v1616_v36, %s2534_s4 }
 0xe13   :  { %v1575_v23 = vpop.permute.xlu2 %1574 }
 0xe14   :  { %v1580_v53 = vmul.f32 %v1575_v23, %v1529_v42  ;;  %v174_v42 = vpop.f32.mrf.mxu0 }
 0xe15   :  { %v175_v25 = vadd.f32 %v174_v42, %v2672_v26 }
 0xe16   :  { %v3089_v7 = vpack.c.bf16 %v1580_v53, %v1580_v53 }
 0xe18   :  { %v1638_v58 = vunpack.c.l.b16 %v3089_v7 }
 0xe1b   :  { %v1577_v6 = vpop.permute.xlu0 %1576 }
 0xe1c   :  { %v1581_v22 = vmul.f32 %v1577_v6, %v1544_v5  ;;  %v176_v47 = vpop.f32.mrf.mxu0 }
 0xe1d   :  { %v177_v49 = vadd.f32 %v176_v47, %v2672_v26 }
 0xe1e   :  { %v3091_v34 = vpack.c.bf16 %v1581_v22, %v1581_v22 }
 0xe20   :  { %v1639_v57 = vunpack.c.l.b16 %v3091_v34 }
 0xe22   :  { %v1640_v10 = vpack.c.b16 %v1639_v57, %v1638_v58 }
 0xe24   :  { %1641 = vrot.lane.b32.xlu2 %v1640_v10, %s2534_s4 }
 0xe39   :  { %v1618_v20 = vpop.permute.xlu1 %1617 }
 0xe3a   :  { %2212 = vmatmul.msk.bf16.vlgmr.msra.gmra.mxu2 %vm110_vm0, %v1618_v20 }
 0xe7e   :  { %v1642_v0 = vpop.permute.xlu2 %1641 }
 0xe7f   :  { %2213 = vmatmul.msk.bf16.vlgmr.msra.gmra.mxu3 %vm110_vm0, %v1642_v0 }
 0xebd   :  { %v1631_v44 = vpop.f32.mrf.mxu2 }
 0xebe   :  { %v1636_v5 = vadd.f32 %v1631_v44, %v175_v25 }
 0xec0   :  { %2438 = vtanh.f32 %v1636_v5  ;;  %v2214_v11 = vmul.f32 -1.442695, %v1636_v5 }
 0xec5   :  { %v1633_v60 = vpop.f32.mrf.mxu2 }
 0xec6   :  { %v2439_v17 = vpop.eup %2438  ;;  %v1637_v19 = vadd.f32 %v1633_v60, %v177_v49 }
 0xec7   :  { %1706 = vrot.lane.b32.xlu0 %v2439_v17, %s2533_s14 }
 0xec8   :  { %2440 = vtanh.f32 %v1637_v19  ;;  %v2215_v3 = vmul.f32 -1.442695, %v1637_v19 }
 0xece   :  { %v2441_v24 = vpop.eup %2440 }
 0xecf   :  { %1708 = vrot.lane.b32.xlu1 %v2441_v24, %s2533_s14 }
 0xf02   :  { %v1655_v28 = vpop.f32.mrf.mxu3 }
 0xf03   :  { %v1660_v13 = vadd.f32 %v1655_v28, %v199_v29 }
 0xf05   :  { %2442 = vtanh.f32 %v1660_v13  ;;  %v2216_v49 = vmul.f32 -1.442695, %v1660_v13 }
 0xf0a   :  { %v1657_v21 = vpop.f32.mrf.mxu3 }
 0xf0b   :  { %v2443_v56 = vpop.eup %2442  ;;  %v1661_v37 = vadd.f32 %v1657_v21, %v201_v15 }
 0xf0c   :  { %1780 = vrot.lane.b32.xlu2 %v2443_v56, %s2533_s14 }
 0xf0d   :  { %2444 = vtanh.f32 %v1661_v37 }
 0xf0e   :  { %2446 = vpow2.f32 %v2214_v11 }
 0xf0f   :  { %2448 = vpow2.f32 %v2215_v3 }
 0xf13   :  { %v2445_v62 = vpop.eup %2444 }
 0xf14   :  { %1782 = vrot.lane.b32.xlu0 %v2445_v62, %s2533_s14  ;;  %v2447_v36 = vpop.eup %2446 }
 0xf15   :  { %v1668_v38 = vadd.f32 1.0, %v2447_v36  ;;  %v2449_v23 = vpop.eup %2448 }
 0xf16   :  { %v1669_v53 = vadd.f32 1.0, %v2449_v23 }
 0xf17   :  { %2450 = vrcp.f32 %v1668_v38  ;;  %v1681_v42 = vand.u32 2147483648, %v1668_v38  ;;  %vm1675_vm8 = vweird.f32 %v1668_v38  ;;  %v1679_v25 = vand.u32 2147483647, %v1668_v38 }
 0xf18   :  { %2452 = vrcp.f32 %v1669_v53  ;;  %v1696_v29 = vand.u32 2147483648, %v1669_v53  ;;  %vm1690_vm12 = vweird.f32 %v1669_v53  ;;  %v1694_v28 = vand.u32 2147483647, %v1669_v53 }
 0xf19   :  { %v1682_v47 = vor.u32 1.1754944e-38, %v1681_v42  ;;  %vm1680_vm10 = vcmp.eq.f32.partialorder %v1679_v25, 8.507059e+37  ;;  %2454 = vpow2.f32 %v2216_v49 }
 0xf1a   :  { %v1697_v21 = vor.u32 1.1754944e-38, %v1696_v29  ;;  %vm1695_vm14 = vcmp.eq.f32.partialorder %v1694_v28, 8.507059e+37 }
 0xf1d   :  { %v2451_v6 = vpop.eup %2450 }
 0xf1e   :  { %v1671_v40 = vmul.f32 %v2451_v6, %v1668_v38  ;;  %v2453_v58 = vpop.eup %2452  ;;  %vm1676_vm7 = vweird.f32 %v2451_v6 }
 0xf1f   :  { %v1686_v10 = vmul.f32 %v2453_v58, %v1669_v53  ;;  %vm1677_vm9 = vmor %vm1675_vm8, %vm1676_vm7  ;;  %vm1691_vm11 = vweird.f32 %v2453_v58  ;;  %v2455_v62 = vpop.eup %2454 }
 0xf20   :  { %v1672_v22 = vsub.f32 1.0, %v1671_v40  ;;  %vm1692_vm13 = vmor %vm1690_vm12, %vm1691_vm11  ;;  %v1742_v3 = vadd.f32 1.0, %v2455_v62 }
 0xf21   :  { %v1687_v0 = vsub.f32 1.0, %v1686_v10 }
 0xf22   :  { %v1673_v57 = vmul.f32 %v2451_v6, %v1672_v22  ;;  %2456 = vrcp.f32 %v1742_v3  ;;  %v1755_v22 = vand.u32 2147483648, %v1742_v3  ;;  %vm1749_vm1 = vweird.f32 %v1742_v3 }
 0xf23   :  { %v1688_v5 = vmul.f32 %v2453_v58, %v1687_v0 }
 0xf24   :  { %v1674_v20 = vadd.f32 %v2451_v6, %v1673_v57 }
 0xf25   :  { %v1689_v24 = vadd.f32 %v2453_v58, %v1688_v5 }
 0xf26   :  { %v1678_v44 = vsel %vm1677_vm9, %v2451_v6, %v1674_v20  ;;  %v2217_v6 = vmul.f32 -1.442695, %v1661_v37  ;;  %v1756_v20 = vor.u32 1.1754944e-38, %v1755_v22 }
 0xf27   :  { %v3108_v17 = vsel %vm1680_vm10, %v1682_v47, %v1678_v44  ;;  %v1693_v15 = vsel %vm1692_vm13, %v2453_v58, %v1689_v24  ;;  %v1753_v58 = vand.u32 2147483647, %v1742_v3 }
 0xf28   :  { %v3112_v11 = vsel %vm1695_vm14, %v1697_v21, %v1693_v15  ;;  %v2457_v36 = vpop.eup %2456  ;;  %2458 = vpow2.f32 %v2217_v6 }
 0xf29   :  { %v1745_v38 = vmul.f32 %v2457_v36, %v1742_v3  ;;  %vm1750_vm15 = vweird.f32 %v2457_v36  ;;  %vm1754_vm3 = vcmp.eq.f32.partialorder %v1753_v58, 8.507059e+37 }
 0xf2a   :  { %vm1751_vm2 = vmor %vm1749_vm1, %vm1750_vm15 }
 0xf2b   :  { %v1746_v23 = vsub.f32 1.0, %v1745_v38  ;;  %v1702_v38 = vmul.f32 %v3108_v17, %v3058_v43 }
 0xf2d   :  { %v1747_v53 = vmul.f32 %v2457_v36, %v1746_v23 }
 0xf2e   :  { %v2459_v57 = vpop.eup %2458 }
 0xf2f   :  { %v1748_v40 = vadd.f32 %v2457_v36, %v1747_v53  ;;  %v1743_v0 = vadd.f32 1.0, %v2459_v57 }
 0xf31   :  { %v1752_v10 = vsel %vm1751_vm2, %v2457_v36, %v1748_v40  ;;  %2460 = vrcp.f32 %v1743_v0  ;;  %vm1764_vm5 = vweird.f32 %v1743_v0  ;;  %v1768_v24 = vand.u32 2147483647, %v1743_v0 }
 0xf32   :  { %v1757_v25 = vsel %vm1754_vm3, %v1756_v20, %v1752_v10 }
 0xf33   :  { %vm1769_vm7 = vcmp.eq.f32.partialorder %v1768_v24, 8.507059e+37 }
 0xf37   :  { %v2461_v37 = vpop.eup %2460 }
 0xf38   :  { %v1760_v5 = vmul.f32 %v2461_v37, %v1743_v0  ;;  %vm1765_vm4 = vweird.f32 %v2461_v37 }
 0xf39   :  { %v1707_v60 = vpop.permute.xlu0 %1706  ;;  %vm1766_vm6 = vmor %vm1764_vm5, %vm1765_vm4 }
 0xf3a   :  { %v1712_v19 = vmul.f32 %v1707_v60, %v3108_v17  ;;  %v1761_v47 = vsub.f32 1.0, %v1760_v5 }
 0xf3c   :  { %1716 = vrot.lane.b32.xlu1 %v1712_v19, %s2534_s4  ;;  %v1762_v49 = vmul.f32 %v2461_v37, %v1761_v47  ;;  %v1770_v19 = vand.u32 2147483648, %v1743_v0 }
 0xf3e   :  { %v1763_v60 = vadd.f32 %v2461_v37, %v1762_v49  ;;  %v1771_v28 = vor.u32 1.1754944e-38, %v1770_v19 }
 0xf40   :  { %v1767_v29 = vsel %vm1766_vm6, %v2461_v37, %v1763_v60 }
 0xf41   :  { %v1709_v56 = vpop.permute.xlu1 %1708  ;;  %v1772_v15 = vsel %vm1769_vm7, %v1771_v28, %v1767_v29 }
 0xf42   :  { %v1713_v13 = vmul.f32 %v1709_v56, %v3112_v11  ;;  %v1777_v43 = vmul.f32 %v1772_v15, %v3071_v9 }
 0xf44   :  { %1718 = vrot.lane.b32.xlu2 %v1713_v13, %s2534_s4  ;;  %v1703_v13 = vmul.f32 %v3112_v11, %v3064_v12  ;;  %v1776_v12 = vmul.f32 %v1757_v25, %v3076_v45 }
 0xf66   :  { %v1781_v42 = vpop.permute.xlu2 %1780 }
 0xf67   :  { %v1786_v44 = vmul.f32 %v1781_v42, %v1757_v25 }
 0xf69   :  { %1790 = vrot.lane.b32.xlu0 %v1786_v44, %s2534_s4 }
 0xf86   :  { %v1783_v21 = vpop.permute.xlu0 %1782 }
 0xf87   :  { %v1787_v56 = vmul.f32 %v1783_v21, %v1772_v15 }
 0xf89   :  { %1792 = vrot.lane.b32.xlu1 %v1787_v56, %s2534_s4 }
 0xf9e   :  { %v1719_v62 = vpop.permute.xlu2 %1718 }
 0xf9f   :  { %v3120_v3 = vadd.f32 %v1719_v62, %v1703_v13 }
 0xfa1   :  { %2462 = vtanh.f32 %v3120_v3 }
 0xfa7   :  { %v2463_v36 = vpop.eup %2462 }
 0xfa8   :  { %1730 = vrot.lane.b32.xlu0 %v2463_v36, %s2533_s14 }
 0xfae   :  { %v1717_v23 = vpop.permute.xlu1 %1716 }
 0xfaf   :  { %v3126_v6 = vadd.f32 %v1717_v23, %v1702_v38 }
 0xfb1   :  { %2464 = vtanh.f32 %v3126_v6 }
 0xfb7   :  { %v2465_v53 = vpop.eup %2464 }
 0xfb8   :  { %1728 = vrot.lane.b32.xlu2 %v2465_v53, %s2533_s14 }
 0xfdb   :  { %v1791_v40 = vpop.permute.xlu0 %1790 }
 0xfdc   :  { %v3131_v22 = vadd.f32 %v1791_v40, %v1776_v12 }
 0xfde   :  { %2466 = vtanh.f32 %v3131_v22 }
 0xfe4   :  { %v2467_v58 = vpop.eup %2466 }
 0xfe5   :  { %1802 = vrot.lane.b32.xlu1 %v2467_v58, %s2533_s14 }
 0xffb   :  { %v1793_v57 = vpop.permute.xlu1 %1792 }
 0xffc   :  { %v3136_v10 = vadd.f32 %v1793_v57, %v1777_v43 }
 0xffe   :  { %2468 = vtanh.f32 %v3136_v10 }
0x1004   :  { %v2469_v20 = vpop.eup %2468 }
0x1005   :  { %1804 = vrot.lane.b32.xlu2 %v2469_v20, %s2533_s14 }
0x1012   :  { %v1729_v0 = vpop.permute.xlu2 %1728 }
0x1013   :  { %v1734_v45 = vmul.f32 %v1729_v0, %v3108_v17 }
0x1015   :  { %v3141_v44 = vpack.c.bf16 %v1734_v45, %v1734_v45  ;;  %v194_v45 = vadd.f32 %v2674_v27, %v2706_v59 }
0x1017   :  { %v1842_v9 = vunpack.c.l.b16 %v3141_v44 }
0x101a   :  { %v1731_v42 = vpop.permute.xlu0 %1730 }
0x101b   :  { %v1735_v37 = vmul.f32 %v1731_v42, %v3112_v11 }
0x101d   :  { %v3144_v5 = vpack.c.bf16 %v1735_v37, %v1735_v37 }
0x101f   :  { %v1843_v47 = vunpack.c.l.b16 %v3144_v5 }
0x1021   :  { %v1844_v49 = vpack.c.b16 %v1843_v47, %v1842_v9 }
0x1023   :  { %1845 = vrot.lane.b32.xlu0 %v1844_v49, %s2534_s4 }
0x1057   :  { %v1803_v60 = vpop.permute.xlu1 %1802 }
0x1058   :  { %v1808_v19 = vmul.f32 %v1803_v60, %v1757_v25  ;;  %v179_v25 = vpop.f32.mrf.mxu0 }
0x1059   :  { %v180_v36 = vadd.f32 %v179_v25, %v2672_v26 }
0x105a   :  { %v3149_v29 = vpack.c.bf16 %v1808_v19, %v1808_v19 }
0x105c   :  { %v1866_v21 = vunpack.c.l.b16 %v3149_v29 }
0x105f   :  { %v1805_v24 = vpop.permute.xlu2 %1804 }
0x1060   :  { %v1809_v17 = vmul.f32 %v1805_v24, %v1772_v15  ;;  %v181_v23 = vpop.f32.mrf.mxu0 }
0x1061   :  { %v182_v53 = vadd.f32 %v181_v23, %v2672_v26  ;;  %v196_v26 = vadd.f32 %v2677_v32, %v2706_v59 }
0x1062   :  { %v3151_v28 = vpack.c.bf16 %v1809_v17, %v1809_v17 }
0x1064   :  { %v1867_v11 = vunpack.c.l.b16 %v3151_v28 }
0x1066   :  { %v1868_v56 = vpack.c.b16 %v1867_v11, %v1866_v21 }
0x1068   :  { %1869 = vrot.lane.b32.xlu1 %v1868_v56, %s2534_s4 }
0x1095   :  { %v1846_v13 = vpop.permute.xlu0 %1845 }
0x1096   :  { %2218 = vmatmul.msk.bf16.vlgmr.msrb.gmra.mxu2 %vm110_vm0, %v1846_v13 }
0x10da   :  { %v1870_v62 = vpop.permute.xlu1 %1869 }
0x10db   :  { %2219 = vmatmul.msk.bf16.vlgmr.msrb.gmra.mxu3 %vm110_vm0, %v1870_v62 }
0x1119   :  { %v1859_v38 = vpop.f32.mrf.mxu2 }
0x111a   :  { %v1864_v15 = vadd.f32 %v1859_v38, %v180_v36 }
0x111c   :  { %2470 = vtanh.f32 %v1864_v15  ;;  %v2220_v57 = vmul.f32 -1.442695, %v1864_v15 }
0x1121   :  { %v1861_v12 = vpop.f32.mrf.mxu2 }
0x1122   :  { %v2471_v40 = vpop.eup %2470  ;;  %v1865_v58 = vadd.f32 %v1861_v12, %v182_v53 }
0x1123   :  { %1934 = vrot.lane.b32.xlu2 %v2471_v40, %s2533_s14 }
0x1124   :  { %2472 = vtanh.f32 %v1865_v58  ;;  %v2221_v21 = vmul.f32 -1.442695, %v1865_v58 }
0x1125   :  { %2474 = vpow2.f32 %v2220_v57 }
0x112a   :  { %v2473_v43 = vpop.eup %2472 }
0x112b   :  { %1936 = vrot.lane.b32.xlu0 %v2473_v43, %s2533_s14  ;;  %v2475_v20 = vpop.eup %2474 }
0x112c   :  { %v1896_v0 = vadd.f32 1.0, %v2475_v20 }
0x112e   :  { %2476 = vrcp.f32 %v1896_v0  ;;  %v1909_v56 = vand.u32 2147483648, %v1896_v0  ;;  %vm1903_vm9 = vweird.f32 %v1896_v0  ;;  %v1907_v32 = vand.u32 2147483647, %v1896_v0 }
0x1130   :  { %v1910_v62 = vor.u32 1.1754944e-38, %v1909_v56  ;;  %vm1908_vm11 = vcmp.eq.f32.partialorder %v1907_v32, 8.507059e+37 }
0x1134   :  { %v2477_v9 = vpop.eup %2476 }
0x1135   :  { %v1899_v19 = vmul.f32 %v2477_v9, %v1896_v0  ;;  %vm1904_vm8 = vweird.f32 %v2477_v9 }
0x1136   :  { %vm1905_vm10 = vmor %vm1903_vm9, %vm1904_vm8  ;;  %vm458_vm9 = vcmask 257024  }
0x1137   :  { %v1900_v24 = vsub.f32 1.0, %v1899_v19 }
0x1139   :  { %v1901_v27 = vmul.f32 %v2477_v9, %v1900_v24 }
0x113b   :  { %v1902_v11 = vadd.f32 %v2477_v9, %v1901_v27 }
0x113d   :  { %v1906_v13 = vsel %vm1905_vm10, %v2477_v9, %v1902_v11  ;;  %vm471_vm10 = vcmask 519424  }
0x113e   :  { %v3168_v38 = vsel %vm1908_vm11, %v1910_v62, %v1906_v13 }
0x115e   :  { %v1883_v42 = vpop.f32.mrf.mxu3 }
0x115f   :  { %v1888_v37 = vadd.f32 %v1883_v42, %v194_v45 }
0x1161   :  { %2478 = vtanh.f32 %v1888_v37  ;;  %v2222_v19 = vmul.f32 -1.442695, %v1888_v37 }
0x1166   :  { %v1885_v47 = vpop.f32.mrf.mxu3 }
0x1167   :  { %v2479_v49 = vpop.eup %2478  ;;  %v1889_v60 = vadd.f32 %v1885_v47, %v196_v26 }
0x1168   :  { %2008 = vrot.lane.b32.xlu1 %v2479_v49, %s2533_s14 }
0x1169   :  { %2480 = vtanh.f32 %v1889_v60  ;;  %v2223_v45 = vmul.f32 -1.442695, %v1889_v60 }
0x116a   :  { %2482 = vpow2.f32 %v2221_v21 }
0x116f   :  { %v2481_v17 = vpop.eup %2480 }
0x1170   :  { %2010 = vrot.lane.b32.xlu2 %v2481_v17, %s2533_s14  ;;  %v2483_v59 = vpop.eup %2482 }
0x1171   :  { %v1897_v25 = vadd.f32 1.0, %v2483_v59 }
0x1173   :  { %2484 = vrcp.f32 %v1897_v25  ;;  %v1924_v43 = vand.u32 2147483648, %v1897_v25  ;;  %vm1918_vm13 = vweird.f32 %v1897_v25  ;;  %v1922_v57 = vand.u32 2147483647, %v1897_v25 }
0x1174   :  { %2486 = vpow2.f32 %v2223_v45 }
0x1175   :  { %v1925_v0 = vor.u32 1.1754944e-38, %v1924_v43  ;;  %vm1923_vm15 = vcmp.eq.f32.partialorder %v1922_v57, 8.507059e+37 }
0x1179   :  { %v2485_v23 = vpop.eup %2484 }
0x117a   :  { %v1914_v53 = vmul.f32 %v2485_v23, %v1897_v25  ;;  %vm1919_vm12 = vweird.f32 %v2485_v23  ;;  %v2487_v47 = vpop.eup %2486 }
0x117b   :  { %vm1920_vm14 = vmor %vm1918_vm13, %vm1919_vm12  ;;  %v1971_v49 = vadd.f32 1.0, %v2487_v47 }
0x117c   :  { %v1915_v12 = vsub.f32 1.0, %v1914_v53 }
0x117d   :  { %v1935_v36 = vpop.permute.xlu2 %1934  ;;  %2488 = vrcp.f32 %v1971_v49  ;;  %v1998_v56 = vand.u32 2147483648, %v1971_v49  ;;  %vm1992_vm2 = vweird.f32 %v1971_v49 }
0x117e   :  { %v1940_v15 = vmul.f32 %v1935_v36, %v3168_v38  ;;  %v1916_v40 = vmul.f32 %v2485_v23, %v1915_v12  ;;  %2490 = vpow2.f32 %v2222_v19 }
0x117f   :  { %v1999_v13 = vor.u32 1.1754944e-38, %v1998_v56 }
0x1180   :  { %1944 = vrot.lane.b32.xlu0 %v1940_v15, %s2534_s4  ;;  %v1917_v58 = vadd.f32 %v2485_v23, %v1916_v40 }
0x1182   :  { %v1921_v20 = vsel %vm1920_vm14, %v2485_v23, %v1917_v58 }
0x1183   :  { %v3172_v26 = vsel %vm1923_vm15, %v1925_v0, %v1921_v20  ;;  %v2489_v60 = vpop.eup %2488 }
0x1184   :  { %v2491_v24 = vpop.eup %2490  ;;  %v1988_v17 = vmul.f32 %v2489_v60, %v1971_v49  ;;  %vm1993_vm1 = vweird.f32 %v2489_v60 }
0x1185   :  { %v1970_v21 = vadd.f32 1.0, %v2491_v24  ;;  %vm1994_vm3 = vmor %vm1992_vm2, %vm1993_vm1 }
0x1186   :  { %v1989_v27 = vsub.f32 1.0, %v1988_v17 }
0x1187   :  { %2492 = vrcp.f32 %v1970_v21  ;;  %v1983_v23 = vand.u32 2147483648, %v1970_v21  ;;  %vm1977_vm6 = vweird.f32 %v1970_v21  ;;  %v1981_v53 = vand.u32 2147483647, %v1970_v21 }
0x1188   :  { %v1990_v11 = vmul.f32 %v2489_v60, %v1989_v27 }
0x1189   :  { %v1984_v40 = vor.u32 1.1754944e-38, %v1983_v23  ;;  %vm1982_vm8 = vcmp.eq.f32.partialorder %v1981_v53, 8.507059e+37  ;;  %v24_v53 = vld [vmem:[%s3417_s0] sm:$0xff]  }
0x118d   :  { %v2493_v37 = vpop.eup %2492 }
0x118e   :  { %v1973_v59 = vmul.f32 %v2493_v37, %v1970_v21  ;;  %vm1978_vm5 = vweird.f32 %v2493_v37 }
0x118f   :  { %vm1979_vm7 = vmor %vm1977_vm6, %vm1978_vm5 }
0x1190   :  { %v1974_v36 = vsub.f32 1.0, %v1973_v59 }
0x119d   :  { %v1937_v42 = vpop.permute.xlu0 %1936 }
0x119e   :  { %v1941_v9 = vmul.f32 %v1937_v42, %v3172_v26 }
0x11a0   :  { %1946 = vrot.lane.b32.xlu1 %v1941_v9, %s2534_s4 }
0x11a8   :  { %452 = vrot.lane.b32.xlu1 %v2736_v50, %s2534_s4  ;;  %v1991_v50 = vadd.f32 %v2489_v60, %v1990_v11 }
0x11aa   :  { %v1995_v32 = vsel %vm1994_vm3, %v2489_v60, %v1991_v50 }
0x11b0   :  { %467 = vrot.lane.b32.xlu1 %v2749_v31, %s2533_s14  ;;  %v1996_v31 = vand.u32 2147483647, %v1971_v49 }
0x11b2   :  { %vm1997_vm4 = vcmp.eq.f32.partialorder %v1996_v31, 8.507059e+37 }
0x11b3   :  { %v3184_v62 = vsel %vm1997_vm4, %v1999_v13, %v1995_v32 }
0x11b8   :  { %686 = vrot.lane.b32.xlu1 %v2816_v63, %s2533_s14 }
0x11c0   :  { %916 = vrot.lane.b32.xlu1 %v2879_v48, %s2533_s14  ;;  %v1975_v48 = vmul.f32 %v2493_v37, %v1974_v36 }
0x11c2   :  { %v1976_v15 = vadd.f32 %v2493_v37, %v1975_v48 }
0x11c4   :  { %v1980_v12 = vsel %vm1979_vm7, %v2493_v37, %v1976_v15 }
0x11c5   :  { %v3190_v43 = vsel %vm1982_vm8, %v1984_v40, %v1980_v12  ;;  %v26_v12 = vld [vmem:[%s3417_s0 + $0x8] sm:$0xff]   ;;  %v694_v40 = vunpack.c.l.bf16 %v24_v53 }
0x11ca   :  { %v2011_v63 = vpop.permute.xlu2 %2010 }
0x11cb   :  { %v2015_v25 = vmul.f32 %v2011_v63, %v3184_v62 }
0x11cd   :  { %2020 = vrot.lane.b32.xlu0 %v2015_v25, %s2534_s4 }
0x11d5   :  { %465 = vrot.lane.b32.xlu0 %v2751_v1, %s2533_s14  ;;  %v1930_v1 = vmul.f32 %v3168_v38, %v3126_v6 }
0x11da   :  { %v2009_v58 = vpop.permute.xlu1 %2008 }
0x11db   :  { %v2014_v57 = vmul.f32 %v2009_v58, %v3190_v43  ;;  %v695_v58 = vunpack.c.h.bf16 %v24_v53 }
0x11dd   :  { %2018 = vrot.lane.b32.xlu2 %v2014_v57, %s2534_s4  ;;  %676 = vrot.lane.b32.xlu0 %v2808_v51, %s2534_s4  ;;  %v697_v57 = vunpack.c.h.bf16 %v26_v12 }
0x11e5   :  { %454 = vrot.lane.b32.xlu2 %v2743_v54, %s2534_s4  ;;  %902 = vrot.lane.b32.xlu0 %v2869_v30, %s2534_s4 }
0x11ed   :  { %674 = vrot.lane.b32.xlu2 %v2804_v39, %s2534_s4  ;;  %914 = vrot.lane.b32.xlu0 %v2877_v33, %s2533_s14  ;;  %v1931_v39 = vmul.f32 %v3172_v26, %v3120_v3 }
0x11f2   :  { %v1945_v20 = vpop.permute.xlu0 %1944 }
0x11f3   :  { %v1950_v0 = vadd.f32 %v1945_v20, %v1930_v1  ;;  %v28_v1 = vld [vmem:[%s3417_s0 + $0x10] sm:$0xff]  }
0x11f5   :  { %2494 = vtanh.f32 %v1950_v0  ;;  %688 = vrot.lane.b32.xlu2 %v2818_v4, %s2533_s14  ;;  %1132 = vrot.lane.b32.xlu0 %v2956_v61, %s2534_s4  ;;  %v699_v0 = vmax.f32 %v695_v58, %v697_v57 }
0x11fb   :  { %v2495_v54 = vpop.eup %2494 }
0x11fc   :  { %1956 = vrot.lane.b32.xlu1 %v2495_v54, %s2533_s14  ;;  %v924_v54 = vunpack.c.l.bf16 %v28_v1 }
0x11fd   :  { %904 = vrot.lane.b32.xlu2 %v2872_v18, %s2534_s4 }
0x1205   :  { %1130 = vrot.lane.b32.xlu2 %v2953_v55, %s2534_s4 }
0x1212   :  { %v1947_v51 = vpop.permute.xlu1 %1946 }
0x1213   :  { %v1951_v30 = vadd.f32 %v1947_v51, %v1931_v39  ;;  %v925_v39 = vunpack.c.h.bf16 %v28_v1  ;;  %v30_v51 = vld [vmem:[%s3417_s0 + $0x18] sm:$0xff]  }
0x1215   :  { %2496 = vtanh.f32 %v1951_v30 }
0x121a   :  { %v453_v4 = vpop.permute.xlu1 %452 }
0x121b   :  { %v2497_v33 = vpop.eup %2496  ;;  %459 = vst.msk [vmem:[%s3422_s5] sm:$0xf] %vm458_vm9, %v453_v4  ;;  %v927_v4 = vmax.f32 %v699_v0, %v925_v39 }
0x121c   :  { %1958 = vrot.lane.b32.xlu2 %v2497_v33, %s2533_s14  ;;  %v1152_v33 = vunpack.c.l.bf16 %v30_v51 }
0x1222   :  { %v468_v18 = vpop.permute.xlu1 %467 }
0x1223   :  { %473 = vst.msk [vmem:[%s3422_s5 + $0x3c] sm:$0xf] %vm471_vm10, %v468_v18  ;;  %v1153_v18 = vunpack.c.h.bf16 %v30_v51 }
0x1224   :  { %1144 = vrot.lane.b32.xlu2 %v2963_v8, %s2533_s14  ;;  %v2004_v8 = vmul.f32 %v3190_v43, %v3131_v22 }
0x122a   :  { %v687_v55 = vpop.permute.xlu1 %686 }
0x122b   :  { %692 = vst.msk [vmem:[%s3422_s5 + $0x30] sm:$0xf] %vm471_vm10, %v687_v55  ;;  %v32_v55 = vld [vmem:[%s3417_s0 + $0x20] sm:$0xff]  }
0x122c   :  { %1370 = vrot.lane.b32.xlu2 %v3025_v35, %s2533_s14  ;;  %v2005_v35 = vmul.f32 %v3184_v62, %v3136_v10 }
0x1232   :  { %v917_v61 = vpop.permute.xlu1 %916 }
0x1233   :  { %921 = vst.msk [vmem:[%s3422_s5 + $0x2c] sm:$0xf] %vm471_vm10, %v917_v61 }
0x1234   :  { %1588 = vrot.lane.b32.xlu2 %v3084_v52, %s2534_s4 }
0x1237   :  { %v2019_v3 = vpop.permute.xlu2 %2018 }
0x1238   :  { %v2024_v6 = vadd.f32 %v2019_v3, %v2004_v8  ;;  %v1155_v8 = vmax.f32 %v927_v4, %v1153_v18  ;;  %v1380_v3 = vunpack.c.l.bf16 %v32_v55 }
0x123a   :  { %2498 = vtanh.f32 %v2024_v6  ;;  %v1381_v6 = vunpack.c.h.bf16 %v32_v55 }
0x123c   :  { %1814 = vrot.lane.b32.xlu2 %v3141_v44, %s2534_s4 }
0x123f   :  { %v455_v45 = vpop.permute.xlu2 %454  ;;  %v2021_v42 = vpop.permute.xlu0 %2020 }
0x1240   :  { %v2499_v9 = vpop.eup %2498  ;;  %460 = vst.msk [vmem:[%s3422_s5 + $0x4] sm:$0xf] %vm458_vm9, %v455_v45  ;;  %v2025_v52 = vadd.f32 %v2021_v42, %v2005_v35  ;;  %v34_v35 = vld [vmem:[%s3417_s0 + $0x28] sm:$0xff]   ;;  %v1383_v42 = vmax.f32 %v1155_v8, %v1381_v6 }
0x1241   :  { %2030 = vrot.lane.b32.xlu0 %v2499_v9, %s2533_s14  ;;  %v1608_v9 = vunpack.c.l.bf16 %v34_v35 }
0x1242   :  { %2500 = vtanh.f32 %v2025_v52  ;;  %v1609_v52 = vunpack.c.h.bf16 %v34_v35 }
0x1244   :  { %1828 = vrot.lane.b32.xlu2 %v3151_v28, %s2533_s14 }
0x1247   :  { %v675_v22 = vpop.permute.xlu2 %674  ;;  %v466_v44 = vpop.permute.xlu0 %465 }
0x1248   :  { %v2501_v47 = vpop.eup %2500  ;;  %680 = vst.msk [vmem:[%s3422_s5 + $0x8] sm:$0xf] %vm458_vm9, %v675_v22  ;;  %v36_v22 = vld [vmem:[%s3417_s0 + $0x30] sm:$0xff]  }
0x1249   :  { %472 = vst.msk [vmem:[%s3422_s5 + $0x38] sm:$0xf] %vm471_vm10, %v466_v44  ;;  %1358 = vrot.lane.b32.xlu0 %v3017_v14, %s2534_s4  ;;  %2032 = vrot.lane.b32.xlu1 %v2501_v47, %s2533_s14  ;;  %v1611_v47 = vmax.f32 %v1383_v42, %v1609_v52 }
0x124f   :  { %v689_v10 = vpop.permute.xlu2 %688  ;;  %v677_v28 = vpop.permute.xlu0 %676 }
0x1250   :  { %693 = vst.msk [vmem:[%s3422_s5 + $0x34] sm:$0xf] %vm471_vm10, %v689_v10  ;;  %v1836_v10 = vunpack.c.l.bf16 %v36_v22 }
0x1251   :  { %681 = vst.msk [vmem:[%s3422_s5 + $0xc] sm:$0xf] %vm458_vm9, %v677_v28  ;;  %1372 = vrot.lane.b32.xlu0 %v3027_v16, %s2533_s14  ;;  %1142 = vrot.lane.b32.xlu1 %v2961_v2, %s2533_s14  ;;  %v1837_v28 = vunpack.c.h.bf16 %v36_v22 }
0x1257   :  { %v905_v14 = vpop.permute.xlu2 %904  ;;  %v903_v49 = vpop.permute.xlu0 %902 }
0x1258   :  { %909 = vst.msk [vmem:[%s3422_s5 + $0x14] sm:$0xf] %vm458_vm9, %v905_v14  ;;  %v38_v14 = vld [vmem:[%s3417_s0 + $0x38] sm:$0xff]  }
0x1259   :  { %908 = vst.msk [vmem:[%s3422_s5 + $0x10] sm:$0xf] %vm458_vm9, %v903_v49  ;;  %1598 = vrot.lane.b32.xlu0 %v3089_v7, %s2533_s14  ;;  %1360 = vrot.lane.b32.xlu1 %v3020_v46, %s2534_s4 }
0x125f   :  { %v1131_v16 = vpop.permute.xlu2 %1130  ;;  %v915_v2 = vpop.permute.xlu0 %914 }
0x1260   :  { %1136 = vst.msk [vmem:[%s3422_s5 + $0x18] sm:$0xf] %vm458_vm9, %v1131_v16  ;;  %v1839_v16 = vmax.f32 %v1611_v47, %v1837_v28 }
0x1261   :  { %920 = vst.msk [vmem:[%s3422_s5 + $0x28] sm:$0xf] %vm471_vm10, %v915_v2  ;;  %1816 = vrot.lane.b32.xlu0 %v3144_v5, %s2534_s4  ;;  %1586 = vrot.lane.b32.xlu1 %v3081_v41, %s2534_s4  ;;  %v2064_v2 = vunpack.c.l.bf16 %v38_v14 }
0x1267   :  { %v1133_v7 = vpop.permute.xlu0 %1132 }
0x1268   :  { %1137 = vst.msk [vmem:[%s3422_s5 + $0x1c] sm:$0xf] %vm458_vm9, %v1133_v7  ;;  %v2065_v7 = vunpack.c.h.bf16 %v38_v14 }
0x1269   :  { %1600 = vrot.lane.b32.xlu1 %v3091_v34, %s2533_s14 }
0x126e   :  { %v1957_v46 = vpop.permute.xlu1 %1956 }
0x126f   :  { %v1962_v19 = vmul.f32 %v1957_v46, %v3168_v38 }
0x1271   :  { %v2038_v60 = vpack.c.bf16 %v1962_v19, %v1962_v19  ;;  %1826 = vrot.lane.b32.xlu1 %v3149_v29, %s2533_s14  ;;  %v2067_v19 = vmax.f32 %v1839_v16, %v2065_v7 }
0x1273   :  { %2042 = vrot.lane.b32.xlu0 %v2038_v60, %s2534_s4 }
0x1276   :  { %v1959_v5 = vpop.permute.xlu2 %1958 }
0x1277   :  { %v1963_v41 = vmul.f32 %v1959_v5, %v3172_v26  ;;  %v2069_v5 = vpack.c.bf16 %v2067_v19, %v2067_v19 }
0x1279   :  { %v2039_v24 = vpack.c.bf16 %v1963_v41, %v1963_v41 }
0x127b   :  { %2044 = vrot.lane.b32.xlu1 %v2039_v24, %s2534_s4  ;;  %v2071_v24 = vunpack.c.l.bf16 %v2069_v5 }
0x127e   :  { %v1145_v17 = vpop.permute.xlu2 %1144 }
0x127f   :  { %1149 = vst.msk [vmem:[%s3422_s5 + $0x24] sm:$0xf] %vm471_vm10, %v1145_v17 }
0x1286   :  { %v1371_v34 = vpop.permute.xlu2 %1370 }
0x1287   :  { %1376 = vst.msk [vmem:[%s3422_s5 + $0x18] sm:$0xf] %vm471_vm10, %v1371_v34  ;;  %v2073_v34 = vmax.f32 %v2071_v24, 0.0 }
0x1289   :  { %2075 = vst.msk [vmem:[#allocation2 + $0x8] sm:$0xff] %vm110_vm0, %v2073_v34 }
0x128e   :  { %v1589_v29 = vpop.permute.xlu2 %1588 }
0x128f   :  { %1593 = vst.msk [vmem:[%s3422_s5 + $0x2c] sm:$0xf] %vm458_vm9, %v1589_v29 }
0x1296   :  { %v1815_v38 = vpop.permute.xlu2 %1814 }
0x1297   :  { %1820 = vst.msk [vmem:[%s3422_s5 + $0x30] sm:$0xf] %vm458_vm9, %v1815_v38 }
0x129e   :  { %v1829_v26 = vpop.permute.xlu2 %1828 }
0x129f   :  { %1833 = vst.msk [vmem:[%s3422_s5 + $0xc] sm:$0xf] %vm471_vm10, %v1829_v26 }
0x12b3   :  { %v2031_v21 = vpop.permute.xlu0 %2030 }
0x12b4   :  { %v2036_v27 = vmul.f32 %v2031_v21, %v3190_v43  ;;  %v696_v43 = vunpack.c.l.bf16 %v26_v12 }
0x12b6   :  { %v2050_v11 = vpack.c.bf16 %v2036_v27, %v2036_v27  ;;  %v698_v20 = vmax.f32 %v694_v40, %v696_v43 }
0x12b8   :  { %2054 = vrot.lane.b32.xlu2 %v2050_v11, %s2533_s14  ;;  %v926_v30 = vmax.f32 %v698_v20, %v924_v54 }
0x12ba   :  { %v1154_v61 = vmax.f32 %v926_v30, %v1152_v33 }
0x12bb   :  { %v1359_v50 = vpop.permute.xlu0 %1358  ;;  %v2033_v37 = vpop.permute.xlu1 %2032 }
0x12bc   :  { %v2037_v56 = vmul.f32 %v2033_v37, %v3184_v62  ;;  %v1382_v45 = vmax.f32 %v1154_v61, %v1380_v3 }
0x12be   :  { %v2051_v31 = vpack.c.bf16 %v2037_v56, %v2037_v56  ;;  %v1610_v44 = vmax.f32 %v1382_v45, %v1608_v9 }
0x12c0   :  { %2056 = vrot.lane.b32.xlu0 %v2051_v31, %s2533_s14  ;;  %v1838_v49 = vmax.f32 %v1610_v44, %v1836_v10 }
0x12c2   :  { %v2066_v46 = vmax.f32 %v1838_v49, %v2064_v2 }
0x12c3   :  { %v1373_v32 = vpop.permute.xlu0 %1372  ;;  %v1143_v59 = vpop.permute.xlu1 %1142 }
0x12c4   :  { %1377 = vst.msk [vmem:[%s3422_s5 + $0x1c] sm:$0xf] %vm471_vm10, %v1373_v32  ;;  %v2068_v60 = vpack.c.bf16 %v2066_v46, %v2066_v46 }
0x12c5   :  { %1148 = vst.msk [vmem:[%s3422_s5 + $0x20] sm:$0xf] %vm471_vm10, %v1143_v59 }
0x12c6   :  { %1364 = vst.msk [vmem:[%s3422_s5 + $0x20] sm:$0xf] %vm458_vm9, %v1359_v50  ;;  %v2070_v41 = vunpack.c.l.bf16 %v2068_v60 }
0x12c8   :  { %v2072_v17 = vmax.f32 %v2070_v41, 0.0 }
0x12ca   :  { %2074 = vst.msk [vmem:[#allocation2] sm:$0xff] %vm110_vm0, %v2072_v17 }
0x12cb   :  { %v1599_v13 = vpop.permute.xlu0 %1598  ;;  %v1361_v62 = vpop.permute.xlu1 %1360  ;;  %2090 = dma.vmem_to_hbm [thread:$0]  %s2083_s18, 256, %s2085_s20, [#allocation3], %s2536_s2, %s2536_s2, %s2537_s3  }
0x12cc   :  { %1604 = vst.msk [vmem:[%s3422_s5 + $0x10] sm:$0xf] %vm471_vm10, %v1599_v13 }
0x12cd   :  { %1365 = vst.msk [vmem:[%s3422_s5 + $0x24] sm:$0xf] %vm458_vm9, %v1361_v62 }
0x12d3   :  { %v1817_v63 = vpop.permute.xlu0 %1816  ;;  %v1587_v25 = vpop.permute.xlu1 %1586 }
0x12d4   :  { %1821 = vst.msk [vmem:[%s3422_s5 + $0x34] sm:$0xf] %vm458_vm9, %v1817_v63 }
0x12d5   :  { %1592 = vst.msk [vmem:[%s3422_s5 + $0x28] sm:$0xf] %vm458_vm9, %v1587_v25 }
0x12db   :  { %v1601_v36 = vpop.permute.xlu1 %1600 }
0x12dc   :  { %1605 = vst.msk [vmem:[%s3422_s5 + $0x14] sm:$0xf] %vm471_vm10, %v1601_v36 }
0x12e3   :  { %v1827_v48 = vpop.permute.xlu1 %1826 }
0x12e4   :  { %1832 = vst.msk [vmem:[%s3422_s5 + $0x8] sm:$0xf] %vm471_vm10, %v1827_v48 }
0x12e5   :  { %v2043_v15 = vpop.permute.xlu0 %2042 }
0x12e6   :  { %2048 = vst.msk [vmem:[%s3422_s5 + $0x38] sm:$0xf] %vm458_vm9, %v2043_v15 }
0x12ed   :  { %v2045_v23 = vpop.permute.xlu1 %2044 }
0x12ee   :  { %2049 = vst.msk [vmem:[%s3422_s5 + $0x3c] sm:$0xf] %vm458_vm9, %v2045_v23 }
0x1312   :  { %v2055_v29 = vpop.permute.xlu2 %2054 }
0x1313   :  { %2060 = vst.msk [vmem:[%s3422_s5] sm:$0xf] %vm471_vm10, %v2055_v29 }
0x1332   :  { %v2057_v38 = vpop.permute.xlu0 %2056 }
0x1333   :  { %2061 = vst.msk [vmem:[%s3422_s5 + $0x4] sm:$0xf] %vm471_vm10, %v2057_v38 }
0x1334   :  { %2530 = dma.done.wait [#allocation3], 256  }
0x1335   :  { %2531 = vsyncadd [#allocation3], 4294967040 }
0x1336   :  { %2097 = vsyncpa [#allocation3], 1 }

</bundles_post_ra>
